<compile_context>
chip_gen: v5e
topology: v5e:2x2
jax: 0.10.0
libtpu: 0.0.40
codegen_flags: <defaults>
</compile_context>

<pallas_src>
import jax
import jax.numpy as jnp
from jax import lax
from jax.experimental import pallas as pl
from jax.experimental.pallas import tpu as pltpu

LANE = 128
SUBLANE = 8
K = 3                        # every conv in TCN_model has kernel_size=3
assert K % 2 == 1            # 'same' padding formula (pad = dilation) needs odd K
DILATIONS = (1, 2, 4, 8)     # resblock1..4 conv1 dilations (conv2/shortcut use 1)
MAX_OFF = max(DILATIONS) * (K - 1) // 2   # largest |time offset| of any tap = 8


# ----------------------------- Pallas kernel -------------------------------

def _make_tcn_kernel(L, L_pad, Cin, off):
    """off: dict name -> flat index into the packed f32 parameter slab (SMEM)."""

    def kernel(x_ref, p_ref, fc_ref, out_ref):
        # Single validity mask over time lanes (the only mask in the kernel).
        t = lax.broadcasted_iota(jnp.int32, (1, L_pad), 1)
        valid = (t < L).astype(jnp.float32)                 # (1, L_pad)

        def conv_same(planes, ci_n, co_n, dilation, w_base, b_base):
            """Dilated 'same' cross-correlation.
            planes: list of ci_n planes, each (BB, L_pad), zero outside [0, L).
            Weights are torch-(Co, Ci, K) flattened row-major in the SMEM slab.
            Time shift = XLU lane roll (slack padding makes un-masked taps
            exact); channel contraction = scalar-broadcast VPU FMAs (no MXU);
            one mask per output channel at the end."""
            pad = dilation * (K - 1) // 2
            shifted = []                                    # [k][ci] -> (BB, L_pad)
            for k in range(K):
                o = k * dilation - pad                      # in [-8, 8]
                row = []
                for ci in range(ci_n):
                    p = planes[ci]
                    s = p if o == 0 else pltpu.roll(p, shift=(-o) % L_pad, axis=1)
                    row.append(s)
                shifted.append(row)
            outs = []
            for co in range(co_n):
                acc = None
                for k in range(K):
                    for ci in range(ci_n):
                        w = p_ref[w_base + (co * ci_n + ci) * K + k]
                        term = w * shifted[k][ci]
                        acc = term if acc is None else acc + term
                outs.append((acc + p_ref[b_base + co]) * valid)
            return outs

        def relu(planes):
            return [jnp.maximum(p, 0.0) for p in planes]

        def resblock(planes, ci_n, dilation, name, shortcut_conv):
            r = relu(conv_same(planes, ci_n, 3, dilation,
                               off[name + ".w1"], off[name + ".b1"]))
            r = relu(conv_same(r, 3, 3, 1,
                               off[name + ".w2"], off[name + ".b2"]))
            if shortcut_conv:
                sc = conv_same(planes, ci_n, 3, 1,
                               off[name + ".ws"], off[name + ".bs"])
            else:
                sc = planes
            return [jnp.maximum(a + b, 0.0) for a, b in zip(sc, r)]

        planes = [x_ref[ci] for ci in range(Cin)]           # each (BB, L_pad)
        planes = resblock(planes, Cin, 1, "rb1", Cin != 3)
        planes = resblock(planes, 3, 2, "rb2", False)
        planes = resblock(planes, 3, 4, "rb3", False)
        planes = resblock(planes, 3, 8, "rb4", False)

        # ---- global average pool over valid time (lane reduction) ----------
        inv_L = 1.0 / float(L)
        pooled = [jnp.sum(p, axis=-1, keepdims=True) * inv_L for p in planes]  # (BB,1)

        # ---- lane-dense FC epilogue: out[b, n] = b[n] + sum_c pooled_c * W[n, c]
        fc = fc_ref[...]                                    # (8, LANE)
        out = fc[3:4, :]                                    # bias row
        out = out + pooled[0] * fc[0:1, :]
        out = out + pooled[1] * fc[1:2, :]
        out = out + pooled[2] * fc[2:3, :]
        out_ref[...] = out                                  # (BB, LANE) unmasked vst

    return kernel


# ------------------------------- wrapper ------------------------------------

def _pack_conv_params(params):
    """Flatten all conv weights+biases into one f32 slab (SMEM scalars)."""
    pieces, off = [], {}
    cursor = 0

    def add(name, arr):
        nonlocal cursor
        a = jnp.asarray(arr, jnp.float32).reshape(-1)
        off[name] = cursor
        cursor += int(a.shape[0])
        pieces.append(a)

    for blk in ("rb1", "rb2", "rb3", "rb4"):
        p = params[blk]
        add(blk + ".w1", p["w1"]); add(blk + ".b1", p["b1"])
        add(blk + ".w2", p["w2"]); add(blk + ".b2", p["b2"])
        if "ws" in p:
            add(blk + ".ws", p["ws"]); add(blk + ".bs", p["bs"])
    return jnp.concatenate(pieces), off


def tcn_forward(x_ncl, params, num_classes):
    B, Cin, L = x_ncl.shape
    assert num_classes <= LANE

    # Time on lanes, zero-padded with >= MAX_OFF slack so the single final
    # mask per conv is exact (rolled taps never wrap valid data back in).
    L_pad = ((L + MAX_OFF + LANE - 1) // LANE) * LANE
    # Batch on sublanes, padded to a multiple of 8 -> each plane block is a
    # full (8, 128) vreg; batch grid axis can shard across v7x TensorCores.
    BB = SUBLANE
    B_pad = ((B + BB - 1) // BB) * BB

    # (B, Cin, L) -> (Cin, B_pad, L_pad)
    x = jnp.transpose(x_ncl, (1, 0, 2)).astype(jnp.float32)
    x = jnp.pad(x, ((0, 0), (0, B_pad - B), (0, L_pad - L)))

    slab, off = _pack_conv_params(params)

    # FC table: rows 0..2 = W^T columns, row 3 = bias, rows 4..7 zero (full vreg).
    fc_w = jnp.asarray(params["fc"]["w"], jnp.float32)       # (num_classes, 3)
    fc_b = jnp.asarray(params["fc"]["b"], jnp.float32)       # (num_classes,)
    fc_tab = jnp.zeros((SUBLANE, LANE), jnp.float32)
    fc_tab = fc_tab.at[0:3, :num_classes].set(fc_w.T)
    fc_tab = fc_tab.at[3, :num_classes].set(fc_b)

    kernel = _make_tcn_kernel(L, L_pad, Cin, off)

    out = pl.pallas_call(
        kernel,
        out_shape=jax.ShapeDtypeStruct((B_pad, LANE), jnp.float32),
        grid=(B_pad // BB,),
        in_specs=[
            pl.BlockSpec((Cin, BB, L_pad), lambda b: (0, b, 0)),        # activations
            pl.BlockSpec(memory_space=pltpu.MemorySpace.SMEM),          # packed conv params
            pl.BlockSpec((SUBLANE, LANE), lambda b: (0, 0)),            # FC table
        ],
        out_specs=pl.BlockSpec((BB, LANE), lambda b: (b, 0)),
        compiler_params=pltpu.CompilerParams(
            dimension_semantics=("parallel",)),
    )(x, slab, fc_tab)

    return out[:B, :num_classes]


# ------------------------- pure-JAX reference (check) -----------------------

def _conv1d_ref(x, w, b, dilation):
    pad = dilation * (w.shape[-1] - 1) // 2
    y = lax.conv_general_dilated(x, w, window_strides=(1,),
                                 padding=[(pad, pad)], rhs_dilation=(dilation,),
                                 dimension_numbers=("NCH", "OIH", "NCH"))
    return y + b[None, :, None]


def tcn_ref(x, params):
    def resblock(h, p, dilation):
        r = jax.nn.relu(_conv1d_ref(h, p["w1"], p["b1"], dilation))
        r = jax.nn.relu(_conv1d_ref(r, p["w2"], p["b2"], 1))
        sc = _conv1d_ref(h, p["ws"], p["bs"], 1) if "ws" in p else h
        return jax.nn.relu(sc + r)

    h = resblock(x, params["rb1"], 1)
    h = resblock(h, params["rb2"], 2)
    h = resblock(h, params["rb3"], 4)
    h = resblock(h, params["rb4"], 8)
    pooled = jnp.mean(h, axis=2)
    return pooled @ params["fc"]["w"].T + params["fc"]["b"]


# ------------------------------ params init ---------------------------------

def init_params(key, input_size, num_classes):
    ks = iter(jax.random.split(key, 20))

    def w(shape, scale=0.3):
        return jax.random.normal(next(ks), shape, jnp.float32) * scale

    return {
        "rb1": {"w1": w((3, input_size, 3)), "b1": w((3,), 0.1),
                "w2": w((3, 3, 3)), "b2": w((3,), 0.1),
                "ws": w((3, input_size, 3)), "bs": w((3,), 0.1)},
        "rb2": {"w1": w((3, 3, 3)), "b1": w((3,), 0.1),
                "w2": w((3, 3, 3)), "b2": w((3,), 0.1)},
        "rb3": {"w1": w((3, 3, 3)), "b1": w((3,), 0.1),
                "w2": w((3, 3, 3)), "b2": w((3,), 0.1)},
        "rb4": {"w1": w((3, 3, 3)), "b1": w((3,), 0.1),
                "w2": w((3, 3, 3)), "b2": w((3,), 0.1)},
        "fc": {"w": w((num_classes, 3)), "b": w((num_classes,), 0.1)},
    }


if __name__ == "__main__":
    key = jax.random.PRNGKey(0)
    k_x, k_p = jax.random.split(key)

    B, Cin, L, num_classes = 2, 4, 16, 5
    x = jax.random.normal(k_x, (B, Cin, L), jnp.float32)   # NCL like PyTorch
    params = init_params(k_p, Cin, num_classes)

    out = tcn_forward(x, params, num_classes)
    out = jax.block_until_ready(out)

    ref = tcn_ref(x, params)
    assert out.shape == (B, num_classes)
    assert jnp.allclose(out, ref, atol=1e-4, rtol=1e-4), (out, ref)

    print("KERNEL_OK")
</pallas_src>

<mosaic_0001>
module attributes {stable_mosaic.version = 11 : i64} {
  func.func @kernel(%arg0: i32, %arg1: memref<4x8x128xf32, #tpu.memory_space<vmem>>, %arg2: memref<288xf32, #tpu.memory_space<smem>>, %arg3: memref<8x128xf32, #tpu.memory_space<vmem>>, %arg4: memref<8x128xf32, #tpu.memory_space<vmem>>) attributes {dimension_semantics = [#tpu.dimension_semantics<parallel>], iteration_bounds = array<i64: 1>, scalar_prefetch = 0 : i64, scratch_operands = 0 : i64, tpu.core_type = #tpu.core_type<tc>, window_params = [{transform_indices = @transform_0, window_bounds = array<i64: 4, 8, 128>}, {transform_indices = @transform_1, window_bounds = array<i64: 288>}, {pipeline_mode = #tpu.pipeline_mode<synchronous>, transform_indices = @transform_2, window_bounds = array<i64: 8, 128>}, {transform_indices = @transform_3, window_bounds = array<i64: 8, 128>}]} {
    %0 = tpu.iota {dimensions = array<i32: 1>} : vector<1x128xi32>
    %c16_i32 = arith.constant 16 : i32
    %1 = vector.broadcast %c16_i32 : i32 to vector<1x128xi32>
    %2 = arith.cmpi slt, %0, %1 : vector<1x128xi32>
    %3 = arith.extui %2 : vector<1x128xi1> to vector<1x128xi32>
    %4 = arith.sitofp %3 : vector<1x128xi32> to vector<1x128xf32>
    %c0 = arith.constant 0 : index
    %c0_0 = arith.constant 0 : index
    %c0_1 = arith.constant 0 : index
    %5 = vector.load %arg1[%c0, %c0_0, %c0_1] : memref<4x8x128xf32, #tpu.memory_space<vmem>>, vector<1x8x128xf32>
    %6 = vector.shape_cast %5 : vector<1x8x128xf32> to vector<8x128xf32>
    %c1 = arith.constant 1 : index
    %c0_2 = arith.constant 0 : index
    %c0_3 = arith.constant 0 : index
    %7 = vector.load %arg1[%c1, %c0_2, %c0_3] : memref<4x8x128xf32, #tpu.memory_space<vmem>>, vector<1x8x128xf32>
    %8 = vector.shape_cast %7 : vector<1x8x128xf32> to vector<8x128xf32>
    %c2 = arith.constant 2 : index
    %c0_4 = arith.constant 0 : index
    %c0_5 = arith.constant 0 : index
    %9 = vector.load %arg1[%c2, %c0_4, %c0_5] : memref<4x8x128xf32, #tpu.memory_space<vmem>>, vector<1x8x128xf32>
    %10 = vector.shape_cast %9 : vector<1x8x128xf32> to vector<8x128xf32>
    %c3 = arith.constant 3 : index
    %c0_6 = arith.constant 0 : index
    %c0_7 = arith.constant 0 : index
    %11 = vector.load %arg1[%c3, %c0_6, %c0_7] : memref<4x8x128xf32, #tpu.memory_space<vmem>>, vector<1x8x128xf32>
    %12 = vector.shape_cast %11 : vector<1x8x128xf32> to vector<8x128xf32>
    %c1_i32 = arith.constant 1 : i32
    %13 = tpu.dynamic_rotate %6 by %c1_i32 dim 1 : vector<8x128xf32>, i32 -> vector<8x128xf32>
    %c1_i32_8 = arith.constant 1 : i32
    %14 = tpu.dynamic_rotate %8 by %c1_i32_8 dim 1 : vector<8x128xf32>, i32 -> vector<8x128xf32>
    %c1_i32_9 = arith.constant 1 : i32
    %15 = tpu.dynamic_rotate %10 by %c1_i32_9 dim 1 : vector<8x128xf32>, i32 -> vector<8x128xf32>
    %c1_i32_10 = arith.constant 1 : i32
    %16 = tpu.dynamic_rotate %12 by %c1_i32_10 dim 1 : vector<8x128xf32>, i32 -> vector<8x128xf32>
    %c127_i32 = arith.constant 127 : i32
    %17 = tpu.dynamic_rotate %6 by %c127_i32 dim 1 : vector<8x128xf32>, i32 -> vector<8x128xf32>
    %c127_i32_11 = arith.constant 127 : i32
    %18 = tpu.dynamic_rotate %8 by %c127_i32_11 dim 1 : vector<8x128xf32>, i32 -> vector<8x128xf32>
    %c127_i32_12 = arith.constant 127 : i32
    %19 = tpu.dynamic_rotate %10 by %c127_i32_12 dim 1 : vector<8x128xf32>, i32 -> vector<8x128xf32>
    %c127_i32_13 = arith.constant 127 : i32
    %20 = tpu.dynamic_rotate %12 by %c127_i32_13 dim 1 : vector<8x128xf32>, i32 -> vector<8x128xf32>
    %c0_14 = arith.constant 0 : index
    %21 = memref.load %arg2[%c0_14] : memref<288xf32, #tpu.memory_space<smem>>
    %22 = vector.broadcast %21 : f32 to vector<8x128xf32>
    %23 = arith.mulf %22, %13 : vector<8x128xf32>
    %c3_15 = arith.constant 3 : index
    %24 = memref.load %arg2[%c3_15] : memref<288xf32, #tpu.memory_space<smem>>
    %25 = vector.broadcast %24 : f32 to vector<8x128xf32>
    %26 = arith.mulf %25, %14 : vector<8x128xf32>
    %27 = arith.addf %23, %26 : vector<8x128xf32>
    %c6 = arith.constant 6 : index
    %28 = memref.load %arg2[%c6] : memref<288xf32, #tpu.memory_space<smem>>
    %29 = vector.broadcast %28 : f32 to vector<8x128xf32>
    %30 = arith.mulf %29, %15 : vector<8x128xf32>
    %31 = arith.addf %27, %30 : vector<8x128xf32>
    %c9 = arith.constant 9 : index
    %32 = memref.load %arg2[%c9] : memref<288xf32, #tpu.memory_space<smem>>
    %33 = vector.broadcast %32 : f32 to vector<8x128xf32>
    %34 = arith.mulf %33, %16 : vector<8x128xf32>
    %35 = arith.addf %31, %34 : vector<8x128xf32>
    %c1_16 = arith.constant 1 : index
    %36 = memref.load %arg2[%c1_16] : memref<288xf32, #tpu.memory_space<smem>>
    %37 = vector.broadcast %36 : f32 to vector<8x128xf32>
    %38 = arith.mulf %37, %6 : vector<8x128xf32>
    %39 = arith.addf %35, %38 : vector<8x128xf32>
    %c4 = arith.constant 4 : index
    %40 = memref.load %arg2[%c4] : memref<288xf32, #tpu.memory_space<smem>>
    %41 = vector.broadcast %40 : f32 to vector<8x128xf32>
    %42 = arith.mulf %41, %8 : vector<8x128xf32>
    %43 = arith.addf %39, %42 : vector<8x128xf32>
    %c7 = arith.constant 7 : index
    %44 = memref.load %arg2[%c7] : memref<288xf32, #tpu.memory_space<smem>>
    %45 = vector.broadcast %44 : f32 to vector<8x128xf32>
    %46 = arith.mulf %45, %10 : vector<8x128xf32>
    %47 = arith.addf %43, %46 : vector<8x128xf32>
    %c10 = arith.constant 10 : index
    %48 = memref.load %arg2[%c10] : memref<288xf32, #tpu.memory_space<smem>>
    %49 = vector.broadcast %48 : f32 to vector<8x128xf32>
    %50 = arith.mulf %49, %12 : vector<8x128xf32>
    %51 = arith.addf %47, %50 : vector<8x128xf32>
    %c2_17 = arith.constant 2 : index
    %52 = memref.load %arg2[%c2_17] : memref<288xf32, #tpu.memory_space<smem>>
    %53 = vector.broadcast %52 : f32 to vector<8x128xf32>
    %54 = arith.mulf %53, %17 : vector<8x128xf32>
    %55 = arith.addf %51, %54 : vector<8x128xf32>
    %c5 = arith.constant 5 : index
    %56 = memref.load %arg2[%c5] : memref<288xf32, #tpu.memory_space<smem>>
    %57 = vector.broadcast %56 : f32 to vector<8x128xf32>
    %58 = arith.mulf %57, %18 : vector<8x128xf32>
    %59 = arith.addf %55, %58 : vector<8x128xf32>
    %c8 = arith.constant 8 : index
    %60 = memref.load %arg2[%c8] : memref<288xf32, #tpu.memory_space<smem>>
    %61 = vector.broadcast %60 : f32 to vector<8x128xf32>
    %62 = arith.mulf %61, %19 : vector<8x128xf32>
    %63 = arith.addf %59, %62 : vector<8x128xf32>
    %c11 = arith.constant 11 : index
    %64 = memref.load %arg2[%c11] : memref<288xf32, #tpu.memory_space<smem>>
    %65 = vector.broadcast %64 : f32 to vector<8x128xf32>
    %66 = arith.mulf %65, %20 : vector<8x128xf32>
    %67 = arith.addf %63, %66 : vector<8x128xf32>
    %c36 = arith.constant 36 : index
    %68 = memref.load %arg2[%c36] : memref<288xf32, #tpu.memory_space<smem>>
    %69 = vector.broadcast %68 : f32 to vector<8x128xf32>
    %70 = arith.addf %67, %69 : vector<8x128xf32>
    %71 = vector.broadcast %4 : vector<1x128xf32> to vector<8x128xf32>
    %72 = arith.mulf %70, %71 : vector<8x128xf32>
    %c12 = arith.constant 12 : index
    %73 = memref.load %arg2[%c12] : memref<288xf32, #tpu.memory_space<smem>>
    %74 = vector.broadcast %73 : f32 to vector<8x128xf32>
    %75 = arith.mulf %74, %13 : vector<8x128xf32>
    %c15 = arith.constant 15 : index
    %76 = memref.load %arg2[%c15] : memref<288xf32, #tpu.memory_space<smem>>
    %77 = vector.broadcast %76 : f32 to vector<8x128xf32>
    %78 = arith.mulf %77, %14 : vector<8x128xf32>
    %79 = arith.addf %75, %78 : vector<8x128xf32>
    %c18 = arith.constant 18 : index
    %80 = memref.load %arg2[%c18] : memref<288xf32, #tpu.memory_space<smem>>
    %81 = vector.broadcast %80 : f32 to vector<8x128xf32>
    %82 = arith.mulf %81, %15 : vector<8x128xf32>
    %83 = arith.addf %79, %82 : vector<8x128xf32>
    %c21 = arith.constant 21 : index
    %84 = memref.load %arg2[%c21] : memref<288xf32, #tpu.memory_space<smem>>
    %85 = vector.broadcast %84 : f32 to vector<8x128xf32>
    %86 = arith.mulf %85, %16 : vector<8x128xf32>
    %87 = arith.addf %83, %86 : vector<8x128xf32>
    %c13 = arith.constant 13 : index
    %88 = memref.load %arg2[%c13] : memref<288xf32, #tpu.memory_space<smem>>
    %89 = vector.broadcast %88 : f32 to vector<8x128xf32>
    %90 = arith.mulf %89, %6 : vector<8x128xf32>
    %91 = arith.addf %87, %90 : vector<8x128xf32>
    %c16 = arith.constant 16 : index
    %92 = memref.load %arg2[%c16] : memref<288xf32, #tpu.memory_space<smem>>
    %93 = vector.broadcast %92 : f32 to vector<8x128xf32>
    %94 = arith.mulf %93, %8 : vector<8x128xf32>
    %95 = arith.addf %91, %94 : vector<8x128xf32>
    %c19 = arith.constant 19 : index
    %96 = memref.load %arg2[%c19] : memref<288xf32, #tpu.memory_space<smem>>
    %97 = vector.broadcast %96 : f32 to vector<8x128xf32>
    %98 = arith.mulf %97, %10 : vector<8x128xf32>
    %99 = arith.addf %95, %98 : vector<8x128xf32>
    %c22 = arith.constant 22 : index
    %100 = memref.load %arg2[%c22] : memref<288xf32, #tpu.memory_space<smem>>
    %101 = vector.broadcast %100 : f32 to vector<8x128xf32>
    %102 = arith.mulf %101, %12 : vector<8x128xf32>
    %103 = arith.addf %99, %102 : vector<8x128xf32>
    %c14 = arith.constant 14 : index
    %104 = memref.load %arg2[%c14] : memref<288xf32, #tpu.memory_space<smem>>
    %105 = vector.broadcast %104 : f32 to vector<8x128xf32>
    %106 = arith.mulf %105, %17 : vector<8x128xf32>
    %107 = arith.addf %103, %106 : vector<8x128xf32>
    %c17 = arith.constant 17 : index
    %108 = memref.load %arg2[%c17] : memref<288xf32, #tpu.memory_space<smem>>
    %109 = vector.broadcast %108 : f32 to vector<8x128xf32>
    %110 = arith.mulf %109, %18 : vector<8x128xf32>
    %111 = arith.addf %107, %110 : vector<8x128xf32>
    %c20 = arith.constant 20 : index
    %112 = memref.load %arg2[%c20] : memref<288xf32, #tpu.memory_space<smem>>
    %113 = vector.broadcast %112 : f32 to vector<8x128xf32>
    %114 = arith.mulf %113, %19 : vector<8x128xf32>
    %115 = arith.addf %111, %114 : vector<8x128xf32>
    %c23 = arith.constant 23 : index
    %116 = memref.load %arg2[%c23] : memref<288xf32, #tpu.memory_space<smem>>
    %117 = vector.broadcast %116 : f32 to vector<8x128xf32>
    %118 = arith.mulf %117, %20 : vector<8x128xf32>
    %119 = arith.addf %115, %118 : vector<8x128xf32>
    %c37 = arith.constant 37 : index
    %120 = memref.load %arg2[%c37] : memref<288xf32, #tpu.memory_space<smem>>
    %121 = vector.broadcast %120 : f32 to vector<8x128xf32>
    %122 = arith.addf %119, %121 : vector<8x128xf32>
    %123 = vector.broadcast %4 : vector<1x128xf32> to vector<8x128xf32>
    %124 = arith.mulf %122, %123 : vector<8x128xf32>
    %c24 = arith.constant 24 : index
    %125 = memref.load %arg2[%c24] : memref<288xf32, #tpu.memory_space<smem>>
    %126 = vector.broadcast %125 : f32 to vector<8x128xf32>
    %127 = arith.mulf %126, %13 : vector<8x128xf32>
    %c27 = arith.constant 27 : index
    %128 = memref.load %arg2[%c27] : memref<288xf32, #tpu.memory_space<smem>>
    %129 = vector.broadcast %128 : f32 to vector<8x128xf32>
    %130 = arith.mulf %129, %14 : vector<8x128xf32>
    %131 = arith.addf %127, %130 : vector<8x128xf32>
    %c30 = arith.constant 30 : index
    %132 = memref.load %arg2[%c30] : memref<288xf32, #tpu.memory_space<smem>>
    %133 = vector.broadcast %132 : f32 to vector<8x128xf32>
    %134 = arith.mulf %133, %15 : vector<8x128xf32>
    %135 = arith.addf %131, %134 : vector<8x128xf32>
    %c33 = arith.constant 33 : index
    %136 = memref.load %arg2[%c33] : memref<288xf32, #tpu.memory_space<smem>>
    %137 = vector.broadcast %136 : f32 to vector<8x128xf32>
    %138 = arith.mulf %137, %16 : vector<8x128xf32>
    %139 = arith.addf %135, %138 : vector<8x128xf32>
    %c25 = arith.constant 25 : index
    %140 = memref.load %arg2[%c25] : memref<288xf32, #tpu.memory_space<smem>>
    %141 = vector.broadcast %140 : f32 to vector<8x128xf32>
    %142 = arith.mulf %141, %6 : vector<8x128xf32>
    %143 = arith.addf %139, %142 : vector<8x128xf32>
    %c28 = arith.constant 28 : index
    %144 = memref.load %arg2[%c28] : memref<288xf32, #tpu.memory_space<smem>>
    %145 = vector.broadcast %144 : f32 to vector<8x128xf32>
    %146 = arith.mulf %145, %8 : vector<8x128xf32>
    %147 = arith.addf %143, %146 : vector<8x128xf32>
    %c31 = arith.constant 31 : index
    %148 = memref.load %arg2[%c31] : memref<288xf32, #tpu.memory_space<smem>>
    %149 = vector.broadcast %148 : f32 to vector<8x128xf32>
    %150 = arith.mulf %149, %10 : vector<8x128xf32>
    %151 = arith.addf %147, %150 : vector<8x128xf32>
    %c34 = arith.constant 34 : index
    %152 = memref.load %arg2[%c34] : memref<288xf32, #tpu.memory_space<smem>>
    %153 = vector.broadcast %152 : f32 to vector<8x128xf32>
    %154 = arith.mulf %153, %12 : vector<8x128xf32>
    %155 = arith.addf %151, %154 : vector<8x128xf32>
    %c26 = arith.constant 26 : index
    %156 = memref.load %arg2[%c26] : memref<288xf32, #tpu.memory_space<smem>>
    %157 = vector.broadcast %156 : f32 to vector<8x128xf32>
    %158 = arith.mulf %157, %17 : vector<8x128xf32>
    %159 = arith.addf %155, %158 : vector<8x128xf32>
    %c29 = arith.constant 29 : index
    %160 = memref.load %arg2[%c29] : memref<288xf32, #tpu.memory_space<smem>>
    %161 = vector.broadcast %160 : f32 to vector<8x128xf32>
    %162 = arith.mulf %161, %18 : vector<8x128xf32>
    %163 = arith.addf %159, %162 : vector<8x128xf32>
    %c32 = arith.constant 32 : index
    %164 = memref.load %arg2[%c32] : memref<288xf32, #tpu.memory_space<smem>>
    %165 = vector.broadcast %164 : f32 to vector<8x128xf32>
    %166 = arith.mulf %165, %19 : vector<8x128xf32>
    %167 = arith.addf %163, %166 : vector<8x128xf32>
    %c35 = arith.constant 35 : index
    %168 = memref.load %arg2[%c35] : memref<288xf32, #tpu.memory_space<smem>>
    %169 = vector.broadcast %168 : f32 to vector<8x128xf32>
    %170 = arith.mulf %169, %20 : vector<8x128xf32>
    %171 = arith.addf %167, %170 : vector<8x128xf32>
    %c38 = arith.constant 38 : index
    %172 = memref.load %arg2[%c38] : memref<288xf32, #tpu.memory_space<smem>>
    %173 = vector.broadcast %172 : f32 to vector<8x128xf32>
    %174 = arith.addf %171, %173 : vector<8x128xf32>
    %175 = vector.broadcast %4 : vector<1x128xf32> to vector<8x128xf32>
    %176 = arith.mulf %174, %175 : vector<8x128xf32>
    %cst = arith.constant 0.000000e+00 : f32
    %177 = vector.broadcast %cst : f32 to vector<8x128xf32>
    %178 = arith.maximumf %72, %177 : vector<8x128xf32>
    %cst_18 = arith.constant 0.000000e+00 : f32
    %179 = vector.broadcast %cst_18 : f32 to vector<8x128xf32>
    %180 = arith.maximumf %124, %179 : vector<8x128xf32>
    %cst_19 = arith.constant 0.000000e+00 : f32
    %181 = vector.broadcast %cst_19 : f32 to vector<8x128xf32>
    %182 = arith.maximumf %176, %181 : vector<8x128xf32>
    %c1_i32_20 = arith.constant 1 : i32
    %183 = tpu.dynamic_rotate %178 by %c1_i32_20 dim 1 : vector<8x128xf32>, i32 -> vector<8x128xf32>
    %c1_i32_21 = arith.constant 1 : i32
    %184 = tpu.dynamic_rotate %180 by %c1_i32_21 dim 1 : vector<8x128xf32>, i32 -> vector<8x128xf32>
    %c1_i32_22 = arith.constant 1 : i32
    %185 = tpu.dynamic_rotate %182 by %c1_i32_22 dim 1 : vector<8x128xf32>, i32 -> vector<8x128xf32>
    %c127_i32_23 = arith.constant 127 : i32
    %186 = tpu.dynamic_rotate %178 by %c127_i32_23 dim 1 : vector<8x128xf32>, i32 -> vector<8x128xf32>
    %c127_i32_24 = arith.constant 127 : i32
    %187 = tpu.dynamic_rotate %180 by %c127_i32_24 dim 1 : vector<8x128xf32>, i32 -> vector<8x128xf32>
    %c127_i32_25 = arith.constant 127 : i32
    %188 = tpu.dynamic_rotate %182 by %c127_i32_25 dim 1 : vector<8x128xf32>, i32 -> vector<8x128xf32>
    %c39 = arith.constant 39 : index
    %189 = memref.load %arg2[%c39] : memref<288xf32, #tpu.memory_space<smem>>
    %190 = vector.broadcast %189 : f32 to vector<8x128xf32>
    %191 = arith.mulf %190, %183 : vector<8x128xf32>
    %c42 = arith.constant 42 : index
    %192 = memref.load %arg2[%c42] : memref<288xf32, #tpu.memory_space<smem>>
    %193 = vector.broadcast %192 : f32 to vector<8x128xf32>
    %194 = arith.mulf %193, %184 : vector<8x128xf32>
    %195 = arith.addf %191, %194 : vector<8x128xf32>
    %c45 = arith.constant 45 : index
    %196 = memref.load %arg2[%c45] : memref<288xf32, #tpu.memory_space<smem>>
    %197 = vector.broadcast %196 : f32 to vector<8x128xf32>
    %198 = arith.mulf %197, %185 : vector<8x128xf32>
    %199 = arith.addf %195, %198 : vector<8x128xf32>
    %c40 = arith.constant 40 : index
    %200 = memref.load %arg2[%c40] : memref<288xf32, #tpu.memory_space<smem>>
    %201 = vector.broadcast %200 : f32 to vector<8x128xf32>
    %202 = arith.mulf %201, %178 : vector<8x128xf32>
    %203 = arith.addf %199, %202 : vector<8x128xf32>
    %c43 = arith.constant 43 : index
    %204 = memref.load %arg2[%c43] : memref<288xf32, #tpu.memory_space<smem>>
    %205 = vector.broadcast %204 : f32 to vector<8x128xf32>
    %206 = arith.mulf %205, %180 : vector<8x128xf32>
    %207 = arith.addf %203, %206 : vector<8x128xf32>
    %c46 = arith.constant 46 : index
    %208 = memref.load %arg2[%c46] : memref<288xf32, #tpu.memory_space<smem>>
    %209 = vector.broadcast %208 : f32 to vector<8x128xf32>
    %210 = arith.mulf %209, %182 : vector<8x128xf32>
    %211 = arith.addf %207, %210 : vector<8x128xf32>
    %c41 = arith.constant 41 : index
    %212 = memref.load %arg2[%c41] : memref<288xf32, #tpu.memory_space<smem>>
    %213 = vector.broadcast %212 : f32 to vector<8x128xf32>
    %214 = arith.mulf %213, %186 : vector<8x128xf32>
    %215 = arith.addf %211, %214 : vector<8x128xf32>
    %c44 = arith.constant 44 : index
    %216 = memref.load %arg2[%c44] : memref<288xf32, #tpu.memory_space<smem>>
    %217 = vector.broadcast %216 : f32 to vector<8x128xf32>
    %218 = arith.mulf %217, %187 : vector<8x128xf32>
    %219 = arith.addf %215, %218 : vector<8x128xf32>
    %c47 = arith.constant 47 : index
    %220 = memref.load %arg2[%c47] : memref<288xf32, #tpu.memory_space<smem>>
    %221 = vector.broadcast %220 : f32 to vector<8x128xf32>
    %222 = arith.mulf %221, %188 : vector<8x128xf32>
    %223 = arith.addf %219, %222 : vector<8x128xf32>
    %c66 = arith.constant 66 : index
    %224 = memref.load %arg2[%c66] : memref<288xf32, #tpu.memory_space<smem>>
    %225 = vector.broadcast %224 : f32 to vector<8x128xf32>
    %226 = arith.addf %223, %225 : vector<8x128xf32>
    %227 = vector.broadcast %4 : vector<1x128xf32> to vector<8x128xf32>
    %228 = arith.mulf %226, %227 : vector<8x128xf32>
    %c48 = arith.constant 48 : index
    %229 = memref.load %arg2[%c48] : memref<288xf32, #tpu.memory_space<smem>>
    %230 = vector.broadcast %229 : f32 to vector<8x128xf32>
    %231 = arith.mulf %230, %183 : vector<8x128xf32>
    %c51 = arith.constant 51 : index
    %232 = memref.load %arg2[%c51] : memref<288xf32, #tpu.memory_space<smem>>
    %233 = vector.broadcast %232 : f32 to vector<8x128xf32>
    %234 = arith.mulf %233, %184 : vector<8x128xf32>
    %235 = arith.addf %231, %234 : vector<8x128xf32>
    %c54 = arith.constant 54 : index
    %236 = memref.load %arg2[%c54] : memref<288xf32, #tpu.memory_space<smem>>
    %237 = vector.broadcast %236 : f32 to vector<8x128xf32>
    %238 = arith.mulf %237, %185 : vector<8x128xf32>
    %239 = arith.addf %235, %238 : vector<8x128xf32>
    %c49 = arith.constant 49 : index
    %240 = memref.load %arg2[%c49] : memref<288xf32, #tpu.memory_space<smem>>
    %241 = vector.broadcast %240 : f32 to vector<8x128xf32>
    %242 = arith.mulf %241, %178 : vector<8x128xf32>
    %243 = arith.addf %239, %242 : vector<8x128xf32>
    %c52 = arith.constant 52 : index
    %244 = memref.load %arg2[%c52] : memref<288xf32, #tpu.memory_space<smem>>
    %245 = vector.broadcast %244 : f32 to vector<8x128xf32>
    %246 = arith.mulf %245, %180 : vector<8x128xf32>
    %247 = arith.addf %243, %246 : vector<8x128xf32>
    %c55 = arith.constant 55 : index
    %248 = memref.load %arg2[%c55] : memref<288xf32, #tpu.memory_space<smem>>
    %249 = vector.broadcast %248 : f32 to vector<8x128xf32>
    %250 = arith.mulf %249, %182 : vector<8x128xf32>
    %251 = arith.addf %247, %250 : vector<8x128xf32>
    %c50 = arith.constant 50 : index
    %252 = memref.load %arg2[%c50] : memref<288xf32, #tpu.memory_space<smem>>
    %253 = vector.broadcast %252 : f32 to vector<8x128xf32>
    %254 = arith.mulf %253, %186 : vector<8x128xf32>
    %255 = arith.addf %251, %254 : vector<8x128xf32>
    %c53 = arith.constant 53 : index
    %256 = memref.load %arg2[%c53] : memref<288xf32, #tpu.memory_space<smem>>
    %257 = vector.broadcast %256 : f32 to vector<8x128xf32>
    %258 = arith.mulf %257, %187 : vector<8x128xf32>
    %259 = arith.addf %255, %258 : vector<8x128xf32>
    %c56 = arith.constant 56 : index
    %260 = memref.load %arg2[%c56] : memref<288xf32, #tpu.memory_space<smem>>
    %261 = vector.broadcast %260 : f32 to vector<8x128xf32>
    %262 = arith.mulf %261, %188 : vector<8x128xf32>
    %263 = arith.addf %259, %262 : vector<8x128xf32>
    %c67 = arith.constant 67 : index
    %264 = memref.load %arg2[%c67] : memref<288xf32, #tpu.memory_space<smem>>
    %265 = vector.broadcast %264 : f32 to vector<8x128xf32>
    %266 = arith.addf %263, %265 : vector<8x128xf32>
    %267 = vector.broadcast %4 : vector<1x128xf32> to vector<8x128xf32>
    %268 = arith.mulf %266, %267 : vector<8x128xf32>
    %c57 = arith.constant 57 : index
    %269 = memref.load %arg2[%c57] : memref<288xf32, #tpu.memory_space<smem>>
    %270 = vector.broadcast %269 : f32 to vector<8x128xf32>
    %271 = arith.mulf %270, %183 : vector<8x128xf32>
    %c60 = arith.constant 60 : index
    %272 = memref.load %arg2[%c60] : memref<288xf32, #tpu.memory_space<smem>>
    %273 = vector.broadcast %272 : f32 to vector<8x128xf32>
    %274 = arith.mulf %273, %184 : vector<8x128xf32>
    %275 = arith.addf %271, %274 : vector<8x128xf32>
    %c63 = arith.constant 63 : index
    %276 = memref.load %arg2[%c63] : memref<288xf32, #tpu.memory_space<smem>>
    %277 = vector.broadcast %276 : f32 to vector<8x128xf32>
    %278 = arith.mulf %277, %185 : vector<8x128xf32>
    %279 = arith.addf %275, %278 : vector<8x128xf32>
    %c58 = arith.constant 58 : index
    %280 = memref.load %arg2[%c58] : memref<288xf32, #tpu.memory_space<smem>>
    %281 = vector.broadcast %280 : f32 to vector<8x128xf32>
    %282 = arith.mulf %281, %178 : vector<8x128xf32>
    %283 = arith.addf %279, %282 : vector<8x128xf32>
    %c61 = arith.constant 61 : index
    %284 = memref.load %arg2[%c61] : memref<288xf32, #tpu.memory_space<smem>>
    %285 = vector.broadcast %284 : f32 to vector<8x128xf32>
    %286 = arith.mulf %285, %180 : vector<8x128xf32>
    %287 = arith.addf %283, %286 : vector<8x128xf32>
    %c64 = arith.constant 64 : index
    %288 = memref.load %arg2[%c64] : memref<288xf32, #tpu.memory_space<smem>>
    %289 = vector.broadcast %288 : f32 to vector<8x128xf32>
    %290 = arith.mulf %289, %182 : vector<8x128xf32>
    %291 = arith.addf %287, %290 : vector<8x128xf32>
    %c59 = arith.constant 59 : index
    %292 = memref.load %arg2[%c59] : memref<288xf32, #tpu.memory_space<smem>>
    %293 = vector.broadcast %292 : f32 to vector<8x128xf32>
    %294 = arith.mulf %293, %186 : vector<8x128xf32>
    %295 = arith.addf %291, %294 : vector<8x128xf32>
    %c62 = arith.constant 62 : index
    %296 = memref.load %arg2[%c62] : memref<288xf32, #tpu.memory_space<smem>>
    %297 = vector.broadcast %296 : f32 to vector<8x128xf32>
    %298 = arith.mulf %297, %187 : vector<8x128xf32>
    %299 = arith.addf %295, %298 : vector<8x128xf32>
    %c65 = arith.constant 65 : index
    %300 = memref.load %arg2[%c65] : memref<288xf32, #tpu.memory_space<smem>>
    %301 = vector.broadcast %300 : f32 to vector<8x128xf32>
    %302 = arith.mulf %301, %188 : vector<8x128xf32>
    %303 = arith.addf %299, %302 : vector<8x128xf32>
    %c68 = arith.constant 68 : index
    %304 = memref.load %arg2[%c68] : memref<288xf32, #tpu.memory_space<smem>>
    %305 = vector.broadcast %304 : f32 to vector<8x128xf32>
    %306 = arith.addf %303, %305 : vector<8x128xf32>
    %307 = vector.broadcast %4 : vector<1x128xf32> to vector<8x128xf32>
    %308 = arith.mulf %306, %307 : vector<8x128xf32>
    %cst_26 = arith.constant 0.000000e+00 : f32
    %309 = vector.broadcast %cst_26 : f32 to vector<8x128xf32>
    %310 = arith.maximumf %228, %309 : vector<8x128xf32>
    %cst_27 = arith.constant 0.000000e+00 : f32
    %311 = vector.broadcast %cst_27 : f32 to vector<8x128xf32>
    %312 = arith.maximumf %268, %311 : vector<8x128xf32>
    %cst_28 = arith.constant 0.000000e+00 : f32
    %313 = vector.broadcast %cst_28 : f32 to vector<8x128xf32>
    %314 = arith.maximumf %308, %313 : vector<8x128xf32>
    %c1_i32_29 = arith.constant 1 : i32
    %315 = tpu.dynamic_rotate %6 by %c1_i32_29 dim 1 : vector<8x128xf32>, i32 -> vector<8x128xf32>
    %c1_i32_30 = arith.constant 1 : i32
    %316 = tpu.dynamic_rotate %8 by %c1_i32_30 dim 1 : vector<8x128xf32>, i32 -> vector<8x128xf32>
    %c1_i32_31 = arith.constant 1 : i32
    %317 = tpu.dynamic_rotate %10 by %c1_i32_31 dim 1 : vector<8x128xf32>, i32 -> vector<8x128xf32>
    %c1_i32_32 = arith.constant 1 : i32
    %318 = tpu.dynamic_rotate %12 by %c1_i32_32 dim 1 : vector<8x128xf32>, i32 -> vector<8x128xf32>
    %c127_i32_33 = arith.constant 127 : i32
    %319 = tpu.dynamic_rotate %6 by %c127_i32_33 dim 1 : vector<8x128xf32>, i32 -> vector<8x128xf32>
    %c127_i32_34 = arith.constant 127 : i32
    %320 = tpu.dynamic_rotate %8 by %c127_i32_34 dim 1 : vector<8x128xf32>, i32 -> vector<8x128xf32>
    %c127_i32_35 = arith.constant 127 : i32
    %321 = tpu.dynamic_rotate %10 by %c127_i32_35 dim 1 : vector<8x128xf32>, i32 -> vector<8x128xf32>
    %c127_i32_36 = arith.constant 127 : i32
    %322 = tpu.dynamic_rotate %12 by %c127_i32_36 dim 1 : vector<8x128xf32>, i32 -> vector<8x128xf32>
    %c69 = arith.constant 69 : index
    %323 = memref.load %arg2[%c69] : memref<288xf32, #tpu.memory_space<smem>>
    %324 = vector.broadcast %323 : f32 to vector<8x128xf32>
    %325 = arith.mulf %324, %315 : vector<8x128xf32>
    %c72 = arith.constant 72 : index
    %326 = memref.load %arg2[%c72] : memref<288xf32, #tpu.memory_space<smem>>
    %327 = vector.broadcast %326 : f32 to vector<8x128xf32>
    %328 = arith.mulf %327, %316 : vector<8x128xf32>
    %329 = arith.addf %325, %328 : vector<8x128xf32>
    %c75 = arith.constant 75 : index
    %330 = memref.load %arg2[%c75] : memref<288xf32, #tpu.memory_space<smem>>
    %331 = vector.broadcast %330 : f32 to vector<8x128xf32>
    %332 = arith.mulf %331, %317 : vector<8x128xf32>
    %333 = arith.addf %329, %332 : vector<8x128xf32>
    %c78 = arith.constant 78 : index
    %334 = memref.load %arg2[%c78] : memref<288xf32, #tpu.memory_space<smem>>
    %335 = vector.broadcast %334 : f32 to vector<8x128xf32>
    %336 = arith.mulf %335, %318 : vector<8x128xf32>
    %337 = arith.addf %333, %336 : vector<8x128xf32>
    %c70 = arith.constant 70 : index
    %338 = memref.load %arg2[%c70] : memref<288xf32, #tpu.memory_space<smem>>
    %339 = vector.broadcast %338 : f32 to vector<8x128xf32>
    %340 = arith.mulf %339, %6 : vector<8x128xf32>
    %341 = arith.addf %337, %340 : vector<8x128xf32>
    %c73 = arith.constant 73 : index
    %342 = memref.load %arg2[%c73] : memref<288xf32, #tpu.memory_space<smem>>
    %343 = vector.broadcast %342 : f32 to vector<8x128xf32>
    %344 = arith.mulf %343, %8 : vector<8x128xf32>
    %345 = arith.addf %341, %344 : vector<8x128xf32>
    %c76 = arith.constant 76 : index
    %346 = memref.load %arg2[%c76] : memref<288xf32, #tpu.memory_space<smem>>
    %347 = vector.broadcast %346 : f32 to vector<8x128xf32>
    %348 = arith.mulf %347, %10 : vector<8x128xf32>
    %349 = arith.addf %345, %348 : vector<8x128xf32>
    %c79 = arith.constant 79 : index
    %350 = memref.load %arg2[%c79] : memref<288xf32, #tpu.memory_space<smem>>
    %351 = vector.broadcast %350 : f32 to vector<8x128xf32>
    %352 = arith.mulf %351, %12 : vector<8x128xf32>
    %353 = arith.addf %349, %352 : vector<8x128xf32>
    %c71 = arith.constant 71 : index
    %354 = memref.load %arg2[%c71] : memref<288xf32, #tpu.memory_space<smem>>
    %355 = vector.broadcast %354 : f32 to vector<8x128xf32>
    %356 = arith.mulf %355, %319 : vector<8x128xf32>
    %357 = arith.addf %353, %356 : vector<8x128xf32>
    %c74 = arith.constant 74 : index
    %358 = memref.load %arg2[%c74] : memref<288xf32, #tpu.memory_space<smem>>
    %359 = vector.broadcast %358 : f32 to vector<8x128xf32>
    %360 = arith.mulf %359, %320 : vector<8x128xf32>
    %361 = arith.addf %357, %360 : vector<8x128xf32>
    %c77 = arith.constant 77 : index
    %362 = memref.load %arg2[%c77] : memref<288xf32, #tpu.memory_space<smem>>
    %363 = vector.broadcast %362 : f32 to vector<8x128xf32>
    %364 = arith.mulf %363, %321 : vector<8x128xf32>
    %365 = arith.addf %361, %364 : vector<8x128xf32>
    %c80 = arith.constant 80 : index
    %366 = memref.load %arg2[%c80] : memref<288xf32, #tpu.memory_space<smem>>
    %367 = vector.broadcast %366 : f32 to vector<8x128xf32>
    %368 = arith.mulf %367, %322 : vector<8x128xf32>
    %369 = arith.addf %365, %368 : vector<8x128xf32>
    %c105 = arith.constant 105 : index
    %370 = memref.load %arg2[%c105] : memref<288xf32, #tpu.memory_space<smem>>
    %371 = vector.broadcast %370 : f32 to vector<8x128xf32>
    %372 = arith.addf %369, %371 : vector<8x128xf32>
    %373 = vector.broadcast %4 : vector<1x128xf32> to vector<8x128xf32>
    %374 = arith.mulf %372, %373 : vector<8x128xf32>
    %c81 = arith.constant 81 : index
    %375 = memref.load %arg2[%c81] : memref<288xf32, #tpu.memory_space<smem>>
    %376 = vector.broadcast %375 : f32 to vector<8x128xf32>
    %377 = arith.mulf %376, %315 : vector<8x128xf32>
    %c84 = arith.constant 84 : index
    %378 = memref.load %arg2[%c84] : memref<288xf32, #tpu.memory_space<smem>>
    %379 = vector.broadcast %378 : f32 to vector<8x128xf32>
    %380 = arith.mulf %379, %316 : vector<8x128xf32>
    %381 = arith.addf %377, %380 : vector<8x128xf32>
    %c87 = arith.constant 87 : index
    %382 = memref.load %arg2[%c87] : memref<288xf32, #tpu.memory_space<smem>>
    %383 = vector.broadcast %382 : f32 to vector<8x128xf32>
    %384 = arith.mulf %383, %317 : vector<8x128xf32>
    %385 = arith.addf %381, %384 : vector<8x128xf32>
    %c90 = arith.constant 90 : index
    %386 = memref.load %arg2[%c90] : memref<288xf32, #tpu.memory_space<smem>>
    %387 = vector.broadcast %386 : f32 to vector<8x128xf32>
    %388 = arith.mulf %387, %318 : vector<8x128xf32>
    %389 = arith.addf %385, %388 : vector<8x128xf32>
    %c82 = arith.constant 82 : index
    %390 = memref.load %arg2[%c82] : memref<288xf32, #tpu.memory_space<smem>>
    %391 = vector.broadcast %390 : f32 to vector<8x128xf32>
    %392 = arith.mulf %391, %6 : vector<8x128xf32>
    %393 = arith.addf %389, %392 : vector<8x128xf32>
    %c85 = arith.constant 85 : index
    %394 = memref.load %arg2[%c85] : memref<288xf32, #tpu.memory_space<smem>>
    %395 = vector.broadcast %394 : f32 to vector<8x128xf32>
    %396 = arith.mulf %395, %8 : vector<8x128xf32>
    %397 = arith.addf %393, %396 : vector<8x128xf32>
    %c88 = arith.constant 88 : index
    %398 = memref.load %arg2[%c88] : memref<288xf32, #tpu.memory_space<smem>>
    %399 = vector.broadcast %398 : f32 to vector<8x128xf32>
    %400 = arith.mulf %399, %10 : vector<8x128xf32>
    %401 = arith.addf %397, %400 : vector<8x128xf32>
    %c91 = arith.constant 91 : index
    %402 = memref.load %arg2[%c91] : memref<288xf32, #tpu.memory_space<smem>>
    %403 = vector.broadcast %402 : f32 to vector<8x128xf32>
    %404 = arith.mulf %403, %12 : vector<8x128xf32>
    %405 = arith.addf %401, %404 : vector<8x128xf32>
    %c83 = arith.constant 83 : index
    %406 = memref.load %arg2[%c83] : memref<288xf32, #tpu.memory_space<smem>>
    %407 = vector.broadcast %406 : f32 to vector<8x128xf32>
    %408 = arith.mulf %407, %319 : vector<8x128xf32>
    %409 = arith.addf %405, %408 : vector<8x128xf32>
    %c86 = arith.constant 86 : index
    %410 = memref.load %arg2[%c86] : memref<288xf32, #tpu.memory_space<smem>>
    %411 = vector.broadcast %410 : f32 to vector<8x128xf32>
    %412 = arith.mulf %411, %320 : vector<8x128xf32>
    %413 = arith.addf %409, %412 : vector<8x128xf32>
    %c89 = arith.constant 89 : index
    %414 = memref.load %arg2[%c89] : memref<288xf32, #tpu.memory_space<smem>>
    %415 = vector.broadcast %414 : f32 to vector<8x128xf32>
    %416 = arith.mulf %415, %321 : vector<8x128xf32>
    %417 = arith.addf %413, %416 : vector<8x128xf32>
    %c92 = arith.constant 92 : index
    %418 = memref.load %arg2[%c92] : memref<288xf32, #tpu.memory_space<smem>>
    %419 = vector.broadcast %418 : f32 to vector<8x128xf32>
    %420 = arith.mulf %419, %322 : vector<8x128xf32>
    %421 = arith.addf %417, %420 : vector<8x128xf32>
    %c106 = arith.constant 106 : index
    %422 = memref.load %arg2[%c106] : memref<288xf32, #tpu.memory_space<smem>>
    %423 = vector.broadcast %422 : f32 to vector<8x128xf32>
    %424 = arith.addf %421, %423 : vector<8x128xf32>
    %425 = vector.broadcast %4 : vector<1x128xf32> to vector<8x128xf32>
    %426 = arith.mulf %424, %425 : vector<8x128xf32>
    %c93 = arith.constant 93 : index
    %427 = memref.load %arg2[%c93] : memref<288xf32, #tpu.memory_space<smem>>
    %428 = vector.broadcast %427 : f32 to vector<8x128xf32>
    %429 = arith.mulf %428, %315 : vector<8x128xf32>
    %c96 = arith.constant 96 : index
    %430 = memref.load %arg2[%c96] : memref<288xf32, #tpu.memory_space<smem>>
    %431 = vector.broadcast %430 : f32 to vector<8x128xf32>
    %432 = arith.mulf %431, %316 : vector<8x128xf32>
    %433 = arith.addf %429, %432 : vector<8x128xf32>
    %c99 = arith.constant 99 : index
    %434 = memref.load %arg2[%c99] : memref<288xf32, #tpu.memory_space<smem>>
    %435 = vector.broadcast %434 : f32 to vector<8x128xf32>
    %436 = arith.mulf %435, %317 : vector<8x128xf32>
    %437 = arith.addf %433, %436 : vector<8x128xf32>
    %c102 = arith.constant 102 : index
    %438 = memref.load %arg2[%c102] : memref<288xf32, #tpu.memory_space<smem>>
    %439 = vector.broadcast %438 : f32 to vector<8x128xf32>
    %440 = arith.mulf %439, %318 : vector<8x128xf32>
    %441 = arith.addf %437, %440 : vector<8x128xf32>
    %c94 = arith.constant 94 : index
    %442 = memref.load %arg2[%c94] : memref<288xf32, #tpu.memory_space<smem>>
    %443 = vector.broadcast %442 : f32 to vector<8x128xf32>
    %444 = arith.mulf %443, %6 : vector<8x128xf32>
    %445 = arith.addf %441, %444 : vector<8x128xf32>
    %c97 = arith.constant 97 : index
    %446 = memref.load %arg2[%c97] : memref<288xf32, #tpu.memory_space<smem>>
    %447 = vector.broadcast %446 : f32 to vector<8x128xf32>
    %448 = arith.mulf %447, %8 : vector<8x128xf32>
    %449 = arith.addf %445, %448 : vector<8x128xf32>
    %c100 = arith.constant 100 : index
    %450 = memref.load %arg2[%c100] : memref<288xf32, #tpu.memory_space<smem>>
    %451 = vector.broadcast %450 : f32 to vector<8x128xf32>
    %452 = arith.mulf %451, %10 : vector<8x128xf32>
    %453 = arith.addf %449, %452 : vector<8x128xf32>
    %c103 = arith.constant 103 : index
    %454 = memref.load %arg2[%c103] : memref<288xf32, #tpu.memory_space<smem>>
    %455 = vector.broadcast %454 : f32 to vector<8x128xf32>
    %456 = arith.mulf %455, %12 : vector<8x128xf32>
    %457 = arith.addf %453, %456 : vector<8x128xf32>
    %c95 = arith.constant 95 : index
    %458 = memref.load %arg2[%c95] : memref<288xf32, #tpu.memory_space<smem>>
    %459 = vector.broadcast %458 : f32 to vector<8x128xf32>
    %460 = arith.mulf %459, %319 : vector<8x128xf32>
    %461 = arith.addf %457, %460 : vector<8x128xf32>
    %c98 = arith.constant 98 : index
    %462 = memref.load %arg2[%c98] : memref<288xf32, #tpu.memory_space<smem>>
    %463 = vector.broadcast %462 : f32 to vector<8x128xf32>
    %464 = arith.mulf %463, %320 : vector<8x128xf32>
    %465 = arith.addf %461, %464 : vector<8x128xf32>
    %c101 = arith.constant 101 : index
    %466 = memref.load %arg2[%c101] : memref<288xf32, #tpu.memory_space<smem>>
    %467 = vector.broadcast %466 : f32 to vector<8x128xf32>
    %468 = arith.mulf %467, %321 : vector<8x128xf32>
    %469 = arith.addf %465, %468 : vector<8x128xf32>
    %c104 = arith.constant 104 : index
    %470 = memref.load %arg2[%c104] : memref<288xf32, #tpu.memory_space<smem>>
    %471 = vector.broadcast %470 : f32 to vector<8x128xf32>
    %472 = arith.mulf %471, %322 : vector<8x128xf32>
    %473 = arith.addf %469, %472 : vector<8x128xf32>
    %c107 = arith.constant 107 : index
    %474 = memref.load %arg2[%c107] : memref<288xf32, #tpu.memory_space<smem>>
    %475 = vector.broadcast %474 : f32 to vector<8x128xf32>
    %476 = arith.addf %473, %475 : vector<8x128xf32>
    %477 = vector.broadcast %4 : vector<1x128xf32> to vector<8x128xf32>
    %478 = arith.mulf %476, %477 : vector<8x128xf32>
    %479 = arith.addf %374, %310 : vector<8x128xf32>
    %cst_37 = arith.constant 0.000000e+00 : f32
    %480 = vector.broadcast %cst_37 : f32 to vector<8x128xf32>
    %481 = arith.maximumf %479, %480 : vector<8x128xf32>
    %482 = arith.addf %426, %312 : vector<8x128xf32>
    %cst_38 = arith.constant 0.000000e+00 : f32
    %483 = vector.broadcast %cst_38 : f32 to vector<8x128xf32>
    %484 = arith.maximumf %482, %483 : vector<8x128xf32>
    %485 = arith.addf %478, %314 : vector<8x128xf32>
    %cst_39 = arith.constant 0.000000e+00 : f32
    %486 = vector.broadcast %cst_39 : f32 to vector<8x128xf32>
    %487 = arith.maximumf %485, %486 : vector<8x128xf32>
    %c2_i32 = arith.constant 2 : i32
    %488 = tpu.dynamic_rotate %481 by %c2_i32 dim 1 : vector<8x128xf32>, i32 -> vector<8x128xf32>
    %c2_i32_40 = arith.constant 2 : i32
    %489 = tpu.dynamic_rotate %484 by %c2_i32_40 dim 1 : vector<8x128xf32>, i32 -> vector<8x128xf32>
    %c2_i32_41 = arith.constant 2 : i32
    %490 = tpu.dynamic_rotate %487 by %c2_i32_41 dim 1 : vector<8x128xf32>, i32 -> vector<8x128xf32>
    %c126_i32 = arith.constant 126 : i32
    %491 = tpu.dynamic_rotate %481 by %c126_i32 dim 1 : vector<8x128xf32>, i32 -> vector<8x128xf32>
    %c126_i32_42 = arith.constant 126 : i32
    %492 = tpu.dynamic_rotate %484 by %c126_i32_42 dim 1 : vector<8x128xf32>, i32 -> vector<8x128xf32>
    %c126_i32_43 = arith.constant 126 : i32
    %493 = tpu.dynamic_rotate %487 by %c126_i32_43 dim 1 : vector<8x128xf32>, i32 -> vector<8x128xf32>
    %c108 = arith.constant 108 : index
    %494 = memref.load %arg2[%c108] : memref<288xf32, #tpu.memory_space<smem>>
    %495 = vector.broadcast %494 : f32 to vector<8x128xf32>
    %496 = arith.mulf %495, %488 : vector<8x128xf32>
    %c111 = arith.constant 111 : index
    %497 = memref.load %arg2[%c111] : memref<288xf32, #tpu.memory_space<smem>>
    %498 = vector.broadcast %497 : f32 to vector<8x128xf32>
    %499 = arith.mulf %498, %489 : vector<8x128xf32>
    %500 = arith.addf %496, %499 : vector<8x128xf32>
    %c114 = arith.constant 114 : index
    %501 = memref.load %arg2[%c114] : memref<288xf32, #tpu.memory_space<smem>>
    %502 = vector.broadcast %501 : f32 to vector<8x128xf32>
    %503 = arith.mulf %502, %490 : vector<8x128xf32>
    %504 = arith.addf %500, %503 : vector<8x128xf32>
    %c109 = arith.constant 109 : index
    %505 = memref.load %arg2[%c109] : memref<288xf32, #tpu.memory_space<smem>>
    %506 = vector.broadcast %505 : f32 to vector<8x128xf32>
    %507 = arith.mulf %506, %481 : vector<8x128xf32>
    %508 = arith.addf %504, %507 : vector<8x128xf32>
    %c112 = arith.constant 112 : index
    %509 = memref.load %arg2[%c112] : memref<288xf32, #tpu.memory_space<smem>>
    %510 = vector.broadcast %509 : f32 to vector<8x128xf32>
    %511 = arith.mulf %510, %484 : vector<8x128xf32>
    %512 = arith.addf %508, %511 : vector<8x128xf32>
    %c115 = arith.constant 115 : index
    %513 = memref.load %arg2[%c115] : memref<288xf32, #tpu.memory_space<smem>>
    %514 = vector.broadcast %513 : f32 to vector<8x128xf32>
    %515 = arith.mulf %514, %487 : vector<8x128xf32>
    %516 = arith.addf %512, %515 : vector<8x128xf32>
    %c110 = arith.constant 110 : index
    %517 = memref.load %arg2[%c110] : memref<288xf32, #tpu.memory_space<smem>>
    %518 = vector.broadcast %517 : f32 to vector<8x128xf32>
    %519 = arith.mulf %518, %491 : vector<8x128xf32>
    %520 = arith.addf %516, %519 : vector<8x128xf32>
    %c113 = arith.constant 113 : index
    %521 = memref.load %arg2[%c113] : memref<288xf32, #tpu.memory_space<smem>>
    %522 = vector.broadcast %521 : f32 to vector<8x128xf32>
    %523 = arith.mulf %522, %492 : vector<8x128xf32>
    %524 = arith.addf %520, %523 : vector<8x128xf32>
    %c116 = arith.constant 116 : index
    %525 = memref.load %arg2[%c116] : memref<288xf32, #tpu.memory_space<smem>>
    %526 = vector.broadcast %525 : f32 to vector<8x128xf32>
    %527 = arith.mulf %526, %493 : vector<8x128xf32>
    %528 = arith.addf %524, %527 : vector<8x128xf32>
    %c135 = arith.constant 135 : index
    %529 = memref.load %arg2[%c135] : memref<288xf32, #tpu.memory_space<smem>>
    %530 = vector.broadcast %529 : f32 to vector<8x128xf32>
    %531 = arith.addf %528, %530 : vector<8x128xf32>
    %532 = vector.broadcast %4 : vector<1x128xf32> to vector<8x128xf32>
    %533 = arith.mulf %531, %532 : vector<8x128xf32>
    %c117 = arith.constant 117 : index
    %534 = memref.load %arg2[%c117] : memref<288xf32, #tpu.memory_space<smem>>
    %535 = vector.broadcast %534 : f32 to vector<8x128xf32>
    %536 = arith.mulf %535, %488 : vector<8x128xf32>
    %c120 = arith.constant 120 : index
    %537 = memref.load %arg2[%c120] : memref<288xf32, #tpu.memory_space<smem>>
    %538 = vector.broadcast %537 : f32 to vector<8x128xf32>
    %539 = arith.mulf %538, %489 : vector<8x128xf32>
    %540 = arith.addf %536, %539 : vector<8x128xf32>
    %c123 = arith.constant 123 : index
    %541 = memref.load %arg2[%c123] : memref<288xf32, #tpu.memory_space<smem>>
    %542 = vector.broadcast %541 : f32 to vector<8x128xf32>
    %543 = arith.mulf %542, %490 : vector<8x128xf32>
    %544 = arith.addf %540, %543 : vector<8x128xf32>
    %c118 = arith.constant 118 : index
    %545 = memref.load %arg2[%c118] : memref<288xf32, #tpu.memory_space<smem>>
    %546 = vector.broadcast %545 : f32 to vector<8x128xf32>
    %547 = arith.mulf %546, %481 : vector<8x128xf32>
    %548 = arith.addf %544, %547 : vector<8x128xf32>
    %c121 = arith.constant 121 : index
    %549 = memref.load %arg2[%c121] : memref<288xf32, #tpu.memory_space<smem>>
    %550 = vector.broadcast %549 : f32 to vector<8x128xf32>
    %551 = arith.mulf %550, %484 : vector<8x128xf32>
    %552 = arith.addf %548, %551 : vector<8x128xf32>
    %c124 = arith.constant 124 : index
    %553 = memref.load %arg2[%c124] : memref<288xf32, #tpu.memory_space<smem>>
    %554 = vector.broadcast %553 : f32 to vector<8x128xf32>
    %555 = arith.mulf %554, %487 : vector<8x128xf32>
    %556 = arith.addf %552, %555 : vector<8x128xf32>
    %c119 = arith.constant 119 : index
    %557 = memref.load %arg2[%c119] : memref<288xf32, #tpu.memory_space<smem>>
    %558 = vector.broadcast %557 : f32 to vector<8x128xf32>
    %559 = arith.mulf %558, %491 : vector<8x128xf32>
    %560 = arith.addf %556, %559 : vector<8x128xf32>
    %c122 = arith.constant 122 : index
    %561 = memref.load %arg2[%c122] : memref<288xf32, #tpu.memory_space<smem>>
    %562 = vector.broadcast %561 : f32 to vector<8x128xf32>
    %563 = arith.mulf %562, %492 : vector<8x128xf32>
    %564 = arith.addf %560, %563 : vector<8x128xf32>
    %c125 = arith.constant 125 : index
    %565 = memref.load %arg2[%c125] : memref<288xf32, #tpu.memory_space<smem>>
    %566 = vector.broadcast %565 : f32 to vector<8x128xf32>
    %567 = arith.mulf %566, %493 : vector<8x128xf32>
    %568 = arith.addf %564, %567 : vector<8x128xf32>
    %c136 = arith.constant 136 : index
    %569 = memref.load %arg2[%c136] : memref<288xf32, #tpu.memory_space<smem>>
    %570 = vector.broadcast %569 : f32 to vector<8x128xf32>
    %571 = arith.addf %568, %570 : vector<8x128xf32>
    %572 = vector.broadcast %4 : vector<1x128xf32> to vector<8x128xf32>
    %573 = arith.mulf %571, %572 : vector<8x128xf32>
    %c126 = arith.constant 126 : index
    %574 = memref.load %arg2[%c126] : memref<288xf32, #tpu.memory_space<smem>>
    %575 = vector.broadcast %574 : f32 to vector<8x128xf32>
    %576 = arith.mulf %575, %488 : vector<8x128xf32>
    %c129 = arith.constant 129 : index
    %577 = memref.load %arg2[%c129] : memref<288xf32, #tpu.memory_space<smem>>
    %578 = vector.broadcast %577 : f32 to vector<8x128xf32>
    %579 = arith.mulf %578, %489 : vector<8x128xf32>
    %580 = arith.addf %576, %579 : vector<8x128xf32>
    %c132 = arith.constant 132 : index
    %581 = memref.load %arg2[%c132] : memref<288xf32, #tpu.memory_space<smem>>
    %582 = vector.broadcast %581 : f32 to vector<8x128xf32>
    %583 = arith.mulf %582, %490 : vector<8x128xf32>
    %584 = arith.addf %580, %583 : vector<8x128xf32>
    %c127 = arith.constant 127 : index
    %585 = memref.load %arg2[%c127] : memref<288xf32, #tpu.memory_space<smem>>
    %586 = vector.broadcast %585 : f32 to vector<8x128xf32>
    %587 = arith.mulf %586, %481 : vector<8x128xf32>
    %588 = arith.addf %584, %587 : vector<8x128xf32>
    %c130 = arith.constant 130 : index
    %589 = memref.load %arg2[%c130] : memref<288xf32, #tpu.memory_space<smem>>
    %590 = vector.broadcast %589 : f32 to vector<8x128xf32>
    %591 = arith.mulf %590, %484 : vector<8x128xf32>
    %592 = arith.addf %588, %591 : vector<8x128xf32>
    %c133 = arith.constant 133 : index
    %593 = memref.load %arg2[%c133] : memref<288xf32, #tpu.memory_space<smem>>
    %594 = vector.broadcast %593 : f32 to vector<8x128xf32>
    %595 = arith.mulf %594, %487 : vector<8x128xf32>
    %596 = arith.addf %592, %595 : vector<8x128xf32>
    %c128 = arith.constant 128 : index
    %597 = memref.load %arg2[%c128] : memref<288xf32, #tpu.memory_space<smem>>
    %598 = vector.broadcast %597 : f32 to vector<8x128xf32>
    %599 = arith.mulf %598, %491 : vector<8x128xf32>
    %600 = arith.addf %596, %599 : vector<8x128xf32>
    %c131 = arith.constant 131 : index
    %601 = memref.load %arg2[%c131] : memref<288xf32, #tpu.memory_space<smem>>
    %602 = vector.broadcast %601 : f32 to vector<8x128xf32>
    %603 = arith.mulf %602, %492 : vector<8x128xf32>
    %604 = arith.addf %600, %603 : vector<8x128xf32>
    %c134 = arith.constant 134 : index
    %605 = memref.load %arg2[%c134] : memref<288xf32, #tpu.memory_space<smem>>
    %606 = vector.broadcast %605 : f32 to vector<8x128xf32>
    %607 = arith.mulf %606, %493 : vector<8x128xf32>
    %608 = arith.addf %604, %607 : vector<8x128xf32>
    %c137 = arith.constant 137 : index
    %609 = memref.load %arg2[%c137] : memref<288xf32, #tpu.memory_space<smem>>
    %610 = vector.broadcast %609 : f32 to vector<8x128xf32>
    %611 = arith.addf %608, %610 : vector<8x128xf32>
    %612 = vector.broadcast %4 : vector<1x128xf32> to vector<8x128xf32>
    %613 = arith.mulf %611, %612 : vector<8x128xf32>
    %cst_44 = arith.constant 0.000000e+00 : f32
    %614 = vector.broadcast %cst_44 : f32 to vector<8x128xf32>
    %615 = arith.maximumf %533, %614 : vector<8x128xf32>
    %cst_45 = arith.constant 0.000000e+00 : f32
    %616 = vector.broadcast %cst_45 : f32 to vector<8x128xf32>
    %617 = arith.maximumf %573, %616 : vector<8x128xf32>
    %cst_46 = arith.constant 0.000000e+00 : f32
    %618 = vector.broadcast %cst_46 : f32 to vector<8x128xf32>
    %619 = arith.maximumf %613, %618 : vector<8x128xf32>
    %c1_i32_47 = arith.constant 1 : i32
    %620 = tpu.dynamic_rotate %615 by %c1_i32_47 dim 1 : vector<8x128xf32>, i32 -> vector<8x128xf32>
    %c1_i32_48 = arith.constant 1 : i32
    %621 = tpu.dynamic_rotate %617 by %c1_i32_48 dim 1 : vector<8x128xf32>, i32 -> vector<8x128xf32>
    %c1_i32_49 = arith.constant 1 : i32
    %622 = tpu.dynamic_rotate %619 by %c1_i32_49 dim 1 : vector<8x128xf32>, i32 -> vector<8x128xf32>
    %c127_i32_50 = arith.constant 127 : i32
    %623 = tpu.dynamic_rotate %615 by %c127_i32_50 dim 1 : vector<8x128xf32>, i32 -> vector<8x128xf32>
    %c127_i32_51 = arith.constant 127 : i32
    %624 = tpu.dynamic_rotate %617 by %c127_i32_51 dim 1 : vector<8x128xf32>, i32 -> vector<8x128xf32>
    %c127_i32_52 = arith.constant 127 : i32
    %625 = tpu.dynamic_rotate %619 by %c127_i32_52 dim 1 : vector<8x128xf32>, i32 -> vector<8x128xf32>
    %c138 = arith.constant 138 : index
    %626 = memref.load %arg2[%c138] : memref<288xf32, #tpu.memory_space<smem>>
    %627 = vector.broadcast %626 : f32 to vector<8x128xf32>
    %628 = arith.mulf %627, %620 : vector<8x128xf32>
    %c141 = arith.constant 141 : index
    %629 = memref.load %arg2[%c141] : memref<288xf32, #tpu.memory_space<smem>>
    %630 = vector.broadcast %629 : f32 to vector<8x128xf32>
    %631 = arith.mulf %630, %621 : vector<8x128xf32>
    %632 = arith.addf %628, %631 : vector<8x128xf32>
    %c144 = arith.constant 144 : index
    %633 = memref.load %arg2[%c144] : memref<288xf32, #tpu.memory_space<smem>>
    %634 = vector.broadcast %633 : f32 to vector<8x128xf32>
    %635 = arith.mulf %634, %622 : vector<8x128xf32>
    %636 = arith.addf %632, %635 : vector<8x128xf32>
    %c139 = arith.constant 139 : index
    %637 = memref.load %arg2[%c139] : memref<288xf32, #tpu.memory_space<smem>>
    %638 = vector.broadcast %637 : f32 to vector<8x128xf32>
    %639 = arith.mulf %638, %615 : vector<8x128xf32>
    %640 = arith.addf %636, %639 : vector<8x128xf32>
    %c142 = arith.constant 142 : index
    %641 = memref.load %arg2[%c142] : memref<288xf32, #tpu.memory_space<smem>>
    %642 = vector.broadcast %641 : f32 to vector<8x128xf32>
    %643 = arith.mulf %642, %617 : vector<8x128xf32>
    %644 = arith.addf %640, %643 : vector<8x128xf32>
    %c145 = arith.constant 145 : index
    %645 = memref.load %arg2[%c145] : memref<288xf32, #tpu.memory_space<smem>>
    %646 = vector.broadcast %645 : f32 to vector<8x128xf32>
    %647 = arith.mulf %646, %619 : vector<8x128xf32>
    %648 = arith.addf %644, %647 : vector<8x128xf32>
    %c140 = arith.constant 140 : index
    %649 = memref.load %arg2[%c140] : memref<288xf32, #tpu.memory_space<smem>>
    %650 = vector.broadcast %649 : f32 to vector<8x128xf32>
    %651 = arith.mulf %650, %623 : vector<8x128xf32>
    %652 = arith.addf %648, %651 : vector<8x128xf32>
    %c143 = arith.constant 143 : index
    %653 = memref.load %arg2[%c143] : memref<288xf32, #tpu.memory_space<smem>>
    %654 = vector.broadcast %653 : f32 to vector<8x128xf32>
    %655 = arith.mulf %654, %624 : vector<8x128xf32>
    %656 = arith.addf %652, %655 : vector<8x128xf32>
    %c146 = arith.constant 146 : index
    %657 = memref.load %arg2[%c146] : memref<288xf32, #tpu.memory_space<smem>>
    %658 = vector.broadcast %657 : f32 to vector<8x128xf32>
    %659 = arith.mulf %658, %625 : vector<8x128xf32>
    %660 = arith.addf %656, %659 : vector<8x128xf32>
    %c165 = arith.constant 165 : index
    %661 = memref.load %arg2[%c165] : memref<288xf32, #tpu.memory_space<smem>>
    %662 = vector.broadcast %661 : f32 to vector<8x128xf32>
    %663 = arith.addf %660, %662 : vector<8x128xf32>
    %664 = vector.broadcast %4 : vector<1x128xf32> to vector<8x128xf32>
    %665 = arith.mulf %663, %664 : vector<8x128xf32>
    %c147 = arith.constant 147 : index
    %666 = memref.load %arg2[%c147] : memref<288xf32, #tpu.memory_space<smem>>
    %667 = vector.broadcast %666 : f32 to vector<8x128xf32>
    %668 = arith.mulf %667, %620 : vector<8x128xf32>
    %c150 = arith.constant 150 : index
    %669 = memref.load %arg2[%c150] : memref<288xf32, #tpu.memory_space<smem>>
    %670 = vector.broadcast %669 : f32 to vector<8x128xf32>
    %671 = arith.mulf %670, %621 : vector<8x128xf32>
    %672 = arith.addf %668, %671 : vector<8x128xf32>
    %c153 = arith.constant 153 : index
    %673 = memref.load %arg2[%c153] : memref<288xf32, #tpu.memory_space<smem>>
    %674 = vector.broadcast %673 : f32 to vector<8x128xf32>
    %675 = arith.mulf %674, %622 : vector<8x128xf32>
    %676 = arith.addf %672, %675 : vector<8x128xf32>
    %c148 = arith.constant 148 : index
    %677 = memref.load %arg2[%c148] : memref<288xf32, #tpu.memory_space<smem>>
    %678 = vector.broadcast %677 : f32 to vector<8x128xf32>
    %679 = arith.mulf %678, %615 : vector<8x128xf32>
    %680 = arith.addf %676, %679 : vector<8x128xf32>
    %c151 = arith.constant 151 : index
    %681 = memref.load %arg2[%c151] : memref<288xf32, #tpu.memory_space<smem>>
    %682 = vector.broadcast %681 : f32 to vector<8x128xf32>
    %683 = arith.mulf %682, %617 : vector<8x128xf32>
    %684 = arith.addf %680, %683 : vector<8x128xf32>
    %c154 = arith.constant 154 : index
    %685 = memref.load %arg2[%c154] : memref<288xf32, #tpu.memory_space<smem>>
    %686 = vector.broadcast %685 : f32 to vector<8x128xf32>
    %687 = arith.mulf %686, %619 : vector<8x128xf32>
    %688 = arith.addf %684, %687 : vector<8x128xf32>
    %c149 = arith.constant 149 : index
    %689 = memref.load %arg2[%c149] : memref<288xf32, #tpu.memory_space<smem>>
    %690 = vector.broadcast %689 : f32 to vector<8x128xf32>
    %691 = arith.mulf %690, %623 : vector<8x128xf32>
    %692 = arith.addf %688, %691 : vector<8x128xf32>
    %c152 = arith.constant 152 : index
    %693 = memref.load %arg2[%c152] : memref<288xf32, #tpu.memory_space<smem>>
    %694 = vector.broadcast %693 : f32 to vector<8x128xf32>
    %695 = arith.mulf %694, %624 : vector<8x128xf32>
    %696 = arith.addf %692, %695 : vector<8x128xf32>
    %c155 = arith.constant 155 : index
    %697 = memref.load %arg2[%c155] : memref<288xf32, #tpu.memory_space<smem>>
    %698 = vector.broadcast %697 : f32 to vector<8x128xf32>
    %699 = arith.mulf %698, %625 : vector<8x128xf32>
    %700 = arith.addf %696, %699 : vector<8x128xf32>
    %c166 = arith.constant 166 : index
    %701 = memref.load %arg2[%c166] : memref<288xf32, #tpu.memory_space<smem>>
    %702 = vector.broadcast %701 : f32 to vector<8x128xf32>
    %703 = arith.addf %700, %702 : vector<8x128xf32>
    %704 = vector.broadcast %4 : vector<1x128xf32> to vector<8x128xf32>
    %705 = arith.mulf %703, %704 : vector<8x128xf32>
    %c156 = arith.constant 156 : index
    %706 = memref.load %arg2[%c156] : memref<288xf32, #tpu.memory_space<smem>>
    %707 = vector.broadcast %706 : f32 to vector<8x128xf32>
    %708 = arith.mulf %707, %620 : vector<8x128xf32>
    %c159 = arith.constant 159 : index
    %709 = memref.load %arg2[%c159] : memref<288xf32, #tpu.memory_space<smem>>
    %710 = vector.broadcast %709 : f32 to vector<8x128xf32>
    %711 = arith.mulf %710, %621 : vector<8x128xf32>
    %712 = arith.addf %708, %711 : vector<8x128xf32>
    %c162 = arith.constant 162 : index
    %713 = memref.load %arg2[%c162] : memref<288xf32, #tpu.memory_space<smem>>
    %714 = vector.broadcast %713 : f32 to vector<8x128xf32>
    %715 = arith.mulf %714, %622 : vector<8x128xf32>
    %716 = arith.addf %712, %715 : vector<8x128xf32>
    %c157 = arith.constant 157 : index
    %717 = memref.load %arg2[%c157] : memref<288xf32, #tpu.memory_space<smem>>
    %718 = vector.broadcast %717 : f32 to vector<8x128xf32>
    %719 = arith.mulf %718, %615 : vector<8x128xf32>
    %720 = arith.addf %716, %719 : vector<8x128xf32>
    %c160 = arith.constant 160 : index
    %721 = memref.load %arg2[%c160] : memref<288xf32, #tpu.memory_space<smem>>
    %722 = vector.broadcast %721 : f32 to vector<8x128xf32>
    %723 = arith.mulf %722, %617 : vector<8x128xf32>
    %724 = arith.addf %720, %723 : vector<8x128xf32>
    %c163 = arith.constant 163 : index
    %725 = memref.load %arg2[%c163] : memref<288xf32, #tpu.memory_space<smem>>
    %726 = vector.broadcast %725 : f32 to vector<8x128xf32>
    %727 = arith.mulf %726, %619 : vector<8x128xf32>
    %728 = arith.addf %724, %727 : vector<8x128xf32>
    %c158 = arith.constant 158 : index
    %729 = memref.load %arg2[%c158] : memref<288xf32, #tpu.memory_space<smem>>
    %730 = vector.broadcast %729 : f32 to vector<8x128xf32>
    %731 = arith.mulf %730, %623 : vector<8x128xf32>
    %732 = arith.addf %728, %731 : vector<8x128xf32>
    %c161 = arith.constant 161 : index
    %733 = memref.load %arg2[%c161] : memref<288xf32, #tpu.memory_space<smem>>
    %734 = vector.broadcast %733 : f32 to vector<8x128xf32>
    %735 = arith.mulf %734, %624 : vector<8x128xf32>
    %736 = arith.addf %732, %735 : vector<8x128xf32>
    %c164 = arith.constant 164 : index
    %737 = memref.load %arg2[%c164] : memref<288xf32, #tpu.memory_space<smem>>
    %738 = vector.broadcast %737 : f32 to vector<8x128xf32>
    %739 = arith.mulf %738, %625 : vector<8x128xf32>
    %740 = arith.addf %736, %739 : vector<8x128xf32>
    %c167 = arith.constant 167 : index
    %741 = memref.load %arg2[%c167] : memref<288xf32, #tpu.memory_space<smem>>
    %742 = vector.broadcast %741 : f32 to vector<8x128xf32>
    %743 = arith.addf %740, %742 : vector<8x128xf32>
    %744 = vector.broadcast %4 : vector<1x128xf32> to vector<8x128xf32>
    %745 = arith.mulf %743, %744 : vector<8x128xf32>
    %cst_53 = arith.constant 0.000000e+00 : f32
    %746 = vector.broadcast %cst_53 : f32 to vector<8x128xf32>
    %747 = arith.maximumf %665, %746 : vector<8x128xf32>
    %cst_54 = arith.constant 0.000000e+00 : f32
    %748 = vector.broadcast %cst_54 : f32 to vector<8x128xf32>
    %749 = arith.maximumf %705, %748 : vector<8x128xf32>
    %cst_55 = arith.constant 0.000000e+00 : f32
    %750 = vector.broadcast %cst_55 : f32 to vector<8x128xf32>
    %751 = arith.maximumf %745, %750 : vector<8x128xf32>
    %752 = arith.addf %481, %747 : vector<8x128xf32>
    %cst_56 = arith.constant 0.000000e+00 : f32
    %753 = vector.broadcast %cst_56 : f32 to vector<8x128xf32>
    %754 = arith.maximumf %752, %753 : vector<8x128xf32>
    %755 = arith.addf %484, %749 : vector<8x128xf32>
    %cst_57 = arith.constant 0.000000e+00 : f32
    %756 = vector.broadcast %cst_57 : f32 to vector<8x128xf32>
    %757 = arith.maximumf %755, %756 : vector<8x128xf32>
    %758 = arith.addf %487, %751 : vector<8x128xf32>
    %cst_58 = arith.constant 0.000000e+00 : f32
    %759 = vector.broadcast %cst_58 : f32 to vector<8x128xf32>
    %760 = arith.maximumf %758, %759 : vector<8x128xf32>
    %c4_i32 = arith.constant 4 : i32
    %761 = tpu.dynamic_rotate %754 by %c4_i32 dim 1 : vector<8x128xf32>, i32 -> vector<8x128xf32>
    %c4_i32_59 = arith.constant 4 : i32
    %762 = tpu.dynamic_rotate %757 by %c4_i32_59 dim 1 : vector<8x128xf32>, i32 -> vector<8x128xf32>
    %c4_i32_60 = arith.constant 4 : i32
    %763 = tpu.dynamic_rotate %760 by %c4_i32_60 dim 1 : vector<8x128xf32>, i32 -> vector<8x128xf32>
    %c124_i32 = arith.constant 124 : i32
    %764 = tpu.dynamic_rotate %754 by %c124_i32 dim 1 : vector<8x128xf32>, i32 -> vector<8x128xf32>
    %c124_i32_61 = arith.constant 124 : i32
    %765 = tpu.dynamic_rotate %757 by %c124_i32_61 dim 1 : vector<8x128xf32>, i32 -> vector<8x128xf32>
    %c124_i32_62 = arith.constant 124 : i32
    %766 = tpu.dynamic_rotate %760 by %c124_i32_62 dim 1 : vector<8x128xf32>, i32 -> vector<8x128xf32>
    %c168 = arith.constant 168 : index
    %767 = memref.load %arg2[%c168] : memref<288xf32, #tpu.memory_space<smem>>
    %768 = vector.broadcast %767 : f32 to vector<8x128xf32>
    %769 = arith.mulf %768, %761 : vector<8x128xf32>
    %c171 = arith.constant 171 : index
    %770 = memref.load %arg2[%c171] : memref<288xf32, #tpu.memory_space<smem>>
    %771 = vector.broadcast %770 : f32 to vector<8x128xf32>
    %772 = arith.mulf %771, %762 : vector<8x128xf32>
    %773 = arith.addf %769, %772 : vector<8x128xf32>
    %c174 = arith.constant 174 : index
    %774 = memref.load %arg2[%c174] : memref<288xf32, #tpu.memory_space<smem>>
    %775 = vector.broadcast %774 : f32 to vector<8x128xf32>
    %776 = arith.mulf %775, %763 : vector<8x128xf32>
    %777 = arith.addf %773, %776 : vector<8x128xf32>
    %c169 = arith.constant 169 : index
    %778 = memref.load %arg2[%c169] : memref<288xf32, #tpu.memory_space<smem>>
    %779 = vector.broadcast %778 : f32 to vector<8x128xf32>
    %780 = arith.mulf %779, %754 : vector<8x128xf32>
    %781 = arith.addf %777, %780 : vector<8x128xf32>
    %c172 = arith.constant 172 : index
    %782 = memref.load %arg2[%c172] : memref<288xf32, #tpu.memory_space<smem>>
    %783 = vector.broadcast %782 : f32 to vector<8x128xf32>
    %784 = arith.mulf %783, %757 : vector<8x128xf32>
    %785 = arith.addf %781, %784 : vector<8x128xf32>
    %c175 = arith.constant 175 : index
    %786 = memref.load %arg2[%c175] : memref<288xf32, #tpu.memory_space<smem>>
    %787 = vector.broadcast %786 : f32 to vector<8x128xf32>
    %788 = arith.mulf %787, %760 : vector<8x128xf32>
    %789 = arith.addf %785, %788 : vector<8x128xf32>
    %c170 = arith.constant 170 : index
    %790 = memref.load %arg2[%c170] : memref<288xf32, #tpu.memory_space<smem>>
    %791 = vector.broadcast %790 : f32 to vector<8x128xf32>
    %792 = arith.mulf %791, %764 : vector<8x128xf32>
    %793 = arith.addf %789, %792 : vector<8x128xf32>
    %c173 = arith.constant 173 : index
    %794 = memref.load %arg2[%c173] : memref<288xf32, #tpu.memory_space<smem>>
    %795 = vector.broadcast %794 : f32 to vector<8x128xf32>
    %796 = arith.mulf %795, %765 : vector<8x128xf32>
    %797 = arith.addf %793, %796 : vector<8x128xf32>
    %c176 = arith.constant 176 : index
    %798 = memref.load %arg2[%c176] : memref<288xf32, #tpu.memory_space<smem>>
    %799 = vector.broadcast %798 : f32 to vector<8x128xf32>
    %800 = arith.mulf %799, %766 : vector<8x128xf32>
    %801 = arith.addf %797, %800 : vector<8x128xf32>
    %c195 = arith.constant 195 : index
    %802 = memref.load %arg2[%c195] : memref<288xf32, #tpu.memory_space<smem>>
    %803 = vector.broadcast %802 : f32 to vector<8x128xf32>
    %804 = arith.addf %801, %803 : vector<8x128xf32>
    %805 = vector.broadcast %4 : vector<1x128xf32> to vector<8x128xf32>
    %806 = arith.mulf %804, %805 : vector<8x128xf32>
    %c177 = arith.constant 177 : index
    %807 = memref.load %arg2[%c177] : memref<288xf32, #tpu.memory_space<smem>>
    %808 = vector.broadcast %807 : f32 to vector<8x128xf32>
    %809 = arith.mulf %808, %761 : vector<8x128xf32>
    %c180 = arith.constant 180 : index
    %810 = memref.load %arg2[%c180] : memref<288xf32, #tpu.memory_space<smem>>
    %811 = vector.broadcast %810 : f32 to vector<8x128xf32>
    %812 = arith.mulf %811, %762 : vector<8x128xf32>
    %813 = arith.addf %809, %812 : vector<8x128xf32>
    %c183 = arith.constant 183 : index
    %814 = memref.load %arg2[%c183] : memref<288xf32, #tpu.memory_space<smem>>
    %815 = vector.broadcast %814 : f32 to vector<8x128xf32>
    %816 = arith.mulf %815, %763 : vector<8x128xf32>
    %817 = arith.addf %813, %816 : vector<8x128xf32>
    %c178 = arith.constant 178 : index
    %818 = memref.load %arg2[%c178] : memref<288xf32, #tpu.memory_space<smem>>
    %819 = vector.broadcast %818 : f32 to vector<8x128xf32>
    %820 = arith.mulf %819, %754 : vector<8x128xf32>
    %821 = arith.addf %817, %820 : vector<8x128xf32>
    %c181 = arith.constant 181 : index
    %822 = memref.load %arg2[%c181] : memref<288xf32, #tpu.memory_space<smem>>
    %823 = vector.broadcast %822 : f32 to vector<8x128xf32>
    %824 = arith.mulf %823, %757 : vector<8x128xf32>
    %825 = arith.addf %821, %824 : vector<8x128xf32>
    %c184 = arith.constant 184 : index
    %826 = memref.load %arg2[%c184] : memref<288xf32, #tpu.memory_space<smem>>
    %827 = vector.broadcast %826 : f32 to vector<8x128xf32>
    %828 = arith.mulf %827, %760 : vector<8x128xf32>
    %829 = arith.addf %825, %828 : vector<8x128xf32>
    %c179 = arith.constant 179 : index
    %830 = memref.load %arg2[%c179] : memref<288xf32, #tpu.memory_space<smem>>
    %831 = vector.broadcast %830 : f32 to vector<8x128xf32>
    %832 = arith.mulf %831, %764 : vector<8x128xf32>
    %833 = arith.addf %829, %832 : vector<8x128xf32>
    %c182 = arith.constant 182 : index
    %834 = memref.load %arg2[%c182] : memref<288xf32, #tpu.memory_space<smem>>
    %835 = vector.broadcast %834 : f32 to vector<8x128xf32>
    %836 = arith.mulf %835, %765 : vector<8x128xf32>
    %837 = arith.addf %833, %836 : vector<8x128xf32>
    %c185 = arith.constant 185 : index
    %838 = memref.load %arg2[%c185] : memref<288xf32, #tpu.memory_space<smem>>
    %839 = vector.broadcast %838 : f32 to vector<8x128xf32>
    %840 = arith.mulf %839, %766 : vector<8x128xf32>
    %841 = arith.addf %837, %840 : vector<8x128xf32>
    %c196 = arith.constant 196 : index
    %842 = memref.load %arg2[%c196] : memref<288xf32, #tpu.memory_space<smem>>
    %843 = vector.broadcast %842 : f32 to vector<8x128xf32>
    %844 = arith.addf %841, %843 : vector<8x128xf32>
    %845 = vector.broadcast %4 : vector<1x128xf32> to vector<8x128xf32>
    %846 = arith.mulf %844, %845 : vector<8x128xf32>
    %c186 = arith.constant 186 : index
    %847 = memref.load %arg2[%c186] : memref<288xf32, #tpu.memory_space<smem>>
    %848 = vector.broadcast %847 : f32 to vector<8x128xf32>
    %849 = arith.mulf %848, %761 : vector<8x128xf32>
    %c189 = arith.constant 189 : index
    %850 = memref.load %arg2[%c189] : memref<288xf32, #tpu.memory_space<smem>>
    %851 = vector.broadcast %850 : f32 to vector<8x128xf32>
    %852 = arith.mulf %851, %762 : vector<8x128xf32>
    %853 = arith.addf %849, %852 : vector<8x128xf32>
    %c192 = arith.constant 192 : index
    %854 = memref.load %arg2[%c192] : memref<288xf32, #tpu.memory_space<smem>>
    %855 = vector.broadcast %854 : f32 to vector<8x128xf32>
    %856 = arith.mulf %855, %763 : vector<8x128xf32>
    %857 = arith.addf %853, %856 : vector<8x128xf32>
    %c187 = arith.constant 187 : index
    %858 = memref.load %arg2[%c187] : memref<288xf32, #tpu.memory_space<smem>>
    %859 = vector.broadcast %858 : f32 to vector<8x128xf32>
    %860 = arith.mulf %859, %754 : vector<8x128xf32>
    %861 = arith.addf %857, %860 : vector<8x128xf32>
    %c190 = arith.constant 190 : index
    %862 = memref.load %arg2[%c190] : memref<288xf32, #tpu.memory_space<smem>>
    %863 = vector.broadcast %862 : f32 to vector<8x128xf32>
    %864 = arith.mulf %863, %757 : vector<8x128xf32>
    %865 = arith.addf %861, %864 : vector<8x128xf32>
    %c193 = arith.constant 193 : index
    %866 = memref.load %arg2[%c193] : memref<288xf32, #tpu.memory_space<smem>>
    %867 = vector.broadcast %866 : f32 to vector<8x128xf32>
    %868 = arith.mulf %867, %760 : vector<8x128xf32>
    %869 = arith.addf %865, %868 : vector<8x128xf32>
    %c188 = arith.constant 188 : index
    %870 = memref.load %arg2[%c188] : memref<288xf32, #tpu.memory_space<smem>>
    %871 = vector.broadcast %870 : f32 to vector<8x128xf32>
    %872 = arith.mulf %871, %764 : vector<8x128xf32>
    %873 = arith.addf %869, %872 : vector<8x128xf32>
    %c191 = arith.constant 191 : index
    %874 = memref.load %arg2[%c191] : memref<288xf32, #tpu.memory_space<smem>>
    %875 = vector.broadcast %874 : f32 to vector<8x128xf32>
    %876 = arith.mulf %875, %765 : vector<8x128xf32>
    %877 = arith.addf %873, %876 : vector<8x128xf32>
    %c194 = arith.constant 194 : index
    %878 = memref.load %arg2[%c194] : memref<288xf32, #tpu.memory_space<smem>>
    %879 = vector.broadcast %878 : f32 to vector<8x128xf32>
    %880 = arith.mulf %879, %766 : vector<8x128xf32>
    %881 = arith.addf %877, %880 : vector<8x128xf32>
    %c197 = arith.constant 197 : index
    %882 = memref.load %arg2[%c197] : memref<288xf32, #tpu.memory_space<smem>>
    %883 = vector.broadcast %882 : f32 to vector<8x128xf32>
    %884 = arith.addf %881, %883 : vector<8x128xf32>
    %885 = vector.broadcast %4 : vector<1x128xf32> to vector<8x128xf32>
    %886 = arith.mulf %884, %885 : vector<8x128xf32>
    %cst_63 = arith.constant 0.000000e+00 : f32
    %887 = vector.broadcast %cst_63 : f32 to vector<8x128xf32>
    %888 = arith.maximumf %806, %887 : vector<8x128xf32>
    %cst_64 = arith.constant 0.000000e+00 : f32
    %889 = vector.broadcast %cst_64 : f32 to vector<8x128xf32>
    %890 = arith.maximumf %846, %889 : vector<8x128xf32>
    %cst_65 = arith.constant 0.000000e+00 : f32
    %891 = vector.broadcast %cst_65 : f32 to vector<8x128xf32>
    %892 = arith.maximumf %886, %891 : vector<8x128xf32>
    %c1_i32_66 = arith.constant 1 : i32
    %893 = tpu.dynamic_rotate %888 by %c1_i32_66 dim 1 : vector<8x128xf32>, i32 -> vector<8x128xf32>
    %c1_i32_67 = arith.constant 1 : i32
    %894 = tpu.dynamic_rotate %890 by %c1_i32_67 dim 1 : vector<8x128xf32>, i32 -> vector<8x128xf32>
    %c1_i32_68 = arith.constant 1 : i32
    %895 = tpu.dynamic_rotate %892 by %c1_i32_68 dim 1 : vector<8x128xf32>, i32 -> vector<8x128xf32>
    %c127_i32_69 = arith.constant 127 : i32
    %896 = tpu.dynamic_rotate %888 by %c127_i32_69 dim 1 : vector<8x128xf32>, i32 -> vector<8x128xf32>
    %c127_i32_70 = arith.constant 127 : i32
    %897 = tpu.dynamic_rotate %890 by %c127_i32_70 dim 1 : vector<8x128xf32>, i32 -> vector<8x128xf32>
    %c127_i32_71 = arith.constant 127 : i32
    %898 = tpu.dynamic_rotate %892 by %c127_i32_71 dim 1 : vector<8x128xf32>, i32 -> vector<8x128xf32>
    %c198 = arith.constant 198 : index
    %899 = memref.load %arg2[%c198] : memref<288xf32, #tpu.memory_space<smem>>
    %900 = vector.broadcast %899 : f32 to vector<8x128xf32>
    %901 = arith.mulf %900, %893 : vector<8x128xf32>
    %c201 = arith.constant 201 : index
    %902 = memref.load %arg2[%c201] : memref<288xf32, #tpu.memory_space<smem>>
    %903 = vector.broadcast %902 : f32 to vector<8x128xf32>
    %904 = arith.mulf %903, %894 : vector<8x128xf32>
    %905 = arith.addf %901, %904 : vector<8x128xf32>
    %c204 = arith.constant 204 : index
    %906 = memref.load %arg2[%c204] : memref<288xf32, #tpu.memory_space<smem>>
    %907 = vector.broadcast %906 : f32 to vector<8x128xf32>
    %908 = arith.mulf %907, %895 : vector<8x128xf32>
    %909 = arith.addf %905, %908 : vector<8x128xf32>
    %c199 = arith.constant 199 : index
    %910 = memref.load %arg2[%c199] : memref<288xf32, #tpu.memory_space<smem>>
    %911 = vector.broadcast %910 : f32 to vector<8x128xf32>
    %912 = arith.mulf %911, %888 : vector<8x128xf32>
    %913 = arith.addf %909, %912 : vector<8x128xf32>
    %c202 = arith.constant 202 : index
    %914 = memref.load %arg2[%c202] : memref<288xf32, #tpu.memory_space<smem>>
    %915 = vector.broadcast %914 : f32 to vector<8x128xf32>
    %916 = arith.mulf %915, %890 : vector<8x128xf32>
    %917 = arith.addf %913, %916 : vector<8x128xf32>
    %c205 = arith.constant 205 : index
    %918 = memref.load %arg2[%c205] : memref<288xf32, #tpu.memory_space<smem>>
    %919 = vector.broadcast %918 : f32 to vector<8x128xf32>
    %920 = arith.mulf %919, %892 : vector<8x128xf32>
    %921 = arith.addf %917, %920 : vector<8x128xf32>
    %c200 = arith.constant 200 : index
    %922 = memref.load %arg2[%c200] : memref<288xf32, #tpu.memory_space<smem>>
    %923 = vector.broadcast %922 : f32 to vector<8x128xf32>
    %924 = arith.mulf %923, %896 : vector<8x128xf32>
    %925 = arith.addf %921, %924 : vector<8x128xf32>
    %c203 = arith.constant 203 : index
    %926 = memref.load %arg2[%c203] : memref<288xf32, #tpu.memory_space<smem>>
    %927 = vector.broadcast %926 : f32 to vector<8x128xf32>
    %928 = arith.mulf %927, %897 : vector<8x128xf32>
    %929 = arith.addf %925, %928 : vector<8x128xf32>
    %c206 = arith.constant 206 : index
    %930 = memref.load %arg2[%c206] : memref<288xf32, #tpu.memory_space<smem>>
    %931 = vector.broadcast %930 : f32 to vector<8x128xf32>
    %932 = arith.mulf %931, %898 : vector<8x128xf32>
    %933 = arith.addf %929, %932 : vector<8x128xf32>
    %c225 = arith.constant 225 : index
    %934 = memref.load %arg2[%c225] : memref<288xf32, #tpu.memory_space<smem>>
    %935 = vector.broadcast %934 : f32 to vector<8x128xf32>
    %936 = arith.addf %933, %935 : vector<8x128xf32>
    %937 = vector.broadcast %4 : vector<1x128xf32> to vector<8x128xf32>
    %938 = arith.mulf %936, %937 : vector<8x128xf32>
    %c207 = arith.constant 207 : index
    %939 = memref.load %arg2[%c207] : memref<288xf32, #tpu.memory_space<smem>>
    %940 = vector.broadcast %939 : f32 to vector<8x128xf32>
    %941 = arith.mulf %940, %893 : vector<8x128xf32>
    %c210 = arith.constant 210 : index
    %942 = memref.load %arg2[%c210] : memref<288xf32, #tpu.memory_space<smem>>
    %943 = vector.broadcast %942 : f32 to vector<8x128xf32>
    %944 = arith.mulf %943, %894 : vector<8x128xf32>
    %945 = arith.addf %941, %944 : vector<8x128xf32>
    %c213 = arith.constant 213 : index
    %946 = memref.load %arg2[%c213] : memref<288xf32, #tpu.memory_space<smem>>
    %947 = vector.broadcast %946 : f32 to vector<8x128xf32>
    %948 = arith.mulf %947, %895 : vector<8x128xf32>
    %949 = arith.addf %945, %948 : vector<8x128xf32>
    %c208 = arith.constant 208 : index
    %950 = memref.load %arg2[%c208] : memref<288xf32, #tpu.memory_space<smem>>
    %951 = vector.broadcast %950 : f32 to vector<8x128xf32>
    %952 = arith.mulf %951, %888 : vector<8x128xf32>
    %953 = arith.addf %949, %952 : vector<8x128xf32>
    %c211 = arith.constant 211 : index
    %954 = memref.load %arg2[%c211] : memref<288xf32, #tpu.memory_space<smem>>
    %955 = vector.broadcast %954 : f32 to vector<8x128xf32>
    %956 = arith.mulf %955, %890 : vector<8x128xf32>
    %957 = arith.addf %953, %956 : vector<8x128xf32>
    %c214 = arith.constant 214 : index
    %958 = memref.load %arg2[%c214] : memref<288xf32, #tpu.memory_space<smem>>
    %959 = vector.broadcast %958 : f32 to vector<8x128xf32>
    %960 = arith.mulf %959, %892 : vector<8x128xf32>
    %961 = arith.addf %957, %960 : vector<8x128xf32>
    %c209 = arith.constant 209 : index
    %962 = memref.load %arg2[%c209] : memref<288xf32, #tpu.memory_space<smem>>
    %963 = vector.broadcast %962 : f32 to vector<8x128xf32>
    %964 = arith.mulf %963, %896 : vector<8x128xf32>
    %965 = arith.addf %961, %964 : vector<8x128xf32>
    %c212 = arith.constant 212 : index
    %966 = memref.load %arg2[%c212] : memref<288xf32, #tpu.memory_space<smem>>
    %967 = vector.broadcast %966 : f32 to vector<8x128xf32>
    %968 = arith.mulf %967, %897 : vector<8x128xf32>
    %969 = arith.addf %965, %968 : vector<8x128xf32>
    %c215 = arith.constant 215 : index
    %970 = memref.load %arg2[%c215] : memref<288xf32, #tpu.memory_space<smem>>
    %971 = vector.broadcast %970 : f32 to vector<8x128xf32>
    %972 = arith.mulf %971, %898 : vector<8x128xf32>
    %973 = arith.addf %969, %972 : vector<8x128xf32>
    %c226 = arith.constant 226 : index
    %974 = memref.load %arg2[%c226] : memref<288xf32, #tpu.memory_space<smem>>
    %975 = vector.broadcast %974 : f32 to vector<8x128xf32>
    %976 = arith.addf %973, %975 : vector<8x128xf32>
    %977 = vector.broadcast %4 : vector<1x128xf32> to vector<8x128xf32>
    %978 = arith.mulf %976, %977 : vector<8x128xf32>
    %c216 = arith.constant 216 : index
    %979 = memref.load %arg2[%c216] : memref<288xf32, #tpu.memory_space<smem>>
    %980 = vector.broadcast %979 : f32 to vector<8x128xf32>
    %981 = arith.mulf %980, %893 : vector<8x128xf32>
    %c219 = arith.constant 219 : index
    %982 = memref.load %arg2[%c219] : memref<288xf32, #tpu.memory_space<smem>>
    %983 = vector.broadcast %982 : f32 to vector<8x128xf32>
    %984 = arith.mulf %983, %894 : vector<8x128xf32>
    %985 = arith.addf %981, %984 : vector<8x128xf32>
    %c222 = arith.constant 222 : index
    %986 = memref.load %arg2[%c222] : memref<288xf32, #tpu.memory_space<smem>>
    %987 = vector.broadcast %986 : f32 to vector<8x128xf32>
    %988 = arith.mulf %987, %895 : vector<8x128xf32>
    %989 = arith.addf %985, %988 : vector<8x128xf32>
    %c217 = arith.constant 217 : index
    %990 = memref.load %arg2[%c217] : memref<288xf32, #tpu.memory_space<smem>>
    %991 = vector.broadcast %990 : f32 to vector<8x128xf32>
    %992 = arith.mulf %991, %888 : vector<8x128xf32>
    %993 = arith.addf %989, %992 : vector<8x128xf32>
    %c220 = arith.constant 220 : index
    %994 = memref.load %arg2[%c220] : memref<288xf32, #tpu.memory_space<smem>>
    %995 = vector.broadcast %994 : f32 to vector<8x128xf32>
    %996 = arith.mulf %995, %890 : vector<8x128xf32>
    %997 = arith.addf %993, %996 : vector<8x128xf32>
    %c223 = arith.constant 223 : index
    %998 = memref.load %arg2[%c223] : memref<288xf32, #tpu.memory_space<smem>>
    %999 = vector.broadcast %998 : f32 to vector<8x128xf32>
    %1000 = arith.mulf %999, %892 : vector<8x128xf32>
    %1001 = arith.addf %997, %1000 : vector<8x128xf32>
    %c218 = arith.constant 218 : index
    %1002 = memref.load %arg2[%c218] : memref<288xf32, #tpu.memory_space<smem>>
    %1003 = vector.broadcast %1002 : f32 to vector<8x128xf32>
    %1004 = arith.mulf %1003, %896 : vector<8x128xf32>
    %1005 = arith.addf %1001, %1004 : vector<8x128xf32>
    %c221 = arith.constant 221 : index
    %1006 = memref.load %arg2[%c221] : memref<288xf32, #tpu.memory_space<smem>>
    %1007 = vector.broadcast %1006 : f32 to vector<8x128xf32>
    %1008 = arith.mulf %1007, %897 : vector<8x128xf32>
    %1009 = arith.addf %1005, %1008 : vector<8x128xf32>
    %c224 = arith.constant 224 : index
    %1010 = memref.load %arg2[%c224] : memref<288xf32, #tpu.memory_space<smem>>
    %1011 = vector.broadcast %1010 : f32 to vector<8x128xf32>
    %1012 = arith.mulf %1011, %898 : vector<8x128xf32>
    %1013 = arith.addf %1009, %1012 : vector<8x128xf32>
    %c227 = arith.constant 227 : index
    %1014 = memref.load %arg2[%c227] : memref<288xf32, #tpu.memory_space<smem>>
    %1015 = vector.broadcast %1014 : f32 to vector<8x128xf32>
    %1016 = arith.addf %1013, %1015 : vector<8x128xf32>
    %1017 = vector.broadcast %4 : vector<1x128xf32> to vector<8x128xf32>
    %1018 = arith.mulf %1016, %1017 : vector<8x128xf32>
    %cst_72 = arith.constant 0.000000e+00 : f32
    %1019 = vector.broadcast %cst_72 : f32 to vector<8x128xf32>
    %1020 = arith.maximumf %938, %1019 : vector<8x128xf32>
    %cst_73 = arith.constant 0.000000e+00 : f32
    %1021 = vector.broadcast %cst_73 : f32 to vector<8x128xf32>
    %1022 = arith.maximumf %978, %1021 : vector<8x128xf32>
    %cst_74 = arith.constant 0.000000e+00 : f32
    %1023 = vector.broadcast %cst_74 : f32 to vector<8x128xf32>
    %1024 = arith.maximumf %1018, %1023 : vector<8x128xf32>
    %1025 = arith.addf %754, %1020 : vector<8x128xf32>
    %cst_75 = arith.constant 0.000000e+00 : f32
    %1026 = vector.broadcast %cst_75 : f32 to vector<8x128xf32>
    %1027 = arith.maximumf %1025, %1026 : vector<8x128xf32>
    %1028 = arith.addf %757, %1022 : vector<8x128xf32>
    %cst_76 = arith.constant 0.000000e+00 : f32
    %1029 = vector.broadcast %cst_76 : f32 to vector<8x128xf32>
    %1030 = arith.maximumf %1028, %1029 : vector<8x128xf32>
    %1031 = arith.addf %760, %1024 : vector<8x128xf32>
    %cst_77 = arith.constant 0.000000e+00 : f32
    %1032 = vector.broadcast %cst_77 : f32 to vector<8x128xf32>
    %1033 = arith.maximumf %1031, %1032 : vector<8x128xf32>
    %c8_i32 = arith.constant 8 : i32
    %1034 = tpu.dynamic_rotate %1027 by %c8_i32 dim 1 : vector<8x128xf32>, i32 -> vector<8x128xf32>
    %c8_i32_78 = arith.constant 8 : i32
    %1035 = tpu.dynamic_rotate %1030 by %c8_i32_78 dim 1 : vector<8x128xf32>, i32 -> vector<8x128xf32>
    %c8_i32_79 = arith.constant 8 : i32
    %1036 = tpu.dynamic_rotate %1033 by %c8_i32_79 dim 1 : vector<8x128xf32>, i32 -> vector<8x128xf32>
    %c120_i32 = arith.constant 120 : i32
    %1037 = tpu.dynamic_rotate %1027 by %c120_i32 dim 1 : vector<8x128xf32>, i32 -> vector<8x128xf32>
    %c120_i32_80 = arith.constant 120 : i32
    %1038 = tpu.dynamic_rotate %1030 by %c120_i32_80 dim 1 : vector<8x128xf32>, i32 -> vector<8x128xf32>
    %c120_i32_81 = arith.constant 120 : i32
    %1039 = tpu.dynamic_rotate %1033 by %c120_i32_81 dim 1 : vector<8x128xf32>, i32 -> vector<8x128xf32>
    %c228 = arith.constant 228 : index
    %1040 = memref.load %arg2[%c228] : memref<288xf32, #tpu.memory_space<smem>>
    %1041 = vector.broadcast %1040 : f32 to vector<8x128xf32>
    %1042 = arith.mulf %1041, %1034 : vector<8x128xf32>
    %c231 = arith.constant 231 : index
    %1043 = memref.load %arg2[%c231] : memref<288xf32, #tpu.memory_space<smem>>
    %1044 = vector.broadcast %1043 : f32 to vector<8x128xf32>
    %1045 = arith.mulf %1044, %1035 : vector<8x128xf32>
    %1046 = arith.addf %1042, %1045 : vector<8x128xf32>
    %c234 = arith.constant 234 : index
    %1047 = memref.load %arg2[%c234] : memref<288xf32, #tpu.memory_space<smem>>
    %1048 = vector.broadcast %1047 : f32 to vector<8x128xf32>
    %1049 = arith.mulf %1048, %1036 : vector<8x128xf32>
    %1050 = arith.addf %1046, %1049 : vector<8x128xf32>
    %c229 = arith.constant 229 : index
    %1051 = memref.load %arg2[%c229] : memref<288xf32, #tpu.memory_space<smem>>
    %1052 = vector.broadcast %1051 : f32 to vector<8x128xf32>
    %1053 = arith.mulf %1052, %1027 : vector<8x128xf32>
    %1054 = arith.addf %1050, %1053 : vector<8x128xf32>
    %c232 = arith.constant 232 : index
    %1055 = memref.load %arg2[%c232] : memref<288xf32, #tpu.memory_space<smem>>
    %1056 = vector.broadcast %1055 : f32 to vector<8x128xf32>
    %1057 = arith.mulf %1056, %1030 : vector<8x128xf32>
    %1058 = arith.addf %1054, %1057 : vector<8x128xf32>
    %c235 = arith.constant 235 : index
    %1059 = memref.load %arg2[%c235] : memref<288xf32, #tpu.memory_space<smem>>
    %1060 = vector.broadcast %1059 : f32 to vector<8x128xf32>
    %1061 = arith.mulf %1060, %1033 : vector<8x128xf32>
    %1062 = arith.addf %1058, %1061 : vector<8x128xf32>
    %c230 = arith.constant 230 : index
    %1063 = memref.load %arg2[%c230] : memref<288xf32, #tpu.memory_space<smem>>
    %1064 = vector.broadcast %1063 : f32 to vector<8x128xf32>
    %1065 = arith.mulf %1064, %1037 : vector<8x128xf32>
    %1066 = arith.addf %1062, %1065 : vector<8x128xf32>
    %c233 = arith.constant 233 : index
    %1067 = memref.load %arg2[%c233] : memref<288xf32, #tpu.memory_space<smem>>
    %1068 = vector.broadcast %1067 : f32 to vector<8x128xf32>
    %1069 = arith.mulf %1068, %1038 : vector<8x128xf32>
    %1070 = arith.addf %1066, %1069 : vector<8x128xf32>
    %c236 = arith.constant 236 : index
    %1071 = memref.load %arg2[%c236] : memref<288xf32, #tpu.memory_space<smem>>
    %1072 = vector.broadcast %1071 : f32 to vector<8x128xf32>
    %1073 = arith.mulf %1072, %1039 : vector<8x128xf32>
    %1074 = arith.addf %1070, %1073 : vector<8x128xf32>
    %c255 = arith.constant 255 : index
    %1075 = memref.load %arg2[%c255] : memref<288xf32, #tpu.memory_space<smem>>
    %1076 = vector.broadcast %1075 : f32 to vector<8x128xf32>
    %1077 = arith.addf %1074, %1076 : vector<8x128xf32>
    %1078 = vector.broadcast %4 : vector<1x128xf32> to vector<8x128xf32>
    %1079 = arith.mulf %1077, %1078 : vector<8x128xf32>
    %c237 = arith.constant 237 : index
    %1080 = memref.load %arg2[%c237] : memref<288xf32, #tpu.memory_space<smem>>
    %1081 = vector.broadcast %1080 : f32 to vector<8x128xf32>
    %1082 = arith.mulf %1081, %1034 : vector<8x128xf32>
    %c240 = arith.constant 240 : index
    %1083 = memref.load %arg2[%c240] : memref<288xf32, #tpu.memory_space<smem>>
    %1084 = vector.broadcast %1083 : f32 to vector<8x128xf32>
    %1085 = arith.mulf %1084, %1035 : vector<8x128xf32>
    %1086 = arith.addf %1082, %1085 : vector<8x128xf32>
    %c243 = arith.constant 243 : index
    %1087 = memref.load %arg2[%c243] : memref<288xf32, #tpu.memory_space<smem>>
    %1088 = vector.broadcast %1087 : f32 to vector<8x128xf32>
    %1089 = arith.mulf %1088, %1036 : vector<8x128xf32>
    %1090 = arith.addf %1086, %1089 : vector<8x128xf32>
    %c238 = arith.constant 238 : index
    %1091 = memref.load %arg2[%c238] : memref<288xf32, #tpu.memory_space<smem>>
    %1092 = vector.broadcast %1091 : f32 to vector<8x128xf32>
    %1093 = arith.mulf %1092, %1027 : vector<8x128xf32>
    %1094 = arith.addf %1090, %1093 : vector<8x128xf32>
    %c241 = arith.constant 241 : index
    %1095 = memref.load %arg2[%c241] : memref<288xf32, #tpu.memory_space<smem>>
    %1096 = vector.broadcast %1095 : f32 to vector<8x128xf32>
    %1097 = arith.mulf %1096, %1030 : vector<8x128xf32>
    %1098 = arith.addf %1094, %1097 : vector<8x128xf32>
    %c244 = arith.constant 244 : index
    %1099 = memref.load %arg2[%c244] : memref<288xf32, #tpu.memory_space<smem>>
    %1100 = vector.broadcast %1099 : f32 to vector<8x128xf32>
    %1101 = arith.mulf %1100, %1033 : vector<8x128xf32>
    %1102 = arith.addf %1098, %1101 : vector<8x128xf32>
    %c239 = arith.constant 239 : index
    %1103 = memref.load %arg2[%c239] : memref<288xf32, #tpu.memory_space<smem>>
    %1104 = vector.broadcast %1103 : f32 to vector<8x128xf32>
    %1105 = arith.mulf %1104, %1037 : vector<8x128xf32>
    %1106 = arith.addf %1102, %1105 : vector<8x128xf32>
    %c242 = arith.constant 242 : index
    %1107 = memref.load %arg2[%c242] : memref<288xf32, #tpu.memory_space<smem>>
    %1108 = vector.broadcast %1107 : f32 to vector<8x128xf32>
    %1109 = arith.mulf %1108, %1038 : vector<8x128xf32>
    %1110 = arith.addf %1106, %1109 : vector<8x128xf32>
    %c245 = arith.constant 245 : index
    %1111 = memref.load %arg2[%c245] : memref<288xf32, #tpu.memory_space<smem>>
    %1112 = vector.broadcast %1111 : f32 to vector<8x128xf32>
    %1113 = arith.mulf %1112, %1039 : vector<8x128xf32>
    %1114 = arith.addf %1110, %1113 : vector<8x128xf32>
    %c256 = arith.constant 256 : index
    %1115 = memref.load %arg2[%c256] : memref<288xf32, #tpu.memory_space<smem>>
    %1116 = vector.broadcast %1115 : f32 to vector<8x128xf32>
    %1117 = arith.addf %1114, %1116 : vector<8x128xf32>
    %1118 = vector.broadcast %4 : vector<1x128xf32> to vector<8x128xf32>
    %1119 = arith.mulf %1117, %1118 : vector<8x128xf32>
    %c246 = arith.constant 246 : index
    %1120 = memref.load %arg2[%c246] : memref<288xf32, #tpu.memory_space<smem>>
    %1121 = vector.broadcast %1120 : f32 to vector<8x128xf32>
    %1122 = arith.mulf %1121, %1034 : vector<8x128xf32>
    %c249 = arith.constant 249 : index
    %1123 = memref.load %arg2[%c249] : memref<288xf32, #tpu.memory_space<smem>>
    %1124 = vector.broadcast %1123 : f32 to vector<8x128xf32>
    %1125 = arith.mulf %1124, %1035 : vector<8x128xf32>
    %1126 = arith.addf %1122, %1125 : vector<8x128xf32>
    %c252 = arith.constant 252 : index
    %1127 = memref.load %arg2[%c252] : memref<288xf32, #tpu.memory_space<smem>>
    %1128 = vector.broadcast %1127 : f32 to vector<8x128xf32>
    %1129 = arith.mulf %1128, %1036 : vector<8x128xf32>
    %1130 = arith.addf %1126, %1129 : vector<8x128xf32>
    %c247 = arith.constant 247 : index
    %1131 = memref.load %arg2[%c247] : memref<288xf32, #tpu.memory_space<smem>>
    %1132 = vector.broadcast %1131 : f32 to vector<8x128xf32>
    %1133 = arith.mulf %1132, %1027 : vector<8x128xf32>
    %1134 = arith.addf %1130, %1133 : vector<8x128xf32>
    %c250 = arith.constant 250 : index
    %1135 = memref.load %arg2[%c250] : memref<288xf32, #tpu.memory_space<smem>>
    %1136 = vector.broadcast %1135 : f32 to vector<8x128xf32>
    %1137 = arith.mulf %1136, %1030 : vector<8x128xf32>
    %1138 = arith.addf %1134, %1137 : vector<8x128xf32>
    %c253 = arith.constant 253 : index
    %1139 = memref.load %arg2[%c253] : memref<288xf32, #tpu.memory_space<smem>>
    %1140 = vector.broadcast %1139 : f32 to vector<8x128xf32>
    %1141 = arith.mulf %1140, %1033 : vector<8x128xf32>
    %1142 = arith.addf %1138, %1141 : vector<8x128xf32>
    %c248 = arith.constant 248 : index
    %1143 = memref.load %arg2[%c248] : memref<288xf32, #tpu.memory_space<smem>>
    %1144 = vector.broadcast %1143 : f32 to vector<8x128xf32>
    %1145 = arith.mulf %1144, %1037 : vector<8x128xf32>
    %1146 = arith.addf %1142, %1145 : vector<8x128xf32>
    %c251 = arith.constant 251 : index
    %1147 = memref.load %arg2[%c251] : memref<288xf32, #tpu.memory_space<smem>>
    %1148 = vector.broadcast %1147 : f32 to vector<8x128xf32>
    %1149 = arith.mulf %1148, %1038 : vector<8x128xf32>
    %1150 = arith.addf %1146, %1149 : vector<8x128xf32>
    %c254 = arith.constant 254 : index
    %1151 = memref.load %arg2[%c254] : memref<288xf32, #tpu.memory_space<smem>>
    %1152 = vector.broadcast %1151 : f32 to vector<8x128xf32>
    %1153 = arith.mulf %1152, %1039 : vector<8x128xf32>
    %1154 = arith.addf %1150, %1153 : vector<8x128xf32>
    %c257 = arith.constant 257 : index
    %1155 = memref.load %arg2[%c257] : memref<288xf32, #tpu.memory_space<smem>>
    %1156 = vector.broadcast %1155 : f32 to vector<8x128xf32>
    %1157 = arith.addf %1154, %1156 : vector<8x128xf32>
    %1158 = vector.broadcast %4 : vector<1x128xf32> to vector<8x128xf32>
    %1159 = arith.mulf %1157, %1158 : vector<8x128xf32>
    %cst_82 = arith.constant 0.000000e+00 : f32
    %1160 = vector.broadcast %cst_82 : f32 to vector<8x128xf32>
    %1161 = arith.maximumf %1079, %1160 : vector<8x128xf32>
    %cst_83 = arith.constant 0.000000e+00 : f32
    %1162 = vector.broadcast %cst_83 : f32 to vector<8x128xf32>
    %1163 = arith.maximumf %1119, %1162 : vector<8x128xf32>
    %cst_84 = arith.constant 0.000000e+00 : f32
    %1164 = vector.broadcast %cst_84 : f32 to vector<8x128xf32>
    %1165 = arith.maximumf %1159, %1164 : vector<8x128xf32>
    %c1_i32_85 = arith.constant 1 : i32
    %1166 = tpu.dynamic_rotate %1161 by %c1_i32_85 dim 1 : vector<8x128xf32>, i32 -> vector<8x128xf32>
    %c1_i32_86 = arith.constant 1 : i32
    %1167 = tpu.dynamic_rotate %1163 by %c1_i32_86 dim 1 : vector<8x128xf32>, i32 -> vector<8x128xf32>
    %c1_i32_87 = arith.constant 1 : i32
    %1168 = tpu.dynamic_rotate %1165 by %c1_i32_87 dim 1 : vector<8x128xf32>, i32 -> vector<8x128xf32>
    %c127_i32_88 = arith.constant 127 : i32
    %1169 = tpu.dynamic_rotate %1161 by %c127_i32_88 dim 1 : vector<8x128xf32>, i32 -> vector<8x128xf32>
    %c127_i32_89 = arith.constant 127 : i32
    %1170 = tpu.dynamic_rotate %1163 by %c127_i32_89 dim 1 : vector<8x128xf32>, i32 -> vector<8x128xf32>
    %c127_i32_90 = arith.constant 127 : i32
    %1171 = tpu.dynamic_rotate %1165 by %c127_i32_90 dim 1 : vector<8x128xf32>, i32 -> vector<8x128xf32>
    %c258 = arith.constant 258 : index
    %1172 = memref.load %arg2[%c258] : memref<288xf32, #tpu.memory_space<smem>>
    %1173 = vector.broadcast %1172 : f32 to vector<8x128xf32>
    %1174 = arith.mulf %1173, %1166 : vector<8x128xf32>
    %c261 = arith.constant 261 : index
    %1175 = memref.load %arg2[%c261] : memref<288xf32, #tpu.memory_space<smem>>
    %1176 = vector.broadcast %1175 : f32 to vector<8x128xf32>
    %1177 = arith.mulf %1176, %1167 : vector<8x128xf32>
    %1178 = arith.addf %1174, %1177 : vector<8x128xf32>
    %c264 = arith.constant 264 : index
    %1179 = memref.load %arg2[%c264] : memref<288xf32, #tpu.memory_space<smem>>
    %1180 = vector.broadcast %1179 : f32 to vector<8x128xf32>
    %1181 = arith.mulf %1180, %1168 : vector<8x128xf32>
    %1182 = arith.addf %1178, %1181 : vector<8x128xf32>
    %c259 = arith.constant 259 : index
    %1183 = memref.load %arg2[%c259] : memref<288xf32, #tpu.memory_space<smem>>
    %1184 = vector.broadcast %1183 : f32 to vector<8x128xf32>
    %1185 = arith.mulf %1184, %1161 : vector<8x128xf32>
    %1186 = arith.addf %1182, %1185 : vector<8x128xf32>
    %c262 = arith.constant 262 : index
    %1187 = memref.load %arg2[%c262] : memref<288xf32, #tpu.memory_space<smem>>
    %1188 = vector.broadcast %1187 : f32 to vector<8x128xf32>
    %1189 = arith.mulf %1188, %1163 : vector<8x128xf32>
    %1190 = arith.addf %1186, %1189 : vector<8x128xf32>
    %c265 = arith.constant 265 : index
    %1191 = memref.load %arg2[%c265] : memref<288xf32, #tpu.memory_space<smem>>
    %1192 = vector.broadcast %1191 : f32 to vector<8x128xf32>
    %1193 = arith.mulf %1192, %1165 : vector<8x128xf32>
    %1194 = arith.addf %1190, %1193 : vector<8x128xf32>
    %c260 = arith.constant 260 : index
    %1195 = memref.load %arg2[%c260] : memref<288xf32, #tpu.memory_space<smem>>
    %1196 = vector.broadcast %1195 : f32 to vector<8x128xf32>
    %1197 = arith.mulf %1196, %1169 : vector<8x128xf32>
    %1198 = arith.addf %1194, %1197 : vector<8x128xf32>
    %c263 = arith.constant 263 : index
    %1199 = memref.load %arg2[%c263] : memref<288xf32, #tpu.memory_space<smem>>
    %1200 = vector.broadcast %1199 : f32 to vector<8x128xf32>
    %1201 = arith.mulf %1200, %1170 : vector<8x128xf32>
    %1202 = arith.addf %1198, %1201 : vector<8x128xf32>
    %c266 = arith.constant 266 : index
    %1203 = memref.load %arg2[%c266] : memref<288xf32, #tpu.memory_space<smem>>
    %1204 = vector.broadcast %1203 : f32 to vector<8x128xf32>
    %1205 = arith.mulf %1204, %1171 : vector<8x128xf32>
    %1206 = arith.addf %1202, %1205 : vector<8x128xf32>
    %c285 = arith.constant 285 : index
    %1207 = memref.load %arg2[%c285] : memref<288xf32, #tpu.memory_space<smem>>
    %1208 = vector.broadcast %1207 : f32 to vector<8x128xf32>
    %1209 = arith.addf %1206, %1208 : vector<8x128xf32>
    %1210 = vector.broadcast %4 : vector<1x128xf32> to vector<8x128xf32>
    %1211 = arith.mulf %1209, %1210 : vector<8x128xf32>
    %c267 = arith.constant 267 : index
    %1212 = memref.load %arg2[%c267] : memref<288xf32, #tpu.memory_space<smem>>
    %1213 = vector.broadcast %1212 : f32 to vector<8x128xf32>
    %1214 = arith.mulf %1213, %1166 : vector<8x128xf32>
    %c270 = arith.constant 270 : index
    %1215 = memref.load %arg2[%c270] : memref<288xf32, #tpu.memory_space<smem>>
    %1216 = vector.broadcast %1215 : f32 to vector<8x128xf32>
    %1217 = arith.mulf %1216, %1167 : vector<8x128xf32>
    %1218 = arith.addf %1214, %1217 : vector<8x128xf32>
    %c273 = arith.constant 273 : index
    %1219 = memref.load %arg2[%c273] : memref<288xf32, #tpu.memory_space<smem>>
    %1220 = vector.broadcast %1219 : f32 to vector<8x128xf32>
    %1221 = arith.mulf %1220, %1168 : vector<8x128xf32>
    %1222 = arith.addf %1218, %1221 : vector<8x128xf32>
    %c268 = arith.constant 268 : index
    %1223 = memref.load %arg2[%c268] : memref<288xf32, #tpu.memory_space<smem>>
    %1224 = vector.broadcast %1223 : f32 to vector<8x128xf32>
    %1225 = arith.mulf %1224, %1161 : vector<8x128xf32>
    %1226 = arith.addf %1222, %1225 : vector<8x128xf32>
    %c271 = arith.constant 271 : index
    %1227 = memref.load %arg2[%c271] : memref<288xf32, #tpu.memory_space<smem>>
    %1228 = vector.broadcast %1227 : f32 to vector<8x128xf32>
    %1229 = arith.mulf %1228, %1163 : vector<8x128xf32>
    %1230 = arith.addf %1226, %1229 : vector<8x128xf32>
    %c274 = arith.constant 274 : index
    %1231 = memref.load %arg2[%c274] : memref<288xf32, #tpu.memory_space<smem>>
    %1232 = vector.broadcast %1231 : f32 to vector<8x128xf32>
    %1233 = arith.mulf %1232, %1165 : vector<8x128xf32>
    %1234 = arith.addf %1230, %1233 : vector<8x128xf32>
    %c269 = arith.constant 269 : index
    %1235 = memref.load %arg2[%c269] : memref<288xf32, #tpu.memory_space<smem>>
    %1236 = vector.broadcast %1235 : f32 to vector<8x128xf32>
    %1237 = arith.mulf %1236, %1169 : vector<8x128xf32>
    %1238 = arith.addf %1234, %1237 : vector<8x128xf32>
    %c272 = arith.constant 272 : index
    %1239 = memref.load %arg2[%c272] : memref<288xf32, #tpu.memory_space<smem>>
    %1240 = vector.broadcast %1239 : f32 to vector<8x128xf32>
    %1241 = arith.mulf %1240, %1170 : vector<8x128xf32>
    %1242 = arith.addf %1238, %1241 : vector<8x128xf32>
    %c275 = arith.constant 275 : index
    %1243 = memref.load %arg2[%c275] : memref<288xf32, #tpu.memory_space<smem>>
    %1244 = vector.broadcast %1243 : f32 to vector<8x128xf32>
    %1245 = arith.mulf %1244, %1171 : vector<8x128xf32>
    %1246 = arith.addf %1242, %1245 : vector<8x128xf32>
    %c286 = arith.constant 286 : index
    %1247 = memref.load %arg2[%c286] : memref<288xf32, #tpu.memory_space<smem>>
    %1248 = vector.broadcast %1247 : f32 to vector<8x128xf32>
    %1249 = arith.addf %1246, %1248 : vector<8x128xf32>
    %1250 = vector.broadcast %4 : vector<1x128xf32> to vector<8x128xf32>
    %1251 = arith.mulf %1249, %1250 : vector<8x128xf32>
    %c276 = arith.constant 276 : index
    %1252 = memref.load %arg2[%c276] : memref<288xf32, #tpu.memory_space<smem>>
    %1253 = vector.broadcast %1252 : f32 to vector<8x128xf32>
    %1254 = arith.mulf %1253, %1166 : vector<8x128xf32>
    %c279 = arith.constant 279 : index
    %1255 = memref.load %arg2[%c279] : memref<288xf32, #tpu.memory_space<smem>>
    %1256 = vector.broadcast %1255 : f32 to vector<8x128xf32>
    %1257 = arith.mulf %1256, %1167 : vector<8x128xf32>
    %1258 = arith.addf %1254, %1257 : vector<8x128xf32>
    %c282 = arith.constant 282 : index
    %1259 = memref.load %arg2[%c282] : memref<288xf32, #tpu.memory_space<smem>>
    %1260 = vector.broadcast %1259 : f32 to vector<8x128xf32>
    %1261 = arith.mulf %1260, %1168 : vector<8x128xf32>
    %1262 = arith.addf %1258, %1261 : vector<8x128xf32>
    %c277 = arith.constant 277 : index
    %1263 = memref.load %arg2[%c277] : memref<288xf32, #tpu.memory_space<smem>>
    %1264 = vector.broadcast %1263 : f32 to vector<8x128xf32>
    %1265 = arith.mulf %1264, %1161 : vector<8x128xf32>
    %1266 = arith.addf %1262, %1265 : vector<8x128xf32>
    %c280 = arith.constant 280 : index
    %1267 = memref.load %arg2[%c280] : memref<288xf32, #tpu.memory_space<smem>>
    %1268 = vector.broadcast %1267 : f32 to vector<8x128xf32>
    %1269 = arith.mulf %1268, %1163 : vector<8x128xf32>
    %1270 = arith.addf %1266, %1269 : vector<8x128xf32>
    %c283 = arith.constant 283 : index
    %1271 = memref.load %arg2[%c283] : memref<288xf32, #tpu.memory_space<smem>>
    %1272 = vector.broadcast %1271 : f32 to vector<8x128xf32>
    %1273 = arith.mulf %1272, %1165 : vector<8x128xf32>
    %1274 = arith.addf %1270, %1273 : vector<8x128xf32>
    %c278 = arith.constant 278 : index
    %1275 = memref.load %arg2[%c278] : memref<288xf32, #tpu.memory_space<smem>>
    %1276 = vector.broadcast %1275 : f32 to vector<8x128xf32>
    %1277 = arith.mulf %1276, %1169 : vector<8x128xf32>
    %1278 = arith.addf %1274, %1277 : vector<8x128xf32>
    %c281 = arith.constant 281 : index
    %1279 = memref.load %arg2[%c281] : memref<288xf32, #tpu.memory_space<smem>>
    %1280 = vector.broadcast %1279 : f32 to vector<8x128xf32>
    %1281 = arith.mulf %1280, %1170 : vector<8x128xf32>
    %1282 = arith.addf %1278, %1281 : vector<8x128xf32>
    %c284 = arith.constant 284 : index
    %1283 = memref.load %arg2[%c284] : memref<288xf32, #tpu.memory_space<smem>>
    %1284 = vector.broadcast %1283 : f32 to vector<8x128xf32>
    %1285 = arith.mulf %1284, %1171 : vector<8x128xf32>
    %1286 = arith.addf %1282, %1285 : vector<8x128xf32>
    %c287 = arith.constant 287 : index
    %1287 = memref.load %arg2[%c287] : memref<288xf32, #tpu.memory_space<smem>>
    %1288 = vector.broadcast %1287 : f32 to vector<8x128xf32>
    %1289 = arith.addf %1286, %1288 : vector<8x128xf32>
    %1290 = vector.broadcast %4 : vector<1x128xf32> to vector<8x128xf32>
    %1291 = arith.mulf %1289, %1290 : vector<8x128xf32>
    %cst_91 = arith.constant 0.000000e+00 : f32
    %1292 = vector.broadcast %cst_91 : f32 to vector<8x128xf32>
    %1293 = arith.maximumf %1211, %1292 : vector<8x128xf32>
    %cst_92 = arith.constant 0.000000e+00 : f32
    %1294 = vector.broadcast %cst_92 : f32 to vector<8x128xf32>
    %1295 = arith.maximumf %1251, %1294 : vector<8x128xf32>
    %cst_93 = arith.constant 0.000000e+00 : f32
    %1296 = vector.broadcast %cst_93 : f32 to vector<8x128xf32>
    %1297 = arith.maximumf %1291, %1296 : vector<8x128xf32>
    %1298 = arith.addf %1027, %1293 : vector<8x128xf32>
    %cst_94 = arith.constant 0.000000e+00 : f32
    %1299 = vector.broadcast %cst_94 : f32 to vector<8x128xf32>
    %1300 = arith.maximumf %1298, %1299 : vector<8x128xf32>
    %1301 = arith.addf %1030, %1295 : vector<8x128xf32>
    %cst_95 = arith.constant 0.000000e+00 : f32
    %1302 = vector.broadcast %cst_95 : f32 to vector<8x128xf32>
    %1303 = arith.maximumf %1301, %1302 : vector<8x128xf32>
    %1304 = arith.addf %1033, %1297 : vector<8x128xf32>
    %cst_96 = arith.constant 0.000000e+00 : f32
    %1305 = vector.broadcast %cst_96 : f32 to vector<8x128xf32>
    %1306 = arith.maximumf %1304, %1305 : vector<8x128xf32>
    %cst_97 = arith.constant dense<0.000000e+00> : vector<8xf32>
    %1307 = vector.multi_reduction <add>, %1300, %cst_97 [1] : vector<8x128xf32> to vector<8xf32>
    %1308 = vector.shape_cast %1307 : vector<8xf32> to vector<8x1xf32>
    %cst_98 = arith.constant 6.250000e-02 : f32
    %1309 = vector.broadcast %cst_98 : f32 to vector<8x1xf32>
    %1310 = arith.mulf %1308, %1309 : vector<8x1xf32>
    %cst_99 = arith.constant dense<0.000000e+00> : vector<8xf32>
    %1311 = vector.multi_reduction <add>, %1303, %cst_99 [1] : vector<8x128xf32> to vector<8xf32>
    %1312 = vector.shape_cast %1311 : vector<8xf32> to vector<8x1xf32>
    %cst_100 = arith.constant 6.250000e-02 : f32
    %1313 = vector.broadcast %cst_100 : f32 to vector<8x1xf32>
    %1314 = arith.mulf %1312, %1313 : vector<8x1xf32>
    %cst_101 = arith.constant dense<0.000000e+00> : vector<8xf32>
    %1315 = vector.multi_reduction <add>, %1306, %cst_101 [1] : vector<8x128xf32> to vector<8xf32>
    %1316 = vector.shape_cast %1315 : vector<8xf32> to vector<8x1xf32>
    %cst_102 = arith.constant 6.250000e-02 : f32
    %1317 = vector.broadcast %cst_102 : f32 to vector<8x1xf32>
    %1318 = arith.mulf %1316, %1317 : vector<8x1xf32>
    %c0_103 = arith.constant 0 : index
    %c0_104 = arith.constant 0 : index
    %1319 = vector.load %arg3[%c0_103, %c0_104] : memref<8x128xf32, #tpu.memory_space<vmem>>, vector<8x128xf32>
    %1320 = vector.extract_strided_slice %1319 {offsets = [3, 0], sizes = [1, 128], strides = [1, 1]} : vector<8x128xf32> to vector<1x128xf32>
    %1321 = vector.extract_strided_slice %1319 {offsets = [0, 0], sizes = [1, 128], strides = [1, 1]} : vector<8x128xf32> to vector<1x128xf32>
    %1322 = vector.broadcast %1310 : vector<8x1xf32> to vector<8x128xf32>
    %1323 = vector.broadcast %1321 : vector<1x128xf32> to vector<8x128xf32>
    %1324 = arith.mulf %1322, %1323 : vector<8x128xf32>
    %1325 = vector.broadcast %1320 : vector<1x128xf32> to vector<8x128xf32>
    %1326 = arith.addf %1325, %1324 : vector<8x128xf32>
    %1327 = vector.extract_strided_slice %1319 {offsets = [1, 0], sizes = [1, 128], strides = [1, 1]} : vector<8x128xf32> to vector<1x128xf32>
    %1328 = vector.broadcast %1314 : vector<8x1xf32> to vector<8x128xf32>
    %1329 = vector.broadcast %1327 : vector<1x128xf32> to vector<8x128xf32>
    %1330 = arith.mulf %1328, %1329 : vector<8x128xf32>
    %1331 = arith.addf %1326, %1330 : vector<8x128xf32>
    %1332 = vector.extract_strided_slice %1319 {offsets = [2, 0], sizes = [1, 128], strides = [1, 1]} : vector<8x128xf32> to vector<1x128xf32>
    %1333 = vector.broadcast %1318 : vector<8x1xf32> to vector<8x128xf32>
    %1334 = vector.broadcast %1332 : vector<1x128xf32> to vector<8x128xf32>
    %1335 = arith.mulf %1333, %1334 : vector<8x128xf32>
    %1336 = arith.addf %1331, %1335 : vector<8x128xf32>
    %c0_105 = arith.constant 0 : index
    %c0_106 = arith.constant 0 : index
    %1337 = vector.load %arg4[%c0_105, %c0_106] : memref<8x128xf32, #tpu.memory_space<vmem>>, vector<8x128xf32>
    tpu.vector_store %arg4[%c0_105, %c0_106], %1336 {strides = array<i32>} : memref<8x128xf32, #tpu.memory_space<vmem>>, vector<8x128xf32>,
    return
  }
  func.func @transform_0(%arg0: i32) -> (i32, i32, i32) {
    %c0_i32 = arith.constant 0 : i32
    %c0_i32_0 = arith.constant 0 : i32
    %c0_i32_1 = arith.constant 0 : i32
    return %c0_i32, %arg0, %c0_i32_0 : i32, i32, i32
  }
  func.func @transform_1(%arg0: i32) -> i32 {
    %c0_i32 = arith.constant 0 : i32
    %c0_i32_0 = arith.constant 0 : i32
    return %c0_i32 : i32
  }
  func.func @transform_2(%arg0: i32) -> (i32, i32) {
    %c0_i32 = arith.constant 0 : i32
    %c0_i32_0 = arith.constant 0 : i32
    %c0_i32_1 = arith.constant 0 : i32
    return %c0_i32, %c0_i32_0 : i32, i32
  }
  func.func @transform_3(%arg0: i32) -> (i32, i32) {
    %c0_i32 = arith.constant 0 : i32
    %c0_i32_0 = arith.constant 0 : i32
    return %arg0, %c0_i32 : i32, i32
  }
}

</mosaic_0001>

<bundles_post_ra>
// kernel: tpu_custom_call.1
= control target key start
LH: loop header
LB: loop body
LE: loop exit
PB: predicated region body
PF: predicated region fallthrough
CT: control target
= control target key end

     0   :  { %s3137_s0 = inlined_call_operand.hbm [shape: f32[4,8,128], index: 0, kind: input, shape index: {}]   ;;  %s3138_s1 = inlined_call_operand.hbm [shape: f32[288], index: 1, kind: input, shape index: {}]   ;;  %s3139_s2 = inlined_call_operand.hbm [shape: f32[8,128], index: 2, kind: input, shape index: {}]   ;;  %s3140_s3 = inlined_call_operand.hbm [shape: f32[8,128], index: 3, kind: output, shape index: {}]  }
   0x1   :  { %3170 = sst [smem:[#allocation52_spill]] %s3140_s3 }
   0x2   :  { %8 = vsyncpa [#allocation3], 0 }
   0x3   :  { %9 = vsyncpa [#allocation5], 0 }
   0x4   :  { %10 = vsyncpa [#allocation8], 0 }
   0x5   :  { %11 = vsyncpa [#allocation4], 0  ;;  %s16_s14 = sshll.u32 %s3137_s0, 4  ;;  %s1777_s15 = smov [#allocation2]   ;;  %s17_s14 = int_to_ptr.hbm [resolvable:$true] %s16_s14 }
   0x6   :  { %s18_s16 = sshll.u32 %s1777_s15, 4  ;;  %s30_s19 = sshll.u32 %s3138_s1, 4  ;;  %s19_s16 = int_to_ptr.vmem [resolvable:$true] %s18_s16  ;;  %s31_s19 = int_to_ptr.hbm [resolvable:$true] %s30_s19 }
   0x7   :  { %s1778_s20 = smov 128   ;;  %s3141_s21 = smov 8  }
   0x8   :  { %24 = dma.hbm_to_vmem [thread:$0]  %s17_s14, 512, %s19_s16, [#allocation3], %s1778_s20, %s1778_s20, %s3141_s21  }
   0x9   :  { %s1780_s22 = smov [#allocation6]   ;;  %s39_s25 = sshll.u32 %s3139_s2, 4  ;;  %s40_s25 = int_to_ptr.hbm [resolvable:$true] %s39_s25 }
   0xa   :  { %33 = dma.hbm_to_smem %s31_s19, 48, %s1780_s22, [#allocation5]  }
   0xb   :  { %s1781_s0 = smov [#allocation7]  }
   0xc   :  { %s41_s26 = sshll.u32 %s1781_s0, 4  ;;  %s42_s26 = int_to_ptr.vmem [resolvable:$true] %s41_s26 }
   0xd   :  { %44 = dma.hbm_to_vmem [thread:$0]  %s40_s25, 128, %s42_s26, [#allocation8]  }
   0xe   :  { %1769 = dma.done.wait [#allocation3], 512  }
   0xf   :  { %1770 = vsyncadd [#allocation3], 4294966784 }
  0x10   :  { %1771 = dma.done.wait [#allocation5], 48  }
  0x11   :  { %1772 = vsyncadd [#allocation5], 4294967248 }
  0x12   :  { %1773 = dma.done.wait [#allocation8], 128  }
  0x13   :  { %1774 = vsyncadd [#allocation8], 4294967168 }
  0x14   :  { %57 = sfence }
  0x15   :  { %v1821_v0 = vld [vmem:[#allocation2] sm:$0xff]  ;;  %v1823_v1 = vld [vmem:[#allocation2 + $0x10] sm:$0xff]  ;;  %s3145_s1 = smov 1   ;;  %s3143_s2 = smov 127   ;;  %v1831_v2 = vld [vmem:[#allocation2 + $0x8] sm:$0xff] }
  0x16   :  { %70 = vrot.lane.b32.xlu0 %v1821_v0, %s3145_s1  ;;  %74 = vrot.lane.b32.xlu1 %v1823_v1, %s3145_s1  ;;  %v1833_v3 = vld [vmem:[#allocation2 + $0x18] sm:$0xff]  ;;  %s1845_s27 = sld [smem:[#allocation6]] }
  0x17   :  { %78 = vrot.lane.b32.xlu2 %v1821_v0, %s3143_s2  ;;  %s1847_s28 = sld [smem:[#allocation6 + $0xc]] }
  0x18   :  { %s1849_s29 = sld [smem:[#allocation6 + $0x18]] }
  0x19   :  { %s1851_s30 = sld [smem:[#allocation6 + $0x45]] }
  0x1a   :  { %s1853_s4 = sld [smem:[#allocation6 + $0x51]] }
  0x1b   :  { %s1855_s5 = sld [smem:[#allocation6 + $0x5d]] }
  0x1c   :  { %3171 = sst [smem:[#allocation14_spill]] %s1845_s27  ;;  %v87_v4 = vstv %s1845_s27 }
  0x1d   :  { %3172 = sst [smem:[#allocation15_spill]] %s1847_s28  ;;  %v138_v5 = vstv %s1847_s28 }
  0x1e   :  { %72 = vrot.lane.b32.xlu0 %v1831_v2, %s3145_s1  ;;  %76 = vrot.lane.b32.xlu1 %v1833_v3, %s3145_s1  ;;  %3173 = sst [smem:[#allocation16_spill]] %s1849_s29  ;;  %v189_v6 = vstv %s1849_s29 }
  0x1f   :  { %80 = vrot.lane.b32.xlu2 %v1831_v2, %s3143_s2  ;;  %3174 = sst [smem:[#allocation17_spill]] %s1851_s30  ;;  %v375_v7 = vstv %s1851_s30 }
  0x20   :  { %3175 = sst [smem:[#allocation18_spill]] %s1853_s4  ;;  %v426_v8 = vstv %s1853_s4 }
  0x21   :  { %3176 = sst [smem:[#allocation19_spill]] %s1855_s5  ;;  %v477_v9 = vstv %s1855_s5 }
  0x22   :  { %s1857_s6 = sld [smem:[#allocation6 + $0x6]] }
  0x23   :  { %s1859_s7 = sld [smem:[#allocation6 + $0x12]] }
  0x24   :  { %s1861_s8 = sld [smem:[#allocation6 + $0x1e]] }
  0x25   :  { %s1863_s9 = sld [smem:[#allocation6 + $0x4b]] }
  0x26   :  { %82 = vrot.lane.b32.xlu0 %v1823_v1, %s3143_s2  ;;  %84 = vrot.lane.b32.xlu1 %v1833_v3, %s3143_s2  ;;  %s1865_s10 = sld [smem:[#allocation6 + $0x57]] }
  0x27   :  { %s1867_s11 = sld [smem:[#allocation6 + $0x63]] }
  0x28   :  { %3177 = sst [smem:[#allocation20_spill]] %s1857_s6  ;;  %v94_v10 = vstv %s1857_s6 }
  0x29   :  { %3178 = sst [smem:[#allocation21_spill]] %s1859_s7  ;;  %v145_v11 = vstv %s1859_s7 }
  0x2a   :  { %3179 = sst [smem:[#allocation22_spill]] %s1861_s8  ;;  %v196_v12 = vstv %s1861_s8 }
  0x2b   :  { %3180 = sst [smem:[#allocation23_spill]] %s1863_s9  ;;  %v382_v13 = vstv %s1863_s9 }
  0x2c   :  { %3181 = sst [smem:[#allocation24_spill]] %s1865_s10  ;;  %v433_v14 = vstv %s1865_s10 }
  0x2d   :  { %3182 = sst [smem:[#allocation25_spill]] %s1867_s11  ;;  %v484_v15 = vstv %s1867_s11 }
  0x2e   :  { %s1869_s12 = sld [smem:[#allocation6 + $0x3]] }
  0x2f   :  { %s1871_s13 = sld [smem:[#allocation6 + $0xf]] }
  0x30   :  { %s1873_s14 = sld [smem:[#allocation6 + $0x1b]] }
  0x31   :  { %s1875_s15 = sld [smem:[#allocation6 + $0x48]] }
  0x32   :  { %s1877_s16 = sld [smem:[#allocation6 + $0x54]] }
  0x33   :  { %s1879_s17 = sld [smem:[#allocation6 + $0x60]] }
  0x34   :  { %3183 = sst [smem:[#allocation26_spill]] %s1869_s12  ;;  %v90_v16 = vstv %s1869_s12 }
  0x35   :  { %3184 = sst [smem:[#allocation27_spill]] %s1871_s13  ;;  %v141_v17 = vstv %s1871_s13 }
  0x36   :  { %3185 = sst [smem:[#allocation28_spill]] %s1873_s14  ;;  %v192_v18 = vstv %s1873_s14 }
  0x37   :  { %s1881_s18 = sld [smem:[#allocation6 + $0x9]]  ;;  %v378_v19 = vstv %s1875_s15 }
  0x38   :  { %s1883_s19 = sld [smem:[#allocation6 + $0x1]]  ;;  %v429_v20 = vstv %s1877_s16 }
  0x39   :  { %3186 = sst [smem:[#allocation29_spill]] %s1879_s17  ;;  %v480_v21 = vstv %s1879_s17 }
  0x3a   :  { %s1885_s20 = sld [smem:[#allocation6 + $0x4]] }
  0x3b   :  { %s1887_s22 = sld [smem:[#allocation6 + $0x15]] }
  0x3c   :  { %s1889_s23 = sld [smem:[#allocation6 + $0xd]] }
  0x3d   :  { %s1891_s24 = sld [smem:[#allocation6 + $0x10]] }
  0x3e   :  { %s1893_s25 = sld [smem:[#allocation6 + $0x21]]  ;;  %v102_v23 = vstv %s1883_s19 }
  0x3f   :  { %s1895_s0 = sld [smem:[#allocation6 + $0x19]]  ;;  %v1990_v40 = vmul.f32 %v102_v23, %v1821_v0 }
  0x40   :  { %s1897_s26 = sld [smem:[#allocation6 + $0x1c]]  ;;  %v106_v24 = vstv %s1885_s20 }
  0x41   :  { %3187 = sst [smem:[#allocation30_spill]] %s1887_s22  ;;  %v1993_v41 = vmul.f32 %v106_v24, %v1831_v2 }
  0x42   :  { %s1899_s21 = sld [smem:[#allocation6 + $0x4e]]  ;;  %v153_v26 = vstv %s1889_s23 }
  0x43   :  { %3188 = sst [smem:[#allocation31_spill]] %s1891_s24  ;;  %v1996_v42 = vmul.f32 %v153_v26, %v1821_v0 }
  0x44   :  { %3189 = sst [smem:[#allocation32_spill]] %s1893_s25 }
  0x45   :  { %3190 = sst [smem:[#allocation33_spill]] %s1895_s0 }
  0x46   :  { %s1901_s2 = sld [smem:[#allocation6 + $0x46]]  ;;  %v208_v30 = vstv %s1897_s26 }
  0x47   :  { %s1903_s1 = sld [smem:[#allocation6 + $0x49]]  ;;  %v2015_v48 = vmul.f32 %v208_v30, %v1831_v2 }
  0x48   :  { %3191 = sst [smem:[#allocation34_spill]] %s1899_s21 }
  0x49   :  { %s1905_s3 = sld [smem:[#allocation6 + $0x5a]] }
  0x4a   :  { %s1907_s22 = sld [smem:[#allocation6 + $0x52]] }
  0x4b   :  { %s1909_s24 = sld [smem:[#allocation6 + $0x55]] }
  0x4c   :  { %3192 = sst [smem:[#allocation35_spill]] %s1901_s2 }
  0x4d   :  { %3193 = sst [smem:[#allocation36_spill]] %s1903_s1 }
  0x4e   :  { %s1911_s25 = sld [smem:[#allocation6 + $0x66]] }
  0x4f   :  { %3194 = sst [smem:[#allocation37_spill]] %s1905_s3 }
  0x50   :  { %3195 = sst [smem:[#allocation38_spill]] %s1907_s22 }
  0x51   :  { %3196 = sst [smem:[#allocation39_spill]] %s1909_s24 }
  0x52   :  { %s1913_s0 = sld [smem:[#allocation6 + $0x5e]] }
  0x53   :  { %s1915_s21 = sld [smem:[#allocation6 + $0x61]] }
  0x54   :  { %3197 = sst [smem:[#allocation40_spill]] %s1911_s25 }
  0x55   :  { %s1917_s2 = sld [smem:[#allocation6 + $0x7]] }
  0x56   :  { %s1919_s1 = sld [smem:[#allocation6 + $0xa]] }
  0x57   :  { %s1921_s3 = sld [smem:[#allocation6 + $0x2]] }
  0x58   :  { %3198 = sst [smem:[#allocation41_spill]] %s1913_s0 }
  0x59   :  { %3199 = sst [smem:[#allocation42_spill]] %s1915_s21 }
  0x5a   :  { %s1923_s22 = sld [smem:[#allocation6 + $0x13]] }
  0x5b   :  { %3200 = sst [smem:[#allocation43_spill]] %s1917_s2 }
  0x5c   :  { %s1925_s24 = sld [smem:[#allocation6 + $0x16]]  ;;  %v114_v51 = vstv %s1919_s1 }
  0x5d   :  { %3201 = sst [smem:[#allocation44_spill]] %s1921_s3  ;;  %v2042_v61 = vmul.f32 %v114_v51, %v1833_v3 }
  0x5e   :  { %s1927_s25 = sld [smem:[#allocation6 + $0xe]] }
  0x5f   :  { %s1929_s0 = sld [smem:[#allocation6 + $0x1f]] }
  0x60   :  { %s1931_s21 = sld [smem:[#allocation6 + $0x22]]  ;;  %v161_v54 = vstv %s1923_s22 }
  0x61   :  { %s1933_s2 = sld [smem:[#allocation6 + $0x1a]] }
  0x62   :  { %s1938_s3 = sld [smem:[#allocation6 + $0x4c]]  ;;  %v165_v55 = vstv %s1925_s24 }
  0x63   :  { %s3204_s27 = sld [smem:[#allocation30_spill]] }
  0x64   :  { %3202 = sst [smem:[#allocation45_spill]] %s1927_s25 }
  0x65   :  { %s1944_s25 = sld [smem:[#allocation6 + $0x4f]]  ;;  %v212_v58 = vstv %s1929_s0 }
  0x66   :  { %s1950_s29 = sld [smem:[#allocation6 + $0x47]]  ;;  %v216_v59 = vstv %s1931_s21  ;;  %v2057_v26 = vmul.f32 %v212_v58, %v1823_v1 }
  0x67   :  { %3203 = sst [smem:[#allocation46_spill]] %s1933_s2 }
  0x68   :  { %s3206_s28 = sld [smem:[#allocation31_spill]]  ;;  %v398_v62 = vstv %s1938_s3 }
  0x69   :  { %s3207_s30 = sld [smem:[#allocation32_spill]] }
  0x6a   :  { %s3208_s4 = sld [smem:[#allocation33_spill]] }
  0x6b   :  { %s1956_s6 = sld [smem:[#allocation6 + $0x58]]  ;;  %v402_v63 = vstv %s1944_s25 }
  0x6c   :  { %3205 = sst [smem:[#allocation30_spill]] %s1950_s29 }
  0x6d   :  { %s3209_s5 = sld [smem:[#allocation34_spill]] }
  0x6e   :  { %s3210_s7 = sld [smem:[#allocation35_spill]]  ;;  %v157_v27 = vstv %s3206_s28 }
  0x6f   :  { %s3211_s8 = sld [smem:[#allocation36_spill]]  ;;  %v2001_v44 = vmul.f32 %v157_v27, %v1831_v2  ;;  %v2060_v27 = vmul.f32 %v216_v59, %v1833_v3 }
  0x70   :  { %s3212_s9 = sld [smem:[#allocation38_spill]]  ;;  %v204_v29 = vstv %s3208_s4 }
  0x71   :  { %s1962_s10 = sld [smem:[#allocation6 + $0x5b]]  ;;  %v79_v43 = vpop.permute.xlu2 %78  ;;  %v2004_v45 = vmul.f32 %v204_v29, %v1821_v0  ;;  %v449_v24 = vstv %s1956_s6 }
  0x72   :  { %s3213_s29 = sld [smem:[#allocation37_spill]]  ;;  %v2074_v51 = vmul.f32 %v449_v24, %v1823_v1 }
  0x73   :  { %s3214_s11 = sld [smem:[#allocation39_spill]] }
  0x74   :  { %s3215_s12 = sld [smem:[#allocation40_spill]]  ;;  %v390_v32 = vstv %s3210_s7 }
  0x75   :  { %s3216_s13 = sld [smem:[#allocation41_spill]]  ;;  %v394_v33 = vstv %s3211_s8  ;;  %v2007_v46 = vmul.f32 %v390_v32, %v1821_v0 }
  0x76   :  { %s1968_s14 = sld [smem:[#allocation6 + $0x53]]  ;;  %v441_v34 = vstv %s3212_s9  ;;  %v2018_v49 = vmul.f32 %v394_v33, %v1831_v2 }
  0x77   :  { %s3217_s2 = sld [smem:[#allocation42_spill]]  ;;  %v2010_v47 = vmul.f32 %v441_v34, %v1821_v0  ;;  %v453_v30 = vstv %s1962_s10  ;;  %v2065_v34 = vmul.f32 %v398_v62, %v1823_v1 }
  0x78   :  { %s1974_s17 = sld [smem:[#allocation6 + $0x64]]  ;;  %v2079_v58 = vmul.f32 %v453_v30, %v1833_v3 }
  0x79   :  { %s1980_s19 = sld [smem:[#allocation6 + $0x67]]  ;;  %v445_v36 = vstv %s3214_s11 }
  0x7a   :  { %s3218_s20 = sld [smem:[#allocation43_spill]]  ;;  %v2025_v52 = vmul.f32 %v445_v36, %v1831_v2  ;;  %v2068_v36 = vmul.f32 %v402_v63, %v1833_v3  ;;  %v2084_v63 = vpop.permute.xlu2 %80 }
  0x7b   :  { %v492_v38 = vstv %s3216_s13  ;;  %s1986_s23 = sld [smem:[#allocation6 + $0x5f]]  ;;  %3226 = vst [vmem:[#allocation47_spill] sm:$0xff] %v2084_v63 }
  0x7c   :  { %s1998_s28 = sld [smem:[#allocation6 + $0x5]]  ;;  %v2028_v53 = vmul.f32 %v492_v38, %v1821_v0  ;;  %v2049_v0 = vmul.f32 %v161_v54, %v1823_v1  ;;  %v457_v54 = vstv %s1968_s14 }
  0x7d   :  { %v496_v39 = vstv %s3217_s2  ;;  %s3219_s4 = sld [smem:[#allocation44_spill]]  ;;  %v2100_v22 = vmul.f32 %v457_v54, %v79_v43 }
  0x7e   :  { %s2012_s2 = sld [smem:[#allocation6 + $0x11]]  ;;  %v2033_v56 = vmul.f32 %v496_v39, %v1831_v2  ;;  %v2052_v2 = vmul.f32 %v165_v55, %v1833_v3  ;;  %v500_v38 = vstv %s1974_s17 }
  0x7f   :  { %s2022_s7 = sld [smem:[#allocation6 + $0x1d]]  ;;  %v504_v39 = vstv %s1980_s19  ;;  %v2087_v35 = vmul.f32 %v500_v38, %v1823_v1 }
  0x80   :  { %v110_v50 = vstv %s3218_s20  ;;  %s3220_s8 = sld [smem:[#allocation45_spill]]  ;;  %v2090_v24 = vmul.f32 %v504_v39, %v1833_v3 }
  0x81   :  { %s3221_s9 = sld [smem:[#allocation46_spill]]  ;;  %v2039_v60 = vmul.f32 %v110_v50, %v1823_v1  ;;  %v508_v55 = vstv %s1986_s23 }
  0x82   :  { %s3222_s1 = sld [smem:[#allocation30_spill]]  ;;  %v122_v59 = vstv %s1998_s28  ;;  %v2102_v1 = vmul.f32 %v508_v55, %v79_v43 }
  0x83   :  { %v118_v57 = vstv %s3219_s4  ;;  %s2046_s11 = sld [smem:[#allocation6 + $0x8]]  ;;  %v2105_v3 = vmul.f32 %v122_v59, %v2084_v63 }
  0x84   :  { %v173_v37 = vstv %s2012_s2  ;;  %v2092_v30 = vmul.f32 %v118_v57, %v79_v43  ;;  %3234 = vst [vmem:[#allocation48_spill] sm:$0xff] %v2102_v1  ;;  %s2130_s4 = sld [smem:[#allocation6 + $0x14]] }
  0x85   :  { %v224_v62 = vstv %s2022_s7  ;;  %3236 = vst [vmem:[#allocation49_spill] sm:$0xff] %v2105_v3  ;;  %v2108_v57 = vmul.f32 %v173_v37, %v2084_v63  ;;  %s2140_s2 = sld [smem:[#allocation6 + $0x20]]  ;;  %v3247_v3 = vstv %s3209_s5  ;;  %s3255_s5 = smov 1  }
  0x86   :  { %v169_v23 = vstv %s3220_s8  ;;  %s2158_s7 = sld [smem:[#allocation6 + $0xb]] }
  0x87   :  { %v220_v29 = vstv %s3221_s9  ;;  %v2094_v31 = vmul.f32 %v169_v23, %v79_v43  ;;  %3238 = vst [vmem:[#allocation50_spill] sm:$0xff] %v2108_v57  ;;  %v2111_v23 = vmul.f32 %v224_v62, %v2084_v63  ;;  %s2160_s8 = sld [smem:[#allocation6 + $0x17]]  ;;  %v3246_v57 = vstv %s3207_s30 }
  0x88   :  { %v71_v32 = vpop.permute.xlu0 %70  ;;  %v75_v33 = vpop.permute.xlu1 %74  ;;  %v406_v50 = vstv %s3222_s1  ;;  %v2096_v28 = vmul.f32 %v220_v29, %v79_v43  ;;  %s2166_s15 = sld [smem:[#allocation6 + $0x23]] }
  0x89   :  { %v2098_v25 = vmul.f32 %v406_v50, %v79_v43  ;;  %3239 = vst [vmem:[#allocation51_spill] sm:$0xff] %v2111_v23  ;;  %v88_v38 = vmul.f32 %v87_v4, %v71_v32  ;;  %v139_v39 = vmul.f32 %v138_v5, %v71_v32  ;;  %v190_v43 = vmul.f32 %v189_v6, %v71_v32  ;;  %s2204_s30 = sld [smem:[#allocation6 + $0x24]] }
  0x8a   :  { %v376_v50 = vmul.f32 %v375_v7, %v71_v32  ;;  %v427_v54 = vmul.f32 %v426_v8, %v71_v32  ;;  %v478_v37 = vmul.f32 %v477_v9, %v71_v32  ;;  %v95_v55 = vmul.f32 %v94_v10, %v75_v33  ;;  %s1461_s16 = sld [smem:[#allocation6 + $0x4a]] }
  0x8b   :  { %v146_v4 = vmul.f32 %v145_v11, %v75_v33  ;;  %v197_v5 = vmul.f32 %v196_v12, %v75_v33  ;;  %v383_v6 = vmul.f32 %v382_v13, %v75_v33  ;;  %v434_v7 = vmul.f32 %v433_v14, %v75_v33  ;;  %s1487_s9 = sld [smem:[#allocation6 + $0x62]] }
  0x8c   :  { %v485_v8 = vmul.f32 %v484_v15, %v75_v33  ;;  %v3244_v32 = vstv %s1881_s18  ;;  %v3245_v33 = vstv %s3204_s27  ;;  %v228_v1 = vstv %s2140_s2  ;;  %s2191_s27 = sld [smem:[#allocation6 + $0x26]] }
  0x8d   :  { %s1474_s18 = sld [smem:[#allocation6 + $0x56]] }
  0x8e   :  { %s2260_s1 = sld [smem:[#allocation6 + $0x4d]] }
  0x8f   :  { %s2264_s3 = sld [smem:[#allocation6 + $0x65]] }
  0x90   :  { %v73_v59 = vpop.permute.xlu0 %72  ;;  %v77_v62 = vpop.permute.xlu1 %76  ;;  %s2266_s21 = sld [smem:[#allocation6 + $0x50]] }
  0x91   :  { %v91_v9 = vmul.f32 %v90_v16, %v73_v59  ;;  %v142_v10 = vmul.f32 %v141_v17, %v73_v59  ;;  %v193_v11 = vmul.f32 %v192_v18, %v73_v59  ;;  %v379_v12 = vmul.f32 %v378_v19, %v73_v59  ;;  %s2268_s6 = sld [smem:[#allocation6 + $0x69]] }
  0x92   :  { %v430_v13 = vmul.f32 %v429_v20, %v73_v59  ;;  %v481_v14 = vmul.f32 %v480_v21, %v73_v59  ;;  %v99_v15 = vmul.f32 %v3244_v32, %v77_v62  ;;  %v150_v29 = vmul.f32 %v3245_v33, %v77_v62  ;;  %s2270_s10 = sld [smem:[#allocation6 + $0x5c]] }
  0x93   :  { %v92_v16 = vadd.f32 %v91_v9, %v88_v38  ;;  %v143_v63 = vadd.f32 %v142_v10, %v139_v39  ;;  %v194_v17 = vadd.f32 %v193_v11, %v190_v43  ;;  %v380_v23 = vadd.f32 %v379_v12, %v376_v50  ;;  %s2272_s13 = sld [smem:[#allocation6 + $0x6a]] }
  0x94   :  { %v431_v18 = vadd.f32 %v430_v13, %v427_v54  ;;  %v482_v19 = vadd.f32 %v481_v14, %v478_v37  ;;  %v201_v20 = vmul.f32 %v3246_v57, %v77_v62  ;;  %v387_v21 = vmul.f32 %v3247_v3, %v77_v62  ;;  %s2274_s14 = sld [smem:[#allocation6 + $0x68]] }
  0x95   :  { %v96_v59 = vadd.f32 %v95_v55, %v92_v16  ;;  %v147_v32 = vadd.f32 %v146_v4, %v143_v63  ;;  %v198_v33 = vadd.f32 %v197_v5, %v194_v17  ;;  %v384_v38 = vadd.f32 %v383_v6, %v380_v23  ;;  %s2276_s17 = sld [smem:[#allocation6 + $0x27]] }
  0x96   :  { %v435_v39 = vadd.f32 %v434_v7, %v431_v18  ;;  %v3248_v9 = vstv %s3213_s29  ;;  %v486_v50 = vadd.f32 %v485_v8, %v482_v19  ;;  %v3249_v10 = vstv %s3215_s12  ;;  %s2197_s29 = sld [smem:[#allocation6 + $0x25]]  ;;  %s3256_s12 = smov 127  }
  0x97   :  { %v438_v43 = vmul.f32 %v3248_v9, %v77_v62  ;;  %v489_v54 = vmul.f32 %v3249_v10, %v77_v62  ;;  %v100_v37 = vadd.f32 %v99_v15, %v96_v59  ;;  %v151_v11 = vadd.f32 %v150_v29, %v147_v32  ;;  %v3252_v32 = vld [vmem:[#allocation49_spill] sm:$0xff]  ;;  %s2278_s22 = sld [smem:[#allocation6 + $0x30]] }
  0x98   :  { %v202_v57 = vadd.f32 %v201_v20, %v198_v33  ;;  %v388_v12 = vadd.f32 %v387_v21, %v384_v38  ;;  %v177_v14 = vstv %s2130_s4  ;;  %v130_v6 = vstv %s2158_s7  ;;  %v2210_v19 = vpop.permute.xlu1 %84  ;;  %s2280_s24 = sld [smem:[#allocation6 + $0x39]] }
  0x99   :  { %v439_v3 = vadd.f32 %v438_v43, %v435_v39  ;;  %v490_v13 = vadd.f32 %v489_v54, %v486_v50  ;;  %v104_v63 = vadd.f32 %v1990_v40, %v100_v37  ;;  %v155_v23 = vadd.f32 %v1996_v42, %v151_v11  ;;  %v2185_v42 = vpop.permute.xlu0 %82  ;;  %v3254_v39 = vld [vmem:[#allocation51_spill] sm:$0xff]  ;;  %s2282_s25 = sld [smem:[#allocation6 + $0x28]] }
  0x9a   :  { %v206_v55 = vadd.f32 %v2004_v45, %v202_v57  ;;  %v392_v4 = vadd.f32 %v2007_v46, %v388_v12  ;;  %v58_v7 = vlaneseq  ;;  %v232_v16 = vstv %s2166_s15  ;;  %s2284_s0 = sld [smem:[#allocation6 + $0x31]] }
  0x9b   :  { %v443_v5 = vadd.f32 %v2010_v47, %v439_v3  ;;  %v494_v29 = vadd.f32 %v2028_v53, %v490_v13  ;;  %v108_v8 = vadd.f32 %v1993_v41, %v104_v63  ;;  %v159_v62 = vadd.f32 %v2001_v44, %v155_v23  ;;  %s2286_s26 = sld [smem:[#allocation6 + $0x3a]] }
  0x9c   :  { %v210_v40 = vadd.f32 %v2015_v48, %v206_v55  ;;  %v396_v15 = vadd.f32 %v2018_v49, %v392_v4  ;;  %v181_v47 = vstv %s2160_s8  ;;  %v59_v18 = vand.u32 127, %v58_v7  ;;  %s2288_s19 = sld [smem:[#allocation6 + $0x2b]] }
  0x9d   :  { %v447_v45 = vadd.f32 %v2025_v52, %v443_v5  ;;  %v498_v46 = vadd.f32 %v2033_v56, %v494_v29  ;;  %v112_v53 = vadd.f32 %v2039_v60, %v108_v8  ;;  %v163_v41 = vadd.f32 %v2049_v0, %v159_v62  ;;  %s2290_s20 = sld [smem:[#allocation6 + $0x2e]] }
  0x9e   :  { %v214_v44 = vadd.f32 %v2057_v26, %v210_v40  ;;  %v400_v48 = vadd.f32 %v2065_v34, %v396_v15  ;;  %v3250_v56 = vstv %s2046_s11  ;;  %v178_v20 = vmul.f32 %v177_v14, %v2185_v42  ;;  %s2262_s11 = sld [smem:[#allocation6 + $0x59]]  ;;  %v3257_v40 = vld [vmem:[#allocation47_spill] sm:$0xff] }
  0x9f   :  { %v451_v49 = vadd.f32 %v2074_v51, %v447_v45  ;;  %v502_v52 = vadd.f32 %v2087_v35, %v498_v46  ;;  %v127_v17 = vmul.f32 %v3250_v56, %v2185_v42  ;;  %v116_v60 = vadd.f32 %v2042_v61, %v112_v53  ;;  %s2292_s23 = sld [smem:[#allocation6 + $0x34]] }
  0xa0   :  { %v167_v0 = vadd.f32 %v2052_v2, %v163_v41  ;;  %v218_v26 = vadd.f32 %v2060_v27, %v214_v44  ;;  %v404_v34 = vadd.f32 %v2068_v36, %v400_v48  ;;  %v229_v21 = vmul.f32 %v228_v1, %v2185_v42  ;;  %s2296_s28 = sld [smem:[#allocation6 + $0x2d]] }
  0xa1   :  { %v455_v51 = vadd.f32 %v2079_v58, %v451_v49  ;;  %v506_v35 = vadd.f32 %v2090_v24, %v502_v52  ;;  %v120_v59 = vadd.f32 %v2092_v30, %v116_v60  ;;  %v3251_v58 = vld [vmem:[#allocation48_spill] sm:$0xff]  ;;  %v131_v1 = vmul.f32 %v130_v6, %v2210_v19  ;;  %s2300_s4 = sld [smem:[#allocation6 + $0x2a]] }
  0xa2   :  { %v171_v61 = vadd.f32 %v2094_v31, %v167_v0  ;;  %v222_v2 = vadd.f32 %v2096_v28, %v218_v26  ;;  %v2220_v27 = vadd.f32 %v2098_v25, %v404_v34  ;;  %v182_v30 = vmul.f32 %v181_v47, %v2210_v19  ;;  %v3253_v31 = vld [vmem:[#allocation50_spill] sm:$0xff]  ;;  %s2303_s2 = sld [smem:[#allocation6 + $0x33]] }
  0xa3   :  { %v2223_v36 = vadd.f32 %v2100_v22, %v455_v51  ;;  %v2226_v24 = vadd.f32 %v3251_v58, %v506_v35  ;;  %v124_v33 = vadd.f32 %v3252_v32, %v120_v59  ;;  %v233_v9 = vmul.f32 %v232_v16, %v2210_v19  ;;  %s2306_s7 = sld [smem:[#allocation6 + $0x3c]] }
  0xa4   :  { %v175_v38 = vadd.f32 %v3253_v31, %v171_v61  ;;  %v226_v28 = vadd.f32 %v3254_v39, %v222_v2  ;;  %vm60_vm0 = vcmp.lt.s32.totalorder %v59_v18, 16  ;;  %v236_v22 = vstv %s2191_s27  ;;  %s2312_s8 = sld [smem:[#allocation6 + $0x36]] }
  0xa5   :  { %v128_v25 = vadd.f32 %v127_v17, %v124_v33  ;;  %v185_v10 = vstv %s2197_s29  ;;  %v134_v54 = vstv %s2204_s30  ;;  %v1784_v12 = vmov 0.0   ;;  %s2316_s15 = sld [smem:[#allocation6 + $0x3f]] }
  0xa6   :  { %v179_v43 = vadd.f32 %v178_v20, %v175_v38  ;;  %v230_v50 = vadd.f32 %v229_v21, %v226_v28  ;;  %v2237_v3 = vsel %vm60_vm0, 1.0, %v1784_v12  ;;  %v410_v7 = vstv %s1461_s16  ;;  %s2320_s27 = sld [smem:[#allocation6 + $0x37]] }
  0xa7   :  { %v132_v37 = vadd.f32 %v131_v1, %v128_v25  ;;  %v461_v8 = vstv %s1474_s18  ;;  %v512_v62 = vstv %s1487_s9  ;;  %v411_v15 = vmul.f32 %v410_v7, %v3257_v40  ;;  %s2326_s29 = sld [smem:[#allocation6 + $0x3d]] }
  0xa8   :  { %v183_v11 = vadd.f32 %v182_v30, %v179_v43  ;;  %v234_v57 = vadd.f32 %v233_v9, %v230_v50  ;;  %v462_v45 = vmul.f32 %v461_v8, %v3257_v40  ;;  %v414_v46 = vstv %s2260_s1  ;;  %s2330_s30 = sld [smem:[#allocation6 + $0x40]] }
  0xa9   :  { %v135_v63 = vadd.f32 %v134_v54, %v132_v37  ;;  %v465_v47 = vstv %s2262_s11  ;;  %v513_v16 = vmul.f32 %v512_v62, %v3257_v40  ;;  %v516_v53 = vstv %s2264_s3  ;;  %s2332_s16 = sld [smem:[#allocation6 + $0x29]] }
  0xaa   :  { %v237_v13 = vadd.f32 %v236_v22, %v234_v57  ;;  %v186_v14 = vadd.f32 %v185_v10, %v183_v11  ;;  %v412_v41 = vadd.f32 %v411_v15, %v2220_v27  ;;  %v463_v44 = vadd.f32 %v462_v45, %v2223_v36  ;;  %s2344_s18 = sld [smem:[#allocation6 + $0x32]] }
  0xab   :  { %v136_v4 = vmul.f32 %v2237_v3, %v135_v63  ;;  %v415_v48 = vmul.f32 %v414_v46, %v2185_v42  ;;  %v466_v49 = vmul.f32 %v465_v47, %v2185_v42  ;;  %v418_v52 = vstv %s2266_s21  ;;  %s2349_s9 = sld [smem:[#allocation6 + $0x3b]] }
  0xac   :  { %v238_v23 = vmul.f32 %v2237_v3, %v237_v13  ;;  %v187_v55 = vmul.f32 %v2237_v3, %v186_v14  ;;  %v469_v56 = vstv %s2270_s10  ;;  %v514_v17 = vadd.f32 %v513_v16, %v2226_v24  ;;  %s2358_s1 = sld [smem:[#allocation6 + $0x2f]] }
  0xad   :  { %v2246_v6 = vmax.f32 %v136_v4, 0.0  ;;  %v517_v18 = vmul.f32 %v516_v53, %v2185_v42  ;;  %v422_v60 = vstv %s2268_s6  ;;  %v473_v0 = vstv %s2272_s13  ;;  %s2363_s11 = sld [smem:[#allocation6 + $0x2c]]  ;;  %s1785_s6 = smov 2  }
  0xae   :  { %v2242_v5 = vmax.f32 %v238_v23, 0.0  ;;  %v2244_v29 = vmax.f32 %v187_v55, 0.0  ;;  %v520_v26 = vstv %s2274_s14  ;;  %v266_v34 = vstv %s2282_s25  ;;  %s2365_s3 = sld [smem:[#allocation6 + $0x35]]  ;;  %s1786_s13 = smov 126  }
  0xaf   :  { %242 = vrot.lane.b32.xlu2 %v2246_v6, %s3255_s5  ;;  %v416_v51 = vadd.f32 %v415_v48, %v412_v41  ;;  %v467_v35 = vadd.f32 %v466_v49, %v463_v44  ;;  %v419_v20 = vmul.f32 %v418_v52, %v2210_v19  ;;  %v470_v21 = vmul.f32 %v469_v56, %v2210_v19  ;;  %s2369_s21 = sld [smem:[#allocation6 + $0x3e]] }
  0xb0   :  { %246 = vrot.lane.b32.xlu1 %v2242_v5, %s3255_s5  ;;  %244 = vrot.lane.b32.xlu0 %v2244_v29, %s3255_s5  ;;  %v305_v42 = vstv %s2284_s0  ;;  %v344_v59 = vstv %s2286_s26  ;;  %v2338_v27 = vadd.f32 %v517_v18, %v514_v17  ;;  %v2341_v36 = vmul.f32 %v520_v26, %v2210_v19  ;;  %s2371_s10 = sld [smem:[#allocation6 + $0x38]] }
  0xb1   :  { %v270_v61 = vstv %s2288_s19  ;;  %v274_v2 = vstv %s2290_s20  ;;  %v255_v58 = vstv %s2276_s17  ;;  %v258_v1 = vstv %s2300_s4  ;;  %s2375_s14 = sld [smem:[#allocation6 + $0x41]] }
  0xb2   :  { %v294_v30 = vstv %s2278_s22  ;;  %v333_v32 = vstv %s2280_s24  ;;  %v297_v33 = vstv %s2303_s2  ;;  %v336_v31 = vstv %s2306_s7  ;;  %s2378_s17 = sld [smem:[#allocation6 + $0x6b]] }
  0xb3   :  { %v2353_v38 = vadd.f32 %v419_v20, %v416_v51  ;;  %v2355_v39 = vadd.f32 %v470_v21, %v467_v35  ;;  %v262_v19 = vstv %s2296_s28  ;;  %v309_v25 = vstv %s2292_s23  ;;  %s2382_s22 = sld [smem:[#allocation6 + $0x42]] }
  0xb4   :  { %v301_v50 = vstv %s2312_s8  ;;  %v340_v22 = vstv %s2316_s15  ;;  %v313_v14 = vstv %s2320_s27  ;;  %v348_v63 = vstv %s2326_s29  ;;  %s2388_s24 = sld [smem:[#allocation6 + $0x43]] }
  0xb5   :  { %v267_v62 = vmul.f32 %v266_v34, %v2246_v6  ;;  %v306_v40 = vmul.f32 %v305_v42, %v2246_v6  ;;  %v352_v15 = vstv %s2330_s30  ;;  %v345_v47 = vmul.f32 %v344_v59, %v2246_v6  ;;  %s2394_s25 = sld [smem:[#allocation6 + $0x44]] }
  0xb6   :  { %v275_v16 = vmul.f32 %v274_v2, %v2242_v5  ;;  %v314_v41 = vmul.f32 %v313_v14, %v2242_v5  ;;  %v271_v44 = vmul.f32 %v270_v61, %v2244_v29  ;;  %v310_v48 = vmul.f32 %v309_v25, %v2244_v29  ;;  %s2432_s0 = sld [smem:[#allocation6 + $0x6d]] }
  0xb7   :  { %248 = vrot.lane.b32.xlu2 %v2246_v6, %s3256_s12  ;;  %v278_v49 = vstv %s2332_s16  ;;  %v349_v6 = vmul.f32 %v348_v63, %v2244_v29  ;;  %v317_v18 = vstv %s2344_s18  ;;  %v356_v26 = vstv %s2349_s9  ;;  %s2434_s26 = sld [smem:[#allocation6 + $0x76]] }
  0xb8   :  { %252 = vrot.lane.b32.xlu1 %v2242_v5, %s3256_s12  ;;  %250 = vrot.lane.b32.xlu0 %v2244_v29, %s3256_s12  ;;  %v353_v34 = vmul.f32 %v352_v15, %v2242_v5  ;;  %v286_v35 = vstv %s2358_s1  ;;  %v282_v20 = vstv %s2363_s11  ;;  %s2436_s19 = sld [smem:[#allocation6 + $0x7f]] }
  0xb9   :  { %v321_v2 = vstv %s2365_s3  ;;  %v524_v14 = vstv %s2378_s17  ;;  %s2438_s20 = sld [smem:[#allocation6 + $0x70]] }
  0xba   :  { %v329_v63 = vstv %s2388_s24  ;;  %s2440_s23 = sld [smem:[#allocation6 + $0x73]] }
  0xbb   :  { %s2442_s28 = sld [smem:[#allocation6 + $0x79]] }
  0xbc   :  { %s2444_s4 = sld [smem:[#allocation6 + $0x6c]] }
  0xbd   :  { %s2446_s2 = sld [smem:[#allocation6 + $0x75]] }
  0xbe   :  { %s2448_s7 = sld [smem:[#allocation6 + $0x7e]] }
  0xbf   :  { %s2450_s8 = sld [smem:[#allocation6 + $0x72]] }
  0xc0   :  { %s2452_s15 = sld [smem:[#allocation6 + $0x6f]] }
  0xc1   :  { %s2454_s27 = sld [smem:[#allocation6 + $0x78]] }
  0xc2   :  { %s2456_s29 = sld [smem:[#allocation6 + $0x81]] }
  0xc3   :  { %s2458_s30 = sld [smem:[#allocation6 + $0x7b]] }
  0xc4   :  { %s2460_s16 = sld [smem:[#allocation6 + $0x84]] }
  0xc5   :  { %s2462_s18 = sld [smem:[#allocation6 + $0x7c]] }
  0xc6   :  { %s2464_s9 = sld [smem:[#allocation6 + $0x82]] }
  0xc7   :  { %s2466_s1 = sld [smem:[#allocation6 + $0x85]] }
  0xc8   :  { %s2468_s11 = sld [smem:[#allocation6 + $0x6e]] }
  0xc9   :  { %s2472_s3 = sld [smem:[#allocation6 + $0x77]] }
  0xca   :  { %s2493_s17 = sld [smem:[#allocation6 + $0x7a]] }
  0xcb   :  { %s2499_s24 = sld [smem:[#allocation6 + $0x7d]] }
 0x109   :  { %v243_v24 = vpop.permute.xlu2 %242 }
 0x10a   :  { %v256_v43 = vmul.f32 %v255_v58, %v243_v24  ;;  %v295_v54 = vmul.f32 %v294_v30, %v243_v24  ;;  %v334_v37 = vmul.f32 %v333_v32, %v243_v24  ;;  %v360_v58 = vstv %s2369_s21  ;;  %s2479_s21 = sld [smem:[#allocation6 + $0x80]] }
 0x111   :  { %v249_v52 = vpop.permute.xlu2 %248 }
 0x112   :  { %v279_v61 = vmul.f32 %v278_v49, %v249_v52  ;;  %v318_v29 = vmul.f32 %v317_v18, %v249_v52 }
 0x122   :  { %v247_v28 = vpop.permute.xlu1 %246  ;;  %v245_v9 = vpop.permute.xlu0 %244 }
 0x123   :  { %v259_v10 = vmul.f32 %v258_v1, %v245_v9  ;;  %v298_v11 = vmul.f32 %v297_v33, %v245_v9  ;;  %v337_v57 = vmul.f32 %v336_v31, %v245_v9  ;;  %v263_v12 = vmul.f32 %v262_v19, %v247_v28 }
 0x124   :  { %v302_v23 = vmul.f32 %v301_v50, %v247_v28  ;;  %v341_v55 = vmul.f32 %v340_v22, %v247_v28  ;;  %v357_v1 = vmul.f32 %v356_v26, %v249_v52  ;;  %v325_v33 = vstv %s2371_s10  ;;  %s2484_s10 = sld [smem:[#allocation6 + $0x74]] }
 0x125   :  { %v260_v13 = vadd.f32 %v259_v10, %v256_v43  ;;  %v299_v4 = vadd.f32 %v298_v11, %v295_v54  ;;  %v338_v7 = vadd.f32 %v337_v57, %v334_v37  ;;  %v364_v31 = vstv %s2375_s14  ;;  %s2491_s14 = sld [smem:[#allocation6 + $0x71]] }
 0x126   :  { %v522_v22 = vadd.f32 %v2341_v36, %v2338_v27  ;;  %v290_v54 = vstv %s2382_s22  ;;  %v474_v27 = vadd.f32 %v473_v0, %v2355_v39  ;;  %v549_v26 = vstv %s2452_s15  ;;  %s2497_s22 = sld [smem:[#allocation6 + $0x83]] }
 0x127   :  { %v264_v8 = vadd.f32 %v263_v12, %v260_v13  ;;  %v303_v45 = vadd.f32 %v302_v23, %v299_v4  ;;  %v342_v46 = vadd.f32 %v341_v55, %v338_v7  ;;  %v368_v23 = vstv %s2394_s25  ;;  %s2503_s25 = sld [smem:[#allocation6 + $0x86]] }
 0x128   :  { %v525_v36 = vadd.f32 %v524_v14, %v522_v22  ;;  %s2570_s15 = sld [smem:[#allocation6 + $0x90]] }
 0x129   :  { %v268_v53 = vadd.f32 %v267_v62, %v264_v8  ;;  %v307_v56 = vadd.f32 %v306_v40, %v303_v45  ;;  %v346_v17 = vadd.f32 %v345_v47, %v342_v46  ;;  %v423_v8 = vadd.f32 %v422_v60, %v2353_v38 }
 0x12a   :  { %v251_v21 = vpop.permute.xlu0 %250  ;;  %v253_v30 = vpop.permute.xlu1 %252  ;;  %v526_v60 = vmul.f32 %v2237_v3, %v525_v36 }
 0x12b   :  { %v272_v51 = vadd.f32 %v271_v44, %v268_v53  ;;  %v311_v42 = vadd.f32 %v310_v48, %v307_v56  ;;  %v350_v59 = vadd.f32 %v349_v6, %v346_v17  ;;  %v283_v28 = vmul.f32 %v282_v20, %v251_v21 }
 0x12c   :  { %v322_v25 = vmul.f32 %v321_v2, %v251_v21  ;;  %v361_v50 = vmul.f32 %v360_v58, %v251_v21  ;;  %v287_v10 = vmul.f32 %v286_v35, %v253_v30  ;;  %v326_v11 = vmul.f32 %v325_v33, %v253_v30 }
 0x12d   :  { %v276_v24 = vadd.f32 %v275_v16, %v272_v51  ;;  %v315_v32 = vadd.f32 %v314_v41, %v311_v42  ;;  %v354_v5 = vadd.f32 %v353_v34, %v350_v59  ;;  %v365_v57 = vmul.f32 %v364_v31, %v253_v30 }
 0x12e   :  { %v424_v16 = vmul.f32 %v2237_v3, %v423_v8  ;;  %v475_v41 = vmul.f32 %v2237_v3, %v474_v27  ;;  %v557_v17 = vstv %s2432_s0  ;;  %v546_v6 = vstv %s2444_s4  ;;  %s2520_s0 = sld [smem:[#allocation6 + $0x89]] }
 0x12f   :  { %v280_v19 = vadd.f32 %v279_v61, %v276_v24  ;;  %v319_v9 = vadd.f32 %v318_v29, %v315_v32  ;;  %v358_v43 = vadd.f32 %v357_v1, %v354_v5  ;;  %v596_v34 = vstv %s2434_s26  ;;  %s2552_s26 = sld [smem:[#allocation6 + $0x8b]] }
 0x130   :  { %v635_v51 = vstv %s2436_s19  ;;  %v585_v35 = vstv %s2446_s2  ;;  %v624_v20 = vstv %s2448_s7  ;;  %v588_v21 = vstv %s2454_s27  ;;  %s2554_s19 = sld [smem:[#allocation6 + $0x94]] }
 0x131   :  { %v284_v37 = vadd.f32 %v283_v28, %v280_v19  ;;  %v323_v12 = vadd.f32 %v322_v25, %v319_v9  ;;  %v362_v13 = vadd.f32 %v361_v50, %v358_v43  ;;  %v627_v42 = vstv %s2456_s29  ;;  %s2562_s4 = sld [smem:[#allocation6 + $0x97]] }
 0x132   :  { %v553_v59 = vstv %s2450_s8  ;;  %v561_v58 = vstv %s2438_s20  ;;  %v565_v24 = vstv %s2440_s23  ;;  %v600_v29 = vstv %s2442_s28  ;;  %s2556_s20 = sld [smem:[#allocation6 + $0x9d]] }
 0x133   :  { %v288_v55 = vadd.f32 %v287_v10, %v284_v37  ;;  %v327_v4 = vadd.f32 %v326_v11, %v323_v12  ;;  %v366_v7 = vadd.f32 %v365_v57, %v362_v13  ;;  %v592_v30 = vstv %s2458_s30  ;;  %s2558_s23 = sld [smem:[#allocation6 + $0x8e]] }
 0x134   :  { %v631_v32 = vstv %s2460_s16  ;;  %v604_v43 = vstv %s2462_s18  ;;  %v639_v50 = vstv %s2464_s9  ;;  %v643_v13 = vstv %s2466_s1  ;;  %s2560_s28 = sld [smem:[#allocation6 + $0x91]] }
 0x135   :  { %v291_v62 = vadd.f32 %v290_v54, %v288_v55  ;;  %v330_v40 = vadd.f32 %v329_v63, %v327_v4  ;;  %v369_v15 = vadd.f32 %v368_v23, %v366_v7  ;;  %v569_v27 = vstv %s2468_s11  ;;  %s2564_s2 = sld [smem:[#allocation6 + $0x8a]] }
 0x136   :  { %s2566_s7 = sld [smem:[#allocation6 + $0x93]] }
 0x137   :  { %v292_v45 = vmul.f32 %v2237_v3, %v291_v62  ;;  %v331_v46 = vmul.f32 %v2237_v3, %v330_v40  ;;  %v370_v47 = vmul.f32 %v2237_v3, %v369_v15  ;;  %s2568_s8 = sld [smem:[#allocation6 + $0x9c]] }
 0x138   :  { %s2572_s27 = sld [smem:[#allocation6 + $0x8d]] }
 0x139   :  { %v371_v53 = vmax.f32 %v292_v45, 0.0  ;;  %v372_v38 = vmax.f32 %v331_v46, 0.0  ;;  %v373_v44 = vmax.f32 %v370_v47, 0.0  ;;  %v608_v46 = vstv %s2472_s3  ;;  %s2574_s29 = sld [smem:[#allocation6 + $0x96]] }
 0x13a   :  { %v647_v47 = vstv %s2479_s21  ;;  %s2576_s30 = sld [smem:[#allocation6 + $0x9f]] }
 0x13b   :  { %v527_v48 = vadd.f32 %v424_v16, %v371_v53  ;;  %v529_v0 = vadd.f32 %v475_v41, %v372_v38  ;;  %v531_v39 = vadd.f32 %v526_v60, %v373_v44  ;;  %v577_v41 = vstv %s2484_s10  ;;  %s2578_s16 = sld [smem:[#allocation6 + $0x99]] }
 0x13c   :  { %v573_v60 = vstv %s2491_s14  ;;  %s2580_s18 = sld [smem:[#allocation6 + $0xa2]] }
 0x13d   :  { %v2420_v49 = vmax.f32 %v527_v48, 0.0  ;;  %v2422_v52 = vmax.f32 %v529_v0, 0.0  ;;  %v2424_v56 = vmax.f32 %v531_v39, 0.0  ;;  %v612_v39 = vstv %s2493_s17  ;;  %s2582_s9 = sld [smem:[#allocation6 + $0x9a]] }
 0x13e   :  { %s2584_s1 = sld [smem:[#allocation6 + $0xa0]] }
 0x13f   :  { %533 = vrot.lane.b32.xlu2 %v2420_v49, %s1785_s6  ;;  %537 = vrot.lane.b32.xlu1 %v2424_v56, %s1785_s6  ;;  %v558_v57 = vmul.f32 %v557_v17, %v2420_v49  ;;  %v597_v12 = vmul.f32 %v596_v34, %v2420_v49  ;;  %v636_v23 = vmul.f32 %v635_v51, %v2420_v49  ;;  %v651_v17 = vstv %s2497_s22  ;;  %s2586_s11 = sld [smem:[#allocation6 + $0xa3]] }
 0x140   :  { %535 = vrot.lane.b32.xlu0 %v2422_v52, %s1785_s6  ;;  %v566_v55 = vmul.f32 %v565_v24, %v2424_v56  ;;  %s2508_s6 = sld [smem:[#allocation6 + $0x87]]  ;;  %v605_v7 = vmul.f32 %v604_v43, %v2424_v56  ;;  %v562_v8 = vmul.f32 %v561_v58, %v2422_v52  ;;  %v601_v62 = vmul.f32 %v600_v29, %v2422_v52 }
 0x141   :  { %v640_v45 = vmul.f32 %v639_v50, %v2422_v52  ;;  %v644_v16 = vmul.f32 %v643_v13, %v2424_v56  ;;  %s2588_s3 = sld [smem:[#allocation6 + $0x8c]] }
 0x142   :  { %s2592_s21 = sld [smem:[#allocation6 + $0x95]] }
 0x143   :  { %s2599_s10 = sld [smem:[#allocation6 + $0x9e]] }
 0x144   :  { %s2604_s14 = sld [smem:[#allocation6 + $0x92]] }
 0x145   :  { %s2611_s17 = sld [smem:[#allocation6 + $0x8f]] }
 0x146   :  { %s2613_s22 = sld [smem:[#allocation6 + $0x98]] }
 0x147   :  { %539 = vrot.lane.b32.xlu2 %v2420_v49, %s1786_s13  ;;  %543 = vrot.lane.b32.xlu1 %v2424_v56, %s1786_s13 }
 0x148   :  { %541 = vrot.lane.b32.xlu0 %v2422_v52, %s1786_s13  ;;  %s2514_s13 = sld [smem:[#allocation6 + $0x88]] }
 0x199   :  { %v534_v18 = vpop.permute.xlu2 %533 }
 0x19a   :  { %v547_v1 = vmul.f32 %v546_v6, %v534_v18  ;;  %v586_v33 = vmul.f32 %v585_v35, %v534_v18  ;;  %v625_v31 = vmul.f32 %v624_v20, %v534_v18  ;;  %v616_v20 = vstv %s2499_s24  ;;  %s2617_s24 = sld [smem:[#allocation6 + $0xa1]] }
 0x1a1   :  { %v540_v36 = vpop.permute.xlu2 %539 }
 0x1a2   :  { %v570_v0 = vmul.f32 %v569_v27, %v540_v36  ;;  %v609_v18 = vmul.f32 %v608_v46, %v540_v36  ;;  %v720_v27 = vstv %s2574_s29  ;;  %v693_v46 = vstv %s2558_s23  ;;  %s2669_s23 = sld [smem:[#allocation6 + $0xa9]] }
 0x1a3   :  { %s2685_s29 = sld [smem:[#allocation6 + $0xba]] }
 0x1b1   :  { %v538_v61 = vpop.permute.xlu1 %537 }
 0x1b2   :  { %v536_v2 = vpop.permute.xlu0 %535  ;;  %v554_v9 = vmul.f32 %v553_v59, %v538_v61  ;;  %v593_v22 = vmul.f32 %v592_v30, %v538_v61  ;;  %v632_v10 = vmul.f32 %v631_v32, %v538_v61 }
 0x1b3   :  { %v550_v5 = vmul.f32 %v549_v26, %v536_v2  ;;  %v589_v19 = vmul.f32 %v588_v21, %v536_v2  ;;  %v628_v28 = vmul.f32 %v627_v42, %v536_v2  ;;  %v648_v26 = vmul.f32 %v647_v47, %v540_v36 }
 0x1b4   :  { %v655_v21 = vstv %s2503_s25  ;;  %v759_v36 = vstv %s2576_s30  ;;  %v697_v47 = vstv %s2560_s28  ;;  %s2619_s25 = sld [smem:[#allocation6 + $0x9b]] }
 0x1b5   :  { %v551_v25 = vadd.f32 %v550_v5, %v547_v1  ;;  %v590_v54 = vadd.f32 %v589_v19, %v586_v33  ;;  %v629_v37 = vadd.f32 %v628_v28, %v625_v31  ;;  %v581_v1 = vstv %s2508_s6  ;;  %s2623_s6 = sld [smem:[#allocation6 + $0xa4]] }
 0x1b6   :  { %v620_v19 = vstv %s2514_s13  ;;  %v659_v28 = vstv %s2520_s0  ;;  %s2628_s13 = sld [smem:[#allocation6 + $0xa5]] }
 0x1b7   :  { %v555_v11 = vadd.f32 %v554_v9, %v551_v25  ;;  %v594_v14 = vadd.f32 %v593_v22, %v590_v54  ;;  %v633_v63 = vadd.f32 %v632_v10, %v629_v37  ;;  %s2634_s0 = sld [smem:[#allocation6 + $0xa6]] }
 0x1b8   :  { %s2671_s28 = sld [smem:[#allocation6 + $0xb2]] }
 0x1b9   :  { %v559_v4 = vadd.f32 %v558_v57, %v555_v11  ;;  %v598_v40 = vadd.f32 %v597_v12, %v594_v14  ;;  %v637_v15 = vadd.f32 %v636_v23, %v633_v63  ;;  %v544_v34 = vpop.permute.xlu1 %543  ;;  %v689_v14 = vstv %s2552_s26  ;;  %s2640_s26 = sld [smem:[#allocation6 + $0xa7]] }
 0x1ba   :  { %v542_v38 = vpop.permute.xlu0 %541  ;;  %v578_v29 = vmul.f32 %v577_v41, %v544_v34  ;;  %v617_v32 = vmul.f32 %v616_v20, %v544_v34  ;;  %v656_v5 = vmul.f32 %v655_v21, %v544_v34  ;;  %v678_v63 = vstv %s2564_s2  ;;  %s2675_s2 = sld [smem:[#allocation6 + $0xac]] }
 0x1bb   :  { %v563_v53 = vadd.f32 %v562_v8, %v559_v4  ;;  %v602_v44 = vadd.f32 %v601_v62, %v598_v40  ;;  %v641_v48 = vadd.f32 %v640_v45, %v637_v15  ;;  %v574_v59 = vmul.f32 %v573_v60, %v542_v38  ;;  %s2687_s30 = sld [smem:[#allocation6 + $0xae]] }
 0x1bc   :  { %v613_v2 = vmul.f32 %v612_v39, %v542_v38  ;;  %v652_v24 = vmul.f32 %v651_v17, %v542_v38  ;;  %v728_v4 = vstv %s2554_s19  ;;  %v717_v8 = vstv %s2566_s7  ;;  %s1787_s19 = smov 4   ;;  %s2677_s7 = sld [smem:[#allocation6 + $0xaf]] }
 0x1bd   :  { %v567_v6 = vadd.f32 %v566_v55, %v563_v53  ;;  %v606_v51 = vadd.f32 %v605_v7, %v602_v44  ;;  %v645_v35 = vadd.f32 %v644_v16, %v641_v48  ;;  %v681_v55 = vstv %s2572_s27  ;;  %s2683_s27 = sld [smem:[#allocation6 + $0xb1]] }
 0x1be   :  { %v767_v7 = vstv %s2556_s20  ;;  %v756_v62 = vstv %s2568_s8  ;;  %v685_v40 = vstv %s2570_s15  ;;  %v732_v16 = vstv %s2562_s4  ;;  %s1788_s20 = smov 124   ;;  %s2673_s4 = sld [smem:[#allocation6 + $0xbb]] }
 0x1bf   :  { %v571_v42 = vadd.f32 %v570_v0, %v567_v6  ;;  %v610_v61 = vadd.f32 %v609_v18, %v606_v51  ;;  %v649_v58 = vadd.f32 %v648_v26, %v645_v35  ;;  %v724_v41 = vstv %s2578_s16  ;;  %s2679_s8 = sld [smem:[#allocation6 + $0xb5]] }
 0x1c0   :  { %v763_v60 = vstv %s2580_s18  ;;  %v736_v18 = vstv %s2582_s9  ;;  %v771_v26 = vstv %s2584_s1  ;;  %s2681_s15 = sld [smem:[#allocation6 + $0xa8]] }
 0x1c1   :  { %v575_v30 = vadd.f32 %v574_v59, %v571_v42  ;;  %v614_v33 = vadd.f32 %v613_v2, %v610_v61  ;;  %v653_v31 = vadd.f32 %v652_v24, %v649_v58  ;;  %v775_v61 = vstv %s2586_s11  ;;  %s2689_s16 = sld [smem:[#allocation6 + $0xab]] }
 0x1c2   :  { %s2691_s18 = sld [smem:[#allocation6 + $0xb4]] }
 0x1c3   :  { %v579_v9 = vadd.f32 %v578_v29, %v575_v30  ;;  %v618_v25 = vadd.f32 %v617_v32, %v614_v33  ;;  %v657_v43 = vadd.f32 %v656_v5, %v653_v31  ;;  %v701_v33 = vstv %s2588_s3  ;;  %s2693_s9 = sld [smem:[#allocation6 + $0xbd]] }
 0x1c4   :  { %s2695_s1 = sld [smem:[#allocation6 + $0xb7]] }
 0x1c5   :  { %v582_v50 = vadd.f32 %v581_v1, %v579_v9  ;;  %v621_v22 = vadd.f32 %v620_v19, %v618_v25  ;;  %v660_v10 = vadd.f32 %v659_v28, %v657_v43  ;;  %v740_v25 = vstv %s2592_s21  ;;  %s2697_s11 = sld [smem:[#allocation6 + $0xc0]] }
 0x1c6   :  { %v779_v43 = vstv %s2599_s10  ;;  %s2699_s3 = sld [smem:[#allocation6 + $0xb8]] }
 0x1c7   :  { %v583_v54 = vmul.f32 %v2237_v3, %v582_v50  ;;  %v622_v37 = vmul.f32 %v2237_v3, %v621_v22  ;;  %v661_v11 = vmul.f32 %v2237_v3, %v660_v10  ;;  %v709_v10 = vstv %s2604_s14  ;;  %s2701_s21 = sld [smem:[#allocation6 + $0xbe]] }
 0x1c8   :  { %s2703_s10 = sld [smem:[#allocation6 + $0xc1]] }
 0x1c9   :  { %v2534_v57 = vmax.f32 %v583_v54, 0.0  ;;  %v2536_v12 = vmax.f32 %v661_v11, 0.0  ;;  %v2538_v13 = vmax.f32 %v622_v37, 0.0  ;;  %v705_v54 = vstv %s2611_s17  ;;  %s2705_s14 = sld [smem:[#allocation6 + $0xaa]] }
 0x1ca   :  { %s2709_s17 = sld [smem:[#allocation6 + $0xb3]] }
 0x1cb   :  { %665 = vrot.lane.b32.xlu2 %v2534_v57, %s3255_s5  ;;  %669 = vrot.lane.b32.xlu1 %v2536_v12, %s3255_s5  ;;  %v690_v42 = vmul.f32 %v689_v14, %v2534_v57  ;;  %v729_v59 = vmul.f32 %v728_v4, %v2534_v57  ;;  %v768_v24 = vmul.f32 %v767_v7, %v2534_v57 }
 0x1cc   :  { %667 = vrot.lane.b32.xlu0 %v2538_v13, %s3255_s5  ;;  %v698_v29 = vmul.f32 %v697_v47, %v2536_v12  ;;  %v737_v30 = vmul.f32 %v736_v18, %v2536_v12  ;;  %v694_v32 = vmul.f32 %v693_v46, %v2538_v13  ;;  %v733_v5 = vmul.f32 %v732_v16, %v2538_v13 }
 0x1cd   :  { %v772_v9 = vmul.f32 %v771_v26, %v2538_v13  ;;  %v776_v50 = vmul.f32 %v775_v61, %v2536_v12 }
 0x1d3   :  { %671 = vrot.lane.b32.xlu2 %v2534_v57, %s3256_s12  ;;  %675 = vrot.lane.b32.xlu1 %v2536_v12, %s3256_s12 }
 0x1d4   :  { %673 = vrot.lane.b32.xlu0 %v2538_v13, %s3256_s12 }
 0x225   :  { %v666_v23 = vpop.permute.xlu2 %665 }
 0x226   :  { %v679_v53 = vmul.f32 %v678_v63, %v666_v23  ;;  %v718_v44 = vmul.f32 %v717_v8, %v666_v23  ;;  %v757_v48 = vmul.f32 %v756_v62, %v666_v23  ;;  %v744_v63 = vstv %s2613_s22  ;;  %s2716_s22 = sld [smem:[#allocation6 + $0xbc]] }
 0x227   :  { %v783_v23 = vstv %s2617_s24  ;;  %v748_v62 = vstv %s2619_s25  ;;  %s2721_s24 = sld [smem:[#allocation6 + $0xb0]] }
 0x228   :  { %s2728_s25 = sld [smem:[#allocation6 + $0xad]] }
 0x22d   :  { %v672_v31 = vpop.permute.xlu2 %671 }
 0x22e   :  { %v702_v14 = vmul.f32 %v701_v33, %v672_v31  ;;  %v741_v13 = vmul.f32 %v740_v25, %v672_v31  ;;  %v780_v4 = vmul.f32 %v779_v43, %v672_v31  ;;  %v905_v33 = vstv %s2673_s4  ;;  %s2791_s4 = sld [smem:[#allocation6 + $0xd0]] }
 0x22f   :  { %v855_v31 = vstv %s2683_s27  ;;  %v823_v25 = vstv %s2687_s30  ;;  %s2801_s27 = sld [smem:[#allocation6 + $0xc6]] }
 0x230   :  { %s2805_s30 = sld [smem:[#allocation6 + $0xd8]] }
 0x23d   :  { %v670_v15 = vpop.permute.xlu1 %669 }
 0x23e   :  { %v668_v45 = vpop.permute.xlu0 %667  ;;  %v686_v17 = vmul.f32 %v685_v40, %v670_v15  ;;  %v725_v34 = vmul.f32 %v724_v41, %v670_v15  ;;  %v764_v51 = vmul.f32 %v763_v60, %v670_v15 }
 0x23f   :  { %v682_v38 = vmul.f32 %v681_v55, %v668_v45  ;;  %v721_v0 = vmul.f32 %v720_v27, %v668_v45  ;;  %v760_v39 = vmul.f32 %v759_v36, %v668_v45  ;;  %v787_v27 = vstv %s2623_s6  ;;  %s2730_s6 = sld [smem:[#allocation6 + $0xb6]] }
 0x241   :  { %v683_v6 = vadd.f32 %v682_v38, %v679_v53  ;;  %v722_v35 = vadd.f32 %v721_v0, %v718_v44  ;;  %v761_v20 = vadd.f32 %v760_v39, %v757_v48  ;;  %v713_v53 = vstv %s2628_s13  ;;  %s2734_s13 = sld [smem:[#allocation6 + $0xbf]] }
 0x242   :  { %v752_v0 = vstv %s2634_s0  ;;  %v791_v39 = vstv %s2640_s26  ;;  %s2736_s0 = sld [smem:[#allocation6 + $0xb9]] }
 0x243   :  { %v687_v21 = vadd.f32 %v686_v17, %v683_v6  ;;  %v726_v2 = vadd.f32 %v725_v34, %v722_v35  ;;  %v765_v58 = vadd.f32 %v764_v51, %v761_v20  ;;  %s2740_s26 = sld [smem:[#allocation6 + $0xc2]] }
 0x245   :  { %v691_v1 = vadd.f32 %v690_v42, %v687_v21  ;;  %v730_v19 = vadd.f32 %v729_v59, %v726_v2  ;;  %v769_v28 = vadd.f32 %v768_v24, %v765_v58  ;;  %v676_v7 = vpop.permute.xlu1 %675 }
 0x246   :  { %v674_v37 = vpop.permute.xlu0 %673  ;;  %v710_v16 = vmul.f32 %v709_v10, %v676_v7  ;;  %v749_v60 = vmul.f32 %v748_v62, %v676_v7  ;;  %v788_v38 = vmul.f32 %v787_v27, %v676_v7  ;;  %v835_v10 = vstv %s2677_s7  ;;  %s2795_s7 = sld [smem:[#allocation6 + $0xca]] }
 0x247   :  { %v695_v22 = vadd.f32 %v694_v32, %v691_v1  ;;  %v734_v11 = vadd.f32 %v733_v5, %v730_v19  ;;  %v773_v57 = vadd.f32 %v772_v9, %v769_v28  ;;  %v706_v40 = vmul.f32 %v705_v54, %v674_v37 }
 0x248   :  { %v745_v45 = vmul.f32 %v744_v63, %v674_v37  ;;  %v784_v47 = vmul.f32 %v783_v23, %v674_v37  ;;  %v819_v32 = vstv %s2689_s16  ;;  %v866_v5 = vstv %s2671_s28  ;;  %s2789_s28 = sld [smem:[#allocation6 + $0xc7]] }
 0x249   :  { %v699_v55 = vadd.f32 %v698_v29, %v695_v22  ;;  %v738_v8 = vadd.f32 %v737_v30, %v734_v11  ;;  %v777_v12 = vadd.f32 %v776_v50, %v773_v57  ;;  %v894_v19 = vstv %s2685_s29  ;;  %s2803_s29 = sld [smem:[#allocation6 + $0xcf]] }
 0x24a   :  { %v858_v28 = vstv %s2691_s18  ;;  %v897_v9 = vstv %s2693_s9  ;;  %v831_v22 = vstv %s2675_s2  ;;  %v870_v54 = vstv %s2679_s8  ;;  %s2793_s2 = sld [smem:[#allocation6 + $0xd9]] }
 0x24b   :  { %v703_v36 = vadd.f32 %v702_v14, %v699_v55  ;;  %v742_v15 = vadd.f32 %v741_v13, %v738_v8  ;;  %v781_v46 = vadd.f32 %v780_v4, %v777_v12  ;;  %v862_v11 = vstv %s2695_s1  ;;  %s2797_s8 = sld [smem:[#allocation6 + $0xcd]] }
 0x24c   :  { %v901_v57 = vstv %s2697_s11  ;;  %v874_v8 = vstv %s2699_s3  ;;  %v909_v12 = vstv %s2701_s21  ;;  %s2807_s16 = sld [smem:[#allocation6 + $0xcc]] }
 0x24d   :  { %v707_v41 = vadd.f32 %v706_v40, %v703_v36  ;;  %v746_v44 = vadd.f32 %v745_v45, %v742_v15  ;;  %v785_v48 = vadd.f32 %v784_v47, %v781_v46  ;;  %v913_v47 = vstv %s2703_s10  ;;  %s2809_s18 = sld [smem:[#allocation6 + $0xc9]] }
 0x24e   :  { %s2811_s9 = sld [smem:[#allocation6 + $0xd2]] }
 0x24f   :  { %v711_v17 = vadd.f32 %v710_v16, %v707_v41  ;;  %v750_v6 = vadd.f32 %v749_v60, %v746_v44  ;;  %v789_v18 = vadd.f32 %v788_v38, %v785_v48  ;;  %s2813_s1 = sld [smem:[#allocation6 + $0xdb]] }
 0x250   :  { %s2815_s11 = sld [smem:[#allocation6 + $0xd5]] }
 0x251   :  { %v714_v26 = vadd.f32 %v713_v53, %v711_v17  ;;  %v753_v34 = vadd.f32 %v752_v0, %v750_v6  ;;  %v792_v51 = vadd.f32 %v791_v39, %v789_v18  ;;  %v839_v39 = vstv %s2705_s14  ;;  %s2817_s3 = sld [smem:[#allocation6 + $0xde]] }
 0x252   :  { %s2819_s21 = sld [smem:[#allocation6 + $0xd6]] }
 0x253   :  { %v715_v35 = vmul.f32 %v2237_v3, %v714_v26  ;;  %v754_v20 = vmul.f32 %v2237_v3, %v753_v34  ;;  %v793_v21 = vmul.f32 %v2237_v3, %v792_v51  ;;  %v878_v34 = vstv %s2709_s17  ;;  %s2821_s10 = sld [smem:[#allocation6 + $0xdc]] }
 0x254   :  { %v917_v51 = vstv %s2716_s22  ;;  %s2823_s14 = sld [smem:[#allocation6 + $0xdf]] }
 0x255   :  { %v794_v42 = vmax.f32 %v715_v35, 0.0  ;;  %v795_v59 = vmax.f32 %v754_v20, 0.0  ;;  %v796_v61 = vmax.f32 %v793_v21, 0.0  ;;  %v847_v21 = vstv %s2721_s24  ;;  %s2825_s17 = sld [smem:[#allocation6 + $0xc8]] }
 0x256   :  { %s2829_s22 = sld [smem:[#allocation6 + $0xd1]] }
 0x257   :  { %v797_v2 = vadd.f32 %v794_v42, %v2420_v49  ;;  %v799_v58 = vadd.f32 %v795_v59, %v2422_v52  ;;  %v801_v24 = vadd.f32 %v796_v61, %v2424_v56  ;;  %v827_v49 = vstv %s2669_s23  ;;  %s2757_s23 = sld [smem:[#allocation6 + $0xc5]] }
 0x258   :  { %v816_v52 = vstv %s2681_s15  ;;  %v843_v42 = vstv %s2728_s25  ;;  %s2799_s15 = sld [smem:[#allocation6 + $0xd3]] }
 0x259   :  { %v2657_v29 = vmax.f32 %v797_v2, 0.0  ;;  %v2659_v1 = vmax.f32 %v799_v58, 0.0  ;;  %v2661_v30 = vmax.f32 %v801_v24, 0.0  ;;  %v882_v24 = vstv %s2730_s6  ;;  %s2836_s24 = sld [smem:[#allocation6 + $0xda]] }
 0x25a   :  { %s2841_s25 = sld [smem:[#allocation6 + $0xce]] }
 0x25b   :  { %803 = vrot.lane.b32.xlu2 %v2657_v29, %s1787_s19  ;;  %807 = vrot.lane.b32.xlu1 %v2661_v30, %s1787_s19  ;;  %v828_v45 = vmul.f32 %v827_v49, %v2657_v29  ;;  %v867_v46 = vmul.f32 %v866_v5, %v2657_v29  ;;  %v906_v41 = vmul.f32 %v905_v33, %v2657_v29  ;;  %v921_v49 = vstv %s2734_s13  ;;  %s2848_s6 = sld [smem:[#allocation6 + $0xcb]] }
 0x25c   :  { %805 = vrot.lane.b32.xlu0 %v2659_v1, %s1787_s19  ;;  %v836_v60 = vmul.f32 %v835_v10, %v2661_v30  ;;  %s2745_s19 = sld [smem:[#allocation6 + $0xc3]]  ;;  %v875_v44 = vmul.f32 %v874_v8, %v2661_v30  ;;  %v832_v48 = vmul.f32 %v831_v22, %v2659_v1  ;;  %v871_v0 = vmul.f32 %v870_v54, %v2659_v1 }
 0x25d   :  { %v910_v26 = vmul.f32 %v909_v12, %v2659_v1  ;;  %v914_v35 = vmul.f32 %v913_v47, %v2661_v30  ;;  %s2850_s13 = sld [smem:[#allocation6 + $0xd4]] }
 0x263   :  { %809 = vrot.lane.b32.xlu2 %v2657_v29, %s1788_s20  ;;  %813 = vrot.lane.b32.xlu1 %v2661_v30, %s1788_s20 }
 0x264   :  { %811 = vrot.lane.b32.xlu0 %v2659_v1, %s1788_s20  ;;  %s2751_s20 = sld [smem:[#allocation6 + $0xc4]] }
 0x2b5   :  { %v804_v56 = vpop.permute.xlu2 %803 }
 0x2b6   :  { %v817_v37 = vmul.f32 %v816_v52, %v804_v56  ;;  %v856_v63 = vmul.f32 %v855_v31, %v804_v56  ;;  %v895_v23 = vmul.f32 %v894_v19, %v804_v56  ;;  %v886_v19 = vstv %s2736_s0  ;;  %s2854_s0 = sld [smem:[#allocation6 + $0xdd]] }
 0x2bd   :  { %v810_v17 = vpop.permute.xlu2 %809 }
 0x2be   :  { %v840_v58 = vmul.f32 %v839_v39, %v810_v17  ;;  %v879_v56 = vmul.f32 %v878_v34, %v810_v17  ;;  %v990_v39 = vstv %s2811_s9  ;;  %v963_v34 = vstv %s2795_s7  ;;  %s2909_s7 = sld [smem:[#allocation6 + $0xe5]] }
 0x2bf   :  { %s2925_s9 = sld [smem:[#allocation6 + $0xf6]] }
 0x2cd   :  { %v808_v43 = vpop.permute.xlu1 %807 }
 0x2ce   :  { %v806_v50 = vpop.permute.xlu0 %805  ;;  %v824_v4 = vmul.f32 %v823_v25, %v808_v43  ;;  %v863_v62 = vmul.f32 %v862_v11, %v808_v43  ;;  %v902_v27 = vmul.f32 %v901_v57, %v808_v43 }
 0x2cf   :  { %v820_v14 = vmul.f32 %v819_v32, %v806_v50  ;;  %v859_v55 = vmul.f32 %v858_v28, %v806_v50  ;;  %v898_v13 = vmul.f32 %v897_v9, %v806_v50  ;;  %v918_v32 = vmul.f32 %v917_v51, %v810_v17 }
 0x2d0   :  { %v925_v28 = vstv %s2740_s26  ;;  %v1029_v17 = vstv %s2813_s1  ;;  %v967_v51 = vstv %s2797_s8  ;;  %s2856_s26 = sld [smem:[#allocation6 + $0xd7]] }
 0x2d1   :  { %v821_v7 = vadd.f32 %v820_v14, %v817_v37  ;;  %v860_v36 = vadd.f32 %v859_v55, %v856_v63  ;;  %v899_v40 = vadd.f32 %v898_v13, %v895_v23  ;;  %v851_v37 = vstv %s2745_s19  ;;  %s2860_s19 = sld [smem:[#allocation6 + $0xe0]] }
 0x2d2   :  { %v890_v55 = vstv %s2751_s20  ;;  %v929_v13 = vstv %s2757_s23  ;;  %s2865_s20 = sld [smem:[#allocation6 + $0xe1]] }
 0x2d3   :  { %v825_v15 = vadd.f32 %v824_v4, %v821_v7  ;;  %v864_v16 = vadd.f32 %v863_v62, %v860_v36  ;;  %v903_v53 = vadd.f32 %v902_v27, %v899_v40  ;;  %s2871_s23 = sld [smem:[#allocation6 + $0xe2]] }
 0x2d4   :  { %s2911_s8 = sld [smem:[#allocation6 + $0xee]] }
 0x2d5   :  { %v829_v38 = vadd.f32 %v828_v45, %v825_v15  ;;  %v868_v6 = vadd.f32 %v867_v46, %v864_v16  ;;  %v907_v18 = vadd.f32 %v906_v41, %v903_v53  ;;  %v814_v5 = vpop.permute.xlu1 %813  ;;  %v959_v16 = vstv %s2789_s28  ;;  %s2877_s28 = sld [smem:[#allocation6 + $0xe3]] }
 0x2d6   :  { %v812_v59 = vpop.permute.xlu0 %811  ;;  %v848_v54 = vmul.f32 %v847_v21, %v814_v5  ;;  %v887_v57 = vmul.f32 %v886_v19, %v814_v5  ;;  %v926_v14 = vmul.f32 %v925_v28, %v814_v5  ;;  %v948_v53 = vstv %s2801_s27  ;;  %s2915_s27 = sld [smem:[#allocation6 + $0xe8]] }
 0x2d7   :  { %v833_v20 = vadd.f32 %v832_v48, %v829_v38  ;;  %v872_v61 = vadd.f32 %v871_v0, %v868_v6  ;;  %v911_v2 = vadd.f32 %v910_v26, %v907_v18  ;;  %v844_v25 = vmul.f32 %v843_v42, %v812_v59  ;;  %s2927_s1 = sld [smem:[#allocation6 + $0xea]] }
 0x2d8   :  { %v883_v50 = vmul.f32 %v882_v24, %v812_v59  ;;  %v922_v10 = vmul.f32 %v921_v49, %v812_v59  ;;  %v998_v38 = vstv %s2791_s4  ;;  %v987_v48 = vstv %s2803_s29  ;;  %s3258_s4 = smov 8   ;;  %s2917_s29 = sld [smem:[#allocation6 + $0xeb]] }
 0x2d9   :  { %v837_v52 = vadd.f32 %v836_v60, %v833_v20  ;;  %v876_v33 = vadd.f32 %v875_v44, %v872_v61  ;;  %v915_v31 = vadd.f32 %v914_v35, %v911_v2  ;;  %v951_v60 = vstv %s2809_s18  ;;  %s2923_s18 = sld [smem:[#allocation6 + $0xed]] }
 0x2da   :  { %v1037_v44 = vstv %s2793_s2  ;;  %v1026_v0 = vstv %s2805_s30  ;;  %v955_v6 = vstv %s2807_s16  ;;  %v1002_v35 = vstv %s2799_s15  ;;  %s1789_s2 = smov 120   ;;  %s2913_s15 = sld [smem:[#allocation6 + $0xf7]] }
 0x2db   :  { %v841_v9 = vadd.f32 %v840_v58, %v837_v52  ;;  %v880_v43 = vadd.f32 %v879_v56, %v876_v33  ;;  %v919_v22 = vadd.f32 %v918_v32, %v915_v31  ;;  %v994_v21 = vstv %s2815_s11  ;;  %s2919_s30 = sld [smem:[#allocation6 + $0xf1]] }
 0x2dc   :  { %v1033_v42 = vstv %s2817_s3  ;;  %v1006_v56 = vstv %s2819_s21  ;;  %v1041_v32 = vstv %s2821_s10  ;;  %s2921_s16 = sld [smem:[#allocation6 + $0xe4]] }
 0x2dd   :  { %v845_v11 = vadd.f32 %v844_v25, %v841_v9  ;;  %v884_v63 = vadd.f32 %v883_v50, %v880_v43  ;;  %v923_v23 = vadd.f32 %v922_v10, %v919_v22  ;;  %v1045_v43 = vstv %s2823_s14  ;;  %s2929_s11 = sld [smem:[#allocation6 + $0xe7]] }
 0x2de   :  { %s2931_s3 = sld [smem:[#allocation6 + $0xf0]] }
 0x2df   :  { %v849_v4 = vadd.f32 %v848_v54, %v845_v11  ;;  %v888_v7 = vadd.f32 %v887_v57, %v884_v63  ;;  %v927_v8 = vadd.f32 %v926_v14, %v923_v23  ;;  %v971_v63 = vstv %s2825_s17  ;;  %s2933_s21 = sld [smem:[#allocation6 + $0xf9]] }
 0x2e0   :  { %s2935_s10 = sld [smem:[#allocation6 + $0xf3]] }
 0x2e1   :  { %v852_v12 = vadd.f32 %v851_v37, %v849_v4  ;;  %v891_v62 = vadd.f32 %v890_v55, %v888_v7  ;;  %v930_v27 = vadd.f32 %v929_v13, %v927_v8  ;;  %v1010_v7 = vstv %s2829_s22  ;;  %s2937_s14 = sld [smem:[#allocation6 + $0xfc]] }
 0x2e2   :  { %v1049_v8 = vstv %s2836_s24  ;;  %s2939_s17 = sld [smem:[#allocation6 + $0xf4]] }
 0x2e3   :  { %v853_v36 = vmul.f32 %v2237_v3, %v852_v12  ;;  %v892_v40 = vmul.f32 %v2237_v3, %v891_v62  ;;  %v931_v15 = vmul.f32 %v2237_v3, %v930_v27  ;;  %v979_v27 = vstv %s2841_s25  ;;  %s2941_s22 = sld [smem:[#allocation6 + $0xfa]] }
 0x2e4   :  { %s2943_s24 = sld [smem:[#allocation6 + $0xfd]] }
 0x2e5   :  { %v2771_v45 = vmax.f32 %v853_v36, 0.0  ;;  %v2773_v46 = vmax.f32 %v931_v15, 0.0  ;;  %v2775_v47 = vmax.f32 %v892_v40, 0.0  ;;  %v975_v36 = vstv %s2848_s6  ;;  %s2945_s25 = sld [smem:[#allocation6 + $0xe6]] }
 0x2e6   :  { %s2949_s6 = sld [smem:[#allocation6 + $0xef]] }
 0x2e7   :  { %935 = vrot.lane.b32.xlu2 %v2771_v45, %s3255_s5  ;;  %939 = vrot.lane.b32.xlu1 %v2773_v46, %s3255_s5  ;;  %v960_v9 = vmul.f32 %v959_v16, %v2771_v45  ;;  %v999_v25 = vmul.f32 %v998_v38, %v2771_v45  ;;  %v1038_v10 = vmul.f32 %v1037_v44, %v2771_v45 }
 0x2e8   :  { %937 = vrot.lane.b32.xlu0 %v2775_v47, %s3255_s5  ;;  %v968_v54 = vmul.f32 %v967_v51, %v2773_v46  ;;  %v1007_v11 = vmul.f32 %v1006_v56, %v2773_v46  ;;  %v964_v57 = vmul.f32 %v963_v34, %v2775_v47  ;;  %v1003_v14 = vmul.f32 %v1002_v35, %v2775_v47 }
 0x2e9   :  { %v1042_v4 = vmul.f32 %v1041_v32, %v2775_v47  ;;  %v1046_v12 = vmul.f32 %v1045_v43, %v2773_v46 }
 0x2ef   :  { %941 = vrot.lane.b32.xlu2 %v2771_v45, %s3256_s12  ;;  %945 = vrot.lane.b32.xlu1 %v2773_v46, %s3256_s12 }
 0x2f0   :  { %943 = vrot.lane.b32.xlu0 %v2775_v47, %s3256_s12 }
 0x341   :  { %v936_v41 = vpop.permute.xlu2 %935 }
 0x342   :  { %v949_v20 = vmul.f32 %v948_v53, %v936_v41  ;;  %v988_v61 = vmul.f32 %v987_v48, %v936_v41  ;;  %v1027_v2 = vmul.f32 %v1026_v0, %v936_v41  ;;  %v1014_v53 = vstv %s2850_s13  ;;  %s2956_s13 = sld [smem:[#allocation6 + $0xf8]] }
 0x343   :  { %v1053_v41 = vstv %s2854_s0  ;;  %v1018_v0 = vstv %s2856_s26  ;;  %s2961_s0 = sld [smem:[#allocation6 + $0xec]] }
 0x344   :  { %s2968_s26 = sld [smem:[#allocation6 + $0xe9]] }
 0x349   :  { %v942_v23 = vpop.permute.xlu2 %941 }
 0x34a   :  { %v972_v16 = vmul.f32 %v971_v63, %v942_v23  ;;  %v1011_v47 = vmul.f32 %v1010_v7, %v942_v23  ;;  %v1050_v38 = vmul.f32 %v1049_v8, %v942_v23  ;;  %v1175_v63 = vstv %s2913_s15  ;;  %s3031_s15 = sld [smem:[#allocation6 + $0x10c]] }
 0x34b   :  { %v1125_v23 = vstv %s2923_s18  ;;  %v1093_v7 = vstv %s2927_s1  ;;  %s3043_s18 = sld [smem:[#allocation6 + $0x10b]] }
 0x34c   :  { %s3049_s1 = sld [smem:[#allocation6 + $0x105]] }
 0x359   :  { %v940_v18 = vpop.permute.xlu1 %939 }
 0x35a   :  { %v938_v26 = vpop.permute.xlu0 %937  ;;  %v956_v49 = vmul.f32 %v955_v6, %v940_v18  ;;  %v995_v5 = vmul.f32 %v994_v21, %v940_v18  ;;  %v1034_v33 = vmul.f32 %v1033_v42, %v940_v18 }
 0x35b   :  { %v952_v59 = vmul.f32 %v951_v60, %v938_v26  ;;  %v991_v58 = vmul.f32 %v990_v39, %v938_v26  ;;  %v1030_v24 = vmul.f32 %v1029_v17, %v938_v26  ;;  %v1057_v39 = vstv %s2860_s19  ;;  %s2970_s19 = sld [smem:[#allocation6 + $0xf2]] }
 0x35d   :  { %v953_v52 = vadd.f32 %v952_v59, %v949_v20  ;;  %v992_v31 = vadd.f32 %v991_v58, %v988_v61  ;;  %v1031_v19 = vadd.f32 %v1030_v24, %v1027_v2  ;;  %v983_v20 = vstv %s2865_s20  ;;  %s2974_s20 = sld [smem:[#allocation6 + $0xfb]] }
 0x35e   :  { %v1022_v58 = vstv %s2871_s23  ;;  %v1061_v24 = vstv %s2877_s28  ;;  %s2976_s23 = sld [smem:[#allocation6 + $0xf5]] }
 0x35f   :  { %v957_v28 = vadd.f32 %v956_v49, %v953_v52  ;;  %v996_v50 = vadd.f32 %v995_v5, %v992_v31  ;;  %v1035_v22 = vadd.f32 %v1034_v33, %v1031_v19  ;;  %s2980_s28 = sld [smem:[#allocation6 + $0xfe]] }
 0x361   :  { %v961_v37 = vadd.f32 %v960_v9, %v957_v28  ;;  %v1000_v55 = vadd.f32 %v999_v25, %v996_v50  ;;  %v1039_v13 = vadd.f32 %v1038_v10, %v1035_v22  ;;  %v946_v44 = vpop.permute.xlu1 %945 }
 0x362   :  { %v944_v40 = vpop.permute.xlu0 %943  ;;  %v980_v35 = vmul.f32 %v979_v27, %v946_v44  ;;  %v1019_v42 = vmul.f32 %v1018_v0, %v946_v44  ;;  %v1058_v59 = vmul.f32 %v1057_v39, %v946_v44  ;;  %v1105_v27 = vstv %s2917_s29  ;;  %s3035_s29 = sld [smem:[#allocation6 + $0x106]] }
 0x363   :  { %v965_v62 = vadd.f32 %v964_v57, %v961_v37  ;;  %v1004_v15 = vadd.f32 %v1003_v14, %v1000_v55  ;;  %v1043_v45 = vadd.f32 %v1042_v4, %v1039_v13  ;;  %v976_v6 = vmul.f32 %v975_v36, %v944_v40 }
 0x364   :  { %v1015_v26 = vmul.f32 %v1014_v53, %v944_v40  ;;  %v1054_v51 = vmul.f32 %v1053_v41, %v944_v40  ;;  %v1089_v57 = vstv %s2929_s11  ;;  %v1136_v14 = vstv %s2911_s8  ;;  %s3029_s8 = sld [smem:[#allocation6 + $0x103]] }
 0x365   :  { %v969_v60 = vadd.f32 %v968_v54, %v965_v62  ;;  %v1008_v48 = vadd.f32 %v1007_v11, %v1004_v15  ;;  %v1047_v46 = vadd.f32 %v1046_v12, %v1043_v45  ;;  %v1164_v55 = vstv %s2925_s9  ;;  %s3045_s9 = sld [smem:[#allocation6 + $0x114]] }
 0x366   :  { %v1128_v13 = vstv %s2931_s3  ;;  %v1167_v4 = vstv %s2933_s21  ;;  %v1101_v62 = vstv %s2915_s27  ;;  %v1140_v36 = vstv %s2919_s30  ;;  %s3033_s27 = sld [smem:[#allocation6 + $0x115]] }
 0x367   :  { %v973_v17 = vadd.f32 %v972_v16, %v969_v60  ;;  %v1012_v18 = vadd.f32 %v1011_v47, %v1008_v48  ;;  %v1051_v34 = vadd.f32 %v1050_v38, %v1047_v46  ;;  %v1132_v15 = vstv %s2935_s10  ;;  %s3037_s30 = sld [smem:[#allocation6 + $0x109]] }
 0x368   :  { %v1171_v45 = vstv %s2937_s14  ;;  %v1144_v48 = vstv %s2939_s17  ;;  %v1179_v46 = vstv %s2941_s22  ;;  %s3051_s11 = sld [smem:[#allocation6 + $0x10e]] }
 0x369   :  { %v977_v21 = vadd.f32 %v976_v6, %v973_v17  ;;  %v1016_v61 = vadd.f32 %v1015_v26, %v1012_v18  ;;  %v1055_v2 = vadd.f32 %v1054_v51, %v1051_v34  ;;  %v1183_v51 = vstv %s2943_s24  ;;  %s3053_s3 = sld [smem:[#allocation6 + $0x117]] }
 0x36a   :  { %s3055_s21 = sld [smem:[#allocation6 + $0x111]] }
 0x36b   :  { %v981_v49 = vadd.f32 %v980_v35, %v977_v21  ;;  %v1020_v52 = vadd.f32 %v1019_v42, %v1016_v61  ;;  %v1059_v56 = vadd.f32 %v1058_v59, %v1055_v2  ;;  %s3057_s10 = sld [smem:[#allocation6 + $0x11a]] }
 0x36c   :  { %s3059_s14 = sld [smem:[#allocation6 + $0x112]] }
 0x36d   :  { %v984_v32 = vadd.f32 %v983_v20, %v981_v49  ;;  %v1023_v5 = vadd.f32 %v1022_v58, %v1020_v52  ;;  %v1062_v33 = vadd.f32 %v1061_v24, %v1059_v56  ;;  %v1109_v24 = vstv %s2945_s25  ;;  %s3061_s17 = sld [smem:[#allocation6 + $0x118]] }
 0x36e   :  { %s3063_s22 = sld [smem:[#allocation6 + $0x11b]] }
 0x36f   :  { %v985_v31 = vmul.f32 %v2237_v3, %v984_v32  ;;  %v1024_v19 = vmul.f32 %v2237_v3, %v1023_v5  ;;  %v1063_v28 = vmul.f32 %v2237_v3, %v1062_v33  ;;  %v1148_v5 = vstv %s2949_s6  ;;  %s3065_s24 = sld [smem:[#allocation6 + $0x104]] }
 0x370   :  { %v1187_v33 = vstv %s2956_s13  ;;  %s3069_s25 = sld [smem:[#allocation6 + $0x10d]] }
 0x371   :  { %v1064_v9 = vmax.f32 %v985_v31, 0.0  ;;  %v1065_v25 = vmax.f32 %v1024_v19, 0.0  ;;  %v1066_v43 = vmax.f32 %v1063_v28, 0.0  ;;  %v1117_v28 = vstv %s2961_s0  ;;  %s3076_s6 = sld [smem:[#allocation6 + $0x116]] }
 0x372   :  { %s3081_s13 = sld [smem:[#allocation6 + $0x10a]] }
 0x373   :  { %v1067_v50 = vadd.f32 %v1064_v9, %v2657_v29  ;;  %v1069_v22 = vadd.f32 %v1065_v25, %v2659_v1  ;;  %v1071_v10 = vadd.f32 %v1066_v43, %v2661_v30  ;;  %v1097_v29 = vstv %s2909_s7  ;;  %s2997_s7 = sld [smem:[#allocation6 + $0x101]] }
 0x374   :  { %v1086_v1 = vstv %s2921_s16  ;;  %v1113_v9 = vstv %s2968_s26  ;;  %s3041_s16 = sld [smem:[#allocation6 + $0x102]] }
 0x375   :  { %v2894_v54 = vmax.f32 %v1067_v50, 0.0  ;;  %v2896_v37 = vmax.f32 %v1069_v22, 0.0  ;;  %v2898_v11 = vmax.f32 %v1071_v10, 0.0  ;;  %v1152_v10 = vstv %s2970_s19  ;;  %s3088_s0 = sld [smem:[#allocation6 + $0x107]] }
 0x376   :  { %s3090_s26 = sld [smem:[#allocation6 + $0x110]] }
 0x377   :  { %1073 = vrot.lane.b32.xlu2 %v2894_v54, %s3258_s4  ;;  %1077 = vrot.lane.b32.xlu1 %v2898_v11, %s3258_s4  ;;  %v1098_v26 = vmul.f32 %v1097_v29, %v2894_v54  ;;  %v1137_v34 = vmul.f32 %v1136_v14, %v2894_v54  ;;  %v1176_v21 = vmul.f32 %v1175_v63, %v2894_v54  ;;  %v1191_v29 = vstv %s2974_s20  ;;  %s3094_s19 = sld [smem:[#allocation6 + $0x119]] }
 0x378   :  { %1075 = vrot.lane.b32.xlu0 %v2896_v37, %s3258_s4  ;;  %v1106_v42 = vmul.f32 %v1105_v27, %v2898_v11  ;;  %s2985_s4 = sld [smem:[#allocation6 + $0xff]]  ;;  %v1145_v61 = vmul.f32 %v1144_v48, %v2898_v11  ;;  %v1102_v2 = vmul.f32 %v1101_v62, %v2896_v37  ;;  %v1141_v58 = vmul.f32 %v1140_v36, %v2896_v37 }
 0x379   :  { %v1180_v32 = vmul.f32 %v1179_v46, %v2896_v37  ;;  %v1184_v31 = vmul.f32 %v1183_v51, %v2898_v11  ;;  %s3096_s20 = sld [smem:[#allocation6 + $0x113]] }
 0x37f   :  { %1079 = vrot.lane.b32.xlu2 %v2894_v54, %s1789_s2  ;;  %1083 = vrot.lane.b32.xlu1 %v2898_v11, %s1789_s2 }
 0x380   :  { %1081 = vrot.lane.b32.xlu0 %v2896_v37, %s1789_s2  ;;  %s2991_s2 = sld [smem:[#allocation6 + $0x100]] }
 0x3d1   :  { %v1074_v30 = vpop.permute.xlu2 %1073 }
 0x3d2   :  { %v1087_v40 = vmul.f32 %v1086_v1, %v1074_v30  ;;  %v1126_v53 = vmul.f32 %v1125_v23, %v1074_v30  ;;  %v1165_v41 = vmul.f32 %v1164_v55, %v1074_v30  ;;  %v1156_v55 = vstv %s2976_s23  ;;  %s3100_s23 = sld [smem:[#allocation6 + $0x11c]] }
 0x3d9   :  { %v1080_v49 = vpop.permute.xlu2 %1079 }
 0x3da   :  { %v1110_v22 = vmul.f32 %v1109_v24, %v1080_v49  ;;  %v1149_v30 = vmul.f32 %v1148_v5, %v1080_v49  ;;  %v1260_v24 = vstv %s3051_s11  ;;  %v1233_v5 = vstv %s3035_s29  ;;  %s3259_s29 = sld [smem:[#allocation52_spill]] }
 0x3e9   :  { %v1078_v8 = vpop.permute.xlu1 %1077 }
 0x3ea   :  { %v1076_v12 = vpop.permute.xlu0 %1075  ;;  %v1094_v38 = vmul.f32 %v1093_v7, %v1078_v8  ;;  %v1133_v0 = vmul.f32 %v1132_v15, %v1078_v8  ;;  %v1172_v39 = vmul.f32 %v1171_v45, %v1078_v8 }
 0x3eb   :  { %v1090_v16 = vmul.f32 %v1089_v57, %v1076_v12  ;;  %v1129_v60 = vmul.f32 %v1128_v13, %v1076_v12  ;;  %v1168_v47 = vmul.f32 %v1167_v4, %v1076_v12  ;;  %v1188_v57 = vmul.f32 %v1187_v33, %v1080_v49 }
 0x3ec   :  { %v1195_v13 = vstv %s2980_s28  ;;  %v1299_v49 = vstv %s3053_s3  ;;  %v1237_v33 = vstv %s3037_s30  ;;  %s3108_s28 = sld [smem:[#allocation6 + $0x11d]]  ;;  %s1371_s30 = sshll.u32 %s3259_s29, 4  ;;  %s1372_s30 = int_to_ptr.hbm [resolvable:$true] %s1371_s30 }
 0x3ed   :  { %v1091_v44 = vadd.f32 %v1090_v16, %v1087_v40  ;;  %v1130_v17 = vadd.f32 %v1129_v60, %v1126_v53  ;;  %v1169_v6 = vadd.f32 %v1168_v47, %v1165_v41  ;;  %v1121_v40 = vstv %s2985_s4  ;;  %s3112_s4 = sld [smem:[#allocation6 + $0x11f]] }
 0x3ee   :  { %v1160_v60 = vstv %s2991_s2  ;;  %v1199_v47 = vstv %s2997_s7  ;;  %s3117_s2 = sld [smem:[#allocation6 + $0x11e]]  ;;  %s1790_s7 = smov [#allocation9]  }
 0x3ef   :  { %v1095_v18 = vadd.f32 %v1094_v38, %v1091_v44  ;;  %v1134_v35 = vadd.f32 %v1133_v0, %v1130_v17  ;;  %v1173_v20 = vadd.f32 %v1172_v39, %v1169_v6 }
 0x3f1   :  { %v1099_v59 = vadd.f32 %v1098_v26, %v1095_v18  ;;  %v1138_v52 = vadd.f32 %v1137_v34, %v1134_v35  ;;  %v1177_v56 = vadd.f32 %v1176_v21, %v1173_v20  ;;  %v1084_v14 = vpop.permute.xlu1 %1083  ;;  %v1229_v35 = vstv %s3029_s8  ;;  %s1369_s8 = sshll.u32 %s1790_s7, 4  ;;  %s1370_s8 = int_to_ptr.vmem [resolvable:$true] %s1369_s8 }
 0x3f2   :  { %v1082_v25 = vpop.permute.xlu0 %1081  ;;  %v1118_v36 = vmul.f32 %v1117_v28, %v1084_v14  ;;  %v1157_v45 = vmul.f32 %v1156_v55, %v1084_v14  ;;  %v1196_v16 = vmul.f32 %v1195_v13, %v1084_v14  ;;  %v1218_v20 = vstv %s3041_s16 }
 0x3f3   :  { %v1103_v19 = vadd.f32 %v1102_v2, %v1099_v59  ;;  %v1142_v43 = vadd.f32 %v1141_v58, %v1138_v52  ;;  %v1181_v50 = vadd.f32 %v1180_v32, %v1177_v56  ;;  %v1114_v7 = vmul.f32 %v1113_v9, %v1082_v25 }
 0x3f4   :  { %v1153_v12 = vmul.f32 %v1152_v10, %v1082_v25  ;;  %v1192_v27 = vmul.f32 %v1191_v29, %v1082_v25  ;;  %v1268_v59 = vstv %s3031_s15  ;;  %v1257_v2 = vstv %s3043_s18 }
 0x3f5   :  { %v1107_v1 = vadd.f32 %v1106_v42, %v1103_v19  ;;  %v1146_v63 = vadd.f32 %v1145_v61, %v1142_v43  ;;  %v1185_v23 = vadd.f32 %v1184_v31, %v1181_v50  ;;  %v1221_v42 = vstv %s3049_s1 }
 0x3f6   :  { %v1307_v61 = vstv %s3033_s27  ;;  %v1296_v58 = vstv %s3045_s9  ;;  %v1264_v28 = vstv %s3055_s21  ;;  %v1303_v9 = vstv %s3057_s10 }
 0x3f7   :  { %v1111_v4 = vadd.f32 %v1110_v22, %v1107_v1  ;;  %v1150_v8 = vadd.f32 %v1149_v30, %v1146_v63  ;;  %v1189_v62 = vadd.f32 %v1188_v57, %v1185_v23  ;;  %v1276_v30 = vstv %s3059_s14 }
 0x3f8   :  { %v1311_v57 = vstv %s3061_s17 }
 0x3f9   :  { %v1115_v15 = vadd.f32 %v1114_v7, %v1111_v4  ;;  %v1154_v53 = vadd.f32 %v1153_v12, %v1150_v8  ;;  %v1193_v41 = vadd.f32 %v1192_v27, %v1189_v62  ;;  %v1315_v8 = vstv %s3063_s22 }
 0x3fb   :  { %v1119_v38 = vadd.f32 %v1118_v36, %v1115_v15  ;;  %v1158_v44 = vadd.f32 %v1157_v45, %v1154_v53  ;;  %v1197_v48 = vadd.f32 %v1196_v16, %v1193_v41  ;;  %v1241_v53 = vstv %s3065_s24 }
 0x3fd   :  { %v1122_v46 = vadd.f32 %v1121_v40, %v1119_v38  ;;  %v1161_v0 = vadd.f32 %v1160_v60, %v1158_v44  ;;  %v1200_v39 = vadd.f32 %v1199_v47, %v1197_v48  ;;  %v1280_v44 = vstv %s3069_s25 }
 0x3fe   :  { %v1319_v48 = vstv %s3076_s6 }
 0x3ff   :  { %v1123_v17 = vmul.f32 %v2237_v3, %v1122_v46  ;;  %v1162_v6 = vmul.f32 %v2237_v3, %v1161_v0  ;;  %v1201_v18 = vmul.f32 %v2237_v3, %v1200_v39  ;;  %v1249_v39 = vstv %s3081_s13 }
 0x401   :  { %v3011_v26 = vmax.f32 %v1123_v17, 0.0  ;;  %v3013_v34 = vmax.f32 %v1201_v18, 0.0  ;;  %v3015_v51 = vmax.f32 %v1162_v6, 0.0  ;;  %v1245_v17 = vstv %s3088_s0 }
 0x403   :  { %1205 = vrot.lane.b32.xlu2 %v3011_v26, %s3255_s5  ;;  %1209 = vrot.lane.b32.xlu1 %v3013_v34, %s3255_s5  ;;  %v1230_v4 = vmul.f32 %v1229_v35, %v3011_v26  ;;  %v1269_v7 = vmul.f32 %v1268_v59, %v3011_v26  ;;  %v1308_v27 = vmul.f32 %v1307_v61, %v3011_v26 }
 0x404   :  { %1207 = vrot.lane.b32.xlu0 %v3015_v51, %s3255_s5  ;;  %s3039_s5 = sld [smem:[#allocation6 + $0x10f]]  ;;  %v1238_v36 = vmul.f32 %v1237_v33, %v3013_v34  ;;  %v1277_v15 = vmul.f32 %v1276_v30, %v3013_v34  ;;  %v1234_v45 = vmul.f32 %v1233_v5, %v3015_v51  ;;  %v1312_v38 = vmul.f32 %v1311_v57, %v3015_v51 }
 0x405   :  { %v1316_v46 = vmul.f32 %v1315_v8, %v3013_v34 }
 0x40a   :  { %v1272_v31 = vstv %s3039_s5 }
 0x40b   :  { %1211 = vrot.lane.b32.xlu2 %v3011_v26, %s3256_s12  ;;  %1215 = vrot.lane.b32.xlu1 %v3013_v34, %s3256_s12  ;;  %v1273_v16 = vmul.f32 %v1272_v31, %v3015_v51 }
 0x40c   :  { %1213 = vrot.lane.b32.xlu0 %v3015_v51, %s3256_s12  ;;  %s3047_s12 = sld [smem:[#allocation6 + $0x108]] }
 0x412   :  { %v1225_v52 = vstv %s3047_s12 }
 0x45d   :  { %v1206_v21 = vpop.permute.xlu2 %1205 }
 0x45e   :  { %v1219_v19 = vmul.f32 %v1218_v20, %v1206_v21  ;;  %v1258_v43 = vmul.f32 %v1257_v2, %v1206_v21  ;;  %v1297_v50 = vmul.f32 %v1296_v58, %v1206_v21  ;;  %v1284_v20 = vstv %s3090_s26 }
 0x45f   :  { %v1323_v21 = vstv %s3094_s19  ;;  %v1288_v58 = vstv %s3096_s20 }
 0x465   :  { %v1212_v41 = vpop.permute.xlu2 %1211 }
 0x466   :  { %v1242_v35 = vmul.f32 %v1241_v53, %v1212_v41  ;;  %v1320_v59 = vmul.f32 %v1319_v48, %v1212_v41 }
 0x475   :  { %v1210_v56 = vpop.permute.xlu1 %1209 }
 0x476   :  { %v1208_v32 = vpop.permute.xlu0 %1207  ;;  %v1226_v29 = vmul.f32 %v1225_v52, %v1210_v56  ;;  %v1265_v14 = vmul.f32 %v1264_v28, %v1210_v56  ;;  %v1304_v63 = vmul.f32 %v1303_v9, %v1210_v56  ;;  %v1253_v28 = vstv %s3108_s28 }
 0x477   :  { %v1222_v25 = vmul.f32 %v1221_v42, %v1208_v32  ;;  %v1261_v22 = vmul.f32 %v1260_v24, %v1208_v32  ;;  %v1300_v10 = vmul.f32 %v1299_v49, %v1208_v32  ;;  %v1281_v42 = vmul.f32 %v1280_v44, %v1212_v41 }
 0x478   :  { %v1327_v24 = vstv %s3100_s23 }
 0x479   :  { %v1223_v1 = vadd.f32 %v1222_v25, %v1219_v19  ;;  %v1262_v23 = vadd.f32 %v1261_v22, %v1258_v43  ;;  %v1301_v55 = vadd.f32 %v1300_v10, %v1297_v50  ;;  %v1331_v10 = vstv %s3112_s4 }
 0x47b   :  { %v1227_v13 = vadd.f32 %v1226_v29, %v1223_v1  ;;  %v1266_v12 = vadd.f32 %v1265_v14, %v1262_v23  ;;  %v1305_v62 = vadd.f32 %v1304_v63, %v1301_v55  ;;  %v1292_v29 = vstv %s3117_s2 }
 0x47d   :  { %v1231_v40 = vadd.f32 %v1230_v4, %v1227_v13  ;;  %v1270_v60 = vadd.f32 %v1269_v7, %v1266_v12  ;;  %v1309_v47 = vadd.f32 %v1308_v27, %v1305_v62  ;;  %v1216_v61 = vpop.permute.xlu1 %1215 }
 0x47e   :  { %v1214_v6 = vpop.permute.xlu0 %1213  ;;  %v1250_v31 = vmul.f32 %v1249_v39, %v1216_v61  ;;  %v1289_v9 = vmul.f32 %v1288_v58, %v1216_v61  ;;  %v1328_v25 = vmul.f32 %v1327_v24, %v1216_v61 }
 0x47f   :  { %v1235_v0 = vadd.f32 %v1234_v45, %v1231_v40  ;;  %v1274_v18 = vadd.f32 %v1273_v16, %v1270_v60  ;;  %v1313_v26 = vadd.f32 %v1312_v38, %v1309_v47  ;;  %v1246_v52 = vmul.f32 %v1245_v17, %v1214_v6  ;;  %v1352_v45 = vld [vmem:[#allocation7] sm:$0xff] }
 0x480   :  { %v1285_v32 = vmul.f32 %v1284_v20, %v1214_v6  ;;  %v1324_v33 = vmul.f32 %v1323_v21, %v1214_v6  ;;  %v1353_v16 = vperm.slane %v1352_v45, 0  ;;  %v1355_v47 = vperm.slane %v1352_v45, 3 }
 0x481   :  { %v1239_v51 = vadd.f32 %v1238_v36, %v1235_v0  ;;  %v1278_v2 = vadd.f32 %v1277_v15, %v1274_v18  ;;  %v1317_v34 = vadd.f32 %v1316_v46, %v1313_v26 }
 0x483   :  { %v1243_v49 = vadd.f32 %v1242_v35, %v1239_v51  ;;  %v1282_v56 = vadd.f32 %v1281_v42, %v1278_v2  ;;  %v1321_v5 = vadd.f32 %v1320_v59, %v1317_v34 }
 0x485   :  { %v1247_v19 = vadd.f32 %v1246_v52, %v1243_v49  ;;  %v1286_v43 = vadd.f32 %v1285_v32, %v1282_v56  ;;  %v1325_v50 = vadd.f32 %v1324_v33, %v1321_v5 }
 0x487   :  { %v1251_v22 = vadd.f32 %v1250_v31, %v1247_v19  ;;  %v1290_v1 = vadd.f32 %v1289_v9, %v1286_v43  ;;  %v1329_v30 = vadd.f32 %v1328_v25, %v1325_v50 }
 0x489   :  { %v1254_v57 = vadd.f32 %v1253_v28, %v1251_v22  ;;  %v1332_v14 = vadd.f32 %v1331_v10, %v1329_v30  ;;  %v1293_v63 = vadd.f32 %v1292_v29, %v1290_v1 }
 0x48b   :  { %v1255_v23 = vmul.f32 %v2237_v3, %v1254_v57  ;;  %v1333_v55 = vmul.f32 %v2237_v3, %v1332_v14  ;;  %v1294_v13 = vmul.f32 %v2237_v3, %v1293_v63  ;;  %v1357_v3 = vperm.slane %v1352_v45, 1 }
 0x48d   :  { %v1334_v4 = vmax.f32 %v1255_v23, 0.0  ;;  %v1336_v7 = vmax.f32 %v1333_v55, 0.0  ;;  %v1335_v8 = vmax.f32 %v1294_v13, 0.0 }
 0x48f   :  { %v1337_v12 = vadd.f32 %v1334_v4, %v2894_v54  ;;  %v1341_v62 = vadd.f32 %v1336_v7, %v2898_v11  ;;  %v1339_v27 = vadd.f32 %v1335_v8, %v2896_v37  ;;  %v1360_v54 = vperm.slane %v1352_v45, 2 }
 0x491   :  { %v1338_v36 = vmax.f32 %v1337_v12, 0.0  ;;  %v1342_v40 = vmax.f32 %v1341_v62, 0.0  ;;  %v1340_v15 = vmax.f32 %v1339_v27, 0.0 }
 0x493   :  { %1343 = vadd.xlane.f32.xlu2 %v1338_v36  ;;  %1349 = vadd.xlane.f32.xlu1 %v1342_v40 }
 0x494   :  { %1346 = vadd.xlane.f32.xlu0 %v1340_v15 }
 0x506   :  { %v1344_v53 = vpop.xlane.xlu2 %1343  ;;  %v1350_v41 = vpop.xlane.xlu1 %1349 }
 0x507   :  { %v1347_v60 = vpop.xlane.xlu0 %1346  ;;  %v1345_v38 = vmul.f32 0.0625, %v1344_v53  ;;  %v1351_v48 = vmul.f32 0.0625, %v1350_v41 }
 0x508   :  { %v1348_v44 = vmul.f32 0.0625, %v1347_v60 }
 0x509   :  { %v1354_v11 = vmul.f32 %v1353_v16, %v1345_v38  ;;  %v1361_v0 = vmul.f32 %v1360_v54, %v1351_v48 }
 0x50a   :  { %v1358_v46 = vmul.f32 %v1357_v3, %v1348_v44 }
 0x50b   :  { %v1356_v37 = vadd.f32 %v1355_v47, %v1354_v11 }
 0x50d   :  { %v1359_v39 = vadd.f32 %v1358_v46, %v1356_v37 }
 0x50f   :  { %v1362_v17 = vadd.f32 %v1361_v0, %v1359_v39 }
 0x511   :  { %1363 = vst [vmem:[#allocation9] sm:$0xff] %v1362_v17 }
 0x512   :  { %1374 = dma.vmem_to_hbm [thread:$0]  %s1370_s8, 128, %s1372_s30, [#allocation4]  }
 0x513   :  { %1775 = dma.done.wait [#allocation4], 128  }
 0x514   :  { %1776 = vsyncadd [#allocation4], 4294967168 }
 0x515   :  { %1379 = vsyncpa [#allocation3], 1 }
 0x516   :  { %1380 = vsyncpa [#allocation8], 1 }
 0x517   :  { %1381 = vsyncpa [#allocation4], 1 }
 0x518   :  { %1382 = vsyncpa [#allocation5], 1 }

</bundles_post_ra>
